<compile_context>
chip_gen: v5e
topology: v5e:2x2
jax: 0.10.0
libtpu: 0.0.40
codegen_flags: <defaults>
</compile_context>

<pallas_src>
import functools

import jax
import jax.numpy as jnp
from jax import lax
from jax.experimental import pallas as pl
from jax.experimental.pallas import tpu as pltpu


def _sparse_attention_kernel(x_ref, wqkv_ref, wdw_ref, mask_ref, tmask_ref,
                             wproj_ref, o_ref, acc_s, *, W, HW, C, rb):
    # x_ref    : (C, HW)            one batch element, channels-first, spatial on lanes
    # wqkv_ref : (3C, C)            1x1 qkv-projection weight
    # wdw_ref  : (9*n_chunks, rb, 1) depthwise 3x3 weights, one (rb,1) column per (tap, chunk)
    # mask_ref : (9, 1, HW)         per-tap spatial validity mask (zero padding)
    # tmask_ref: (C, C)             block-diagonal head mask with temperature folded in
    # wproj_ref: (C, C)             1x1 output-projection weight
    # o_ref    : (C, HW)
    # acc_s    : VMEM scratch (3C, HW) f32 -- depthwise-conv result (q|k|v)
    C3 = 3 * C
    n_chunks = C3 // rb

    x = x_ref[...]                                         # (C, HW)

    # 1+2) fused qkv 1x1 conv + 3x3 depthwise conv, register-accumulated per
    #      rb-row channel chunk; one store to VMEM per chunk.
    for ci in range(n_chunks):
        s = ci * rb
        qkv_c = jnp.dot(wqkv_ref[s:s + rb, :], x,
                        preferred_element_type=jnp.float32)            # (rb, HW)
        acc = qkv_c * wdw_ref[4 * n_chunks + ci]                        # centre tap
        for t in (0, 1, 2, 3, 5, 6, 7, 8):
            off = (t // 3 - 1) * W + (t % 3 - 1)                        # static offset
            shifted = pltpu.roll(qkv_c, shift=(-off) % HW, axis=1)      # XLU
            acc = acc + shifted * wdw_ref[t * n_chunks + ci] * mask_ref[t]
        acc_s[s:s + rb, :] = acc                                        # single store

    # 3) block-diagonal MDTA channel attention (q,k L2-normalized over spatial).
    q = acc_s[0:C, :]                                       # ref slices: no early load
    k = acc_s[C:2 * C, :]
    qn = q * lax.rsqrt(jnp.maximum(jnp.sum(q * q, axis=-1, keepdims=True), 1e-24))
    kn = k * lax.rsqrt(jnp.maximum(jnp.sum(k * k, axis=-1, keepdims=True), 1e-24))
    # attn[c, d] = sum_p qn[c, p] * kn[d, p]   -> (C, C), one MXU op for all heads
    attn = lax.dot_general(qn, kn, (((1,), (1,)), ((), ())),
                           preferred_element_type=jnp.float32)
    # per-head temperature + ReLU + zero the off-diagonal head blocks
    attn = jnp.maximum(attn * tmask_ref[...], 0.0)
    out_attn = jnp.dot(attn, acc_s[2 * C:3 * C, :],
                       preferred_element_type=jnp.float32)              # (C, HW)

    # 4) output 1x1 conv, emitted channel-first and lane-dense.
    o_ref[...] = jnp.dot(wproj_ref[...], out_attn,
                         preferred_element_type=jnp.float32).astype(o_ref.dtype)


def _pallas_forward(x_f, wqkv, wdw, mask_arr, tmask, wproj, *, B, C, HW, W, rb,
                    core_parallel, single_buffer_weights):
    C3 = 3 * C
    kernel = functools.partial(_sparse_attention_kernel, W=W, HW=HW, C=C, rb=rb)

    def weight_spec(shape):
        idx = lambda b, n=len(shape): (0,) * n
        if single_buffer_weights:
            # invariant weights: no double-buffering / re-DMA across grid steps
            return pl.BlockSpec(shape, idx, pipeline_mode=pl.Buffered(1))
        return pl.BlockSpec(shape, idx)

    semantics = (pltpu.CORE_PARALLEL,) if core_parallel else ("parallel",)

    # VMEM budget: scratch + double-buffered I/O + weights, with generous margin.
    vmem_need = 4 * (C3 * HW + 4 * C * HW
                     + 2 * (C3 * C + 9 * C3 + 9 * HW + 2 * C * C))
    vmem_limit = int(min(64 << 20, max(4 * vmem_need, 32 << 20)))

    return pl.pallas_call(
        kernel,
        out_shape=jax.ShapeDtypeStruct((B, C, HW), x_f.dtype),
        grid_spec=pltpu.PrefetchScalarGridSpec(
            num_scalar_prefetch=0,
            grid=(B,),
            in_specs=[
                pl.BlockSpec((pl.Squeezed(), C, HW), lambda b: (b, 0, 0)),
                weight_spec((C3, C)),
                weight_spec(wdw.shape),          # (9*n_chunks, rb, 1)
                weight_spec((9, 1, HW)),
                weight_spec((C, C)),
                weight_spec((C, C)),
            ],
            out_specs=pl.BlockSpec((pl.Squeezed(), C, HW), lambda b: (b, 0, 0)),
            scratch_shapes=[
                pltpu.VMEM((C3, HW), jnp.float32),   # depthwise-conv result (q|k|v)
            ],
        ),
        compiler_params=pltpu.CompilerParams(
            dimension_semantics=semantics,
            vmem_limit_bytes=vmem_limit,
        ),
    )(x_f, wqkv, wdw, mask_arr, tmask, wproj)


def sparse_attention_forward(x, w_qkv, w_dw, temperature, w_proj, num_heads):
    """x: (B, C, H, W). Weights in PyTorch conv layouts:
       w_qkv (3C, C, 1, 1), w_dw (3C, 1, 3, 3), temperature (num_heads, 1, 1),
       w_proj (C, C, 1, 1). Returns (B, C, H, W)."""
    B, C, H, W = x.shape
    HW = H * W
    C3 = 3 * C
    assert C % num_heads == 0
    ch = C // num_heads

    # Row-chunk size for register accumulation of the depthwise conv.
    rb = C3
    for cand in (32, 16, 8):
        if C3 % cand == 0:
            rb = cand
            break
    n_chunks = C3 // rb

    # Pure metadata reshapes -- no transposes of the activation tensor.
    x_f = x.reshape(B, C, HW)
    wqkv = w_qkv.reshape(C3, C)
    wproj = w_proj.reshape(C, C)
    # Depthwise weights laid out so the kernel indexes a (rb,1) column with a
    # single leading integer index: entry [t*n_chunks + ci] = tap t, rows ci*rb..
    wdw = jnp.transpose(w_dw.reshape(C3, 9), (1, 0))               # (9, 3C)
    wdw = wdw.reshape(9, n_chunks, rb).reshape(9 * n_chunks, rb, 1)

    # Per-tap validity masks implementing the 3x3 conv's zero padding.
    ii = jnp.arange(H).reshape(H, 1)
    jj = jnp.arange(W).reshape(1, W)
    masks = []
    for t in range(9):
        dh, dw = t // 3 - 1, t % 3 - 1
        m = (ii + dh >= 0) & (ii + dh < H) & (jj + dw >= 0) & (jj + dw < W)
        masks.append(m.reshape(1, HW))
    mask_arr = jnp.stack(masks, axis=0).astype(jnp.float32)        # (9, 1, HW)

    # Block-diagonal head mask with the per-head temperature folded in:
    # tmask[c,d] = temperature[c // ch] if c,d in the same head block else 0.
    # relu(attn*temp)*mask == relu(attn*tmask) since masked entries are 0 anyway.
    head_id = jnp.arange(C) // ch
    temp_row = temperature.reshape(num_heads).astype(jnp.float32)[head_id]   # (C,)
    tmask = ((head_id[:, None] == head_id[None, :]).astype(jnp.float32)
             * temp_row[:, None])                                   # (C, C)

    attempts = (
        dict(core_parallel=True, single_buffer_weights=True),
        dict(core_parallel=True, single_buffer_weights=False),
        dict(core_parallel=False, single_buffer_weights=False),
    )
    last_err = None
    for cfg in attempts:
        try:
            out_f = _pallas_forward(x_f, wqkv, wdw, mask_arr, tmask, wproj,
                                    B=B, C=C, HW=HW, W=W, rb=rb, **cfg)
            out_f = jax.block_until_ready(out_f)
            return out_f.reshape(B, C, H, W)
        except Exception as e:  # tuning knob not supported on this jax/TPU: fall back
            last_err = e
    raise last_err


def _reference_forward(x, w_qkv, w_dw, temperature, w_proj, num_heads):
    """Plain JAX/XLA reference with the same semantics as the PyTorch module."""
    B, C, H, W = x.shape
    HW = H * W
    ch = C // num_heads
    hp = lax.Precision.HIGHEST
    qkv = lax.conv_general_dilated(
        x, w_qkv, (1, 1), ((0, 0), (0, 0)),
        dimension_numbers=("NCHW", "OIHW", "NCHW"), precision=hp)
    qkv = lax.conv_general_dilated(
        qkv, w_dw, (1, 1), ((1, 1), (1, 1)),
        dimension_numbers=("NCHW", "OIHW", "NCHW"),
        feature_group_count=3 * C, precision=hp)
    q, k, v = jnp.split(qkv, 3, axis=1)

    def heads(t):
        return t.reshape(B, num_heads, ch, HW)

    def l2norm(t):
        return t / jnp.maximum(
            jnp.sqrt(jnp.sum(t * t, axis=-1, keepdims=True)), 1e-12)

    q = l2norm(heads(q))
    k = l2norm(heads(k))
    v = heads(v)
    attn = jnp.einsum("bhcp,bhdp->bhcd", q, k, precision=hp)
    attn = attn * temperature.reshape(1, num_heads, 1, 1)
    attn = jnp.maximum(attn, 0.0)                      # ReLU activation
    out = jnp.einsum("bhcd,bhdp->bhcp", attn, v, precision=hp)
    out = out.reshape(B, C, H, W)
    out = lax.conv_general_dilated(
        out, w_proj, (1, 1), ((0, 0), (0, 0)),
        dimension_numbers=("NCHW", "OIHW", "NCHW"), precision=hp)
    return out


if __name__ == "__main__":
    # Module config: dim=32, num_heads=2, bias=False, activation='relu'.
    # At H=W=16 <= tlc_kernel=48 the TLC grid partition is the identity, so the
    # global-attention path below matches both training and test modes.
    B, C, H, W = 2, 32, 16, 16
    num_heads = 2

    key = jax.random.PRNGKey(0)
    kx, k1, k2, k3, k4 = jax.random.split(key, 5)
    x = jax.random.normal(kx, (B, C, H, W), dtype=jnp.float32)
    w_qkv = jax.random.normal(k1, (3 * C, C, 1, 1), dtype=jnp.float32) / jnp.sqrt(C)
    w_dw = jax.random.normal(k2, (3 * C, 1, 3, 3), dtype=jnp.float32) / 3.0
    temperature = jax.random.uniform(k3, (num_heads, 1, 1), dtype=jnp.float32,
                                     minval=0.5, maxval=1.5)
    w_proj = jax.random.normal(k4, (C, C, 1, 1), dtype=jnp.float32) / jnp.sqrt(C)

    out = sparse_attention_forward(x, w_qkv, w_dw, temperature, w_proj, num_heads)
    out = jax.block_until_ready(out)

    ref = _reference_forward(x, w_qkv, w_dw, temperature, w_proj, num_heads)
    assert out.shape == (B, C, H, W)
    err = jnp.max(jnp.abs(out - ref))
    assert jnp.allclose(out, ref, atol=1e-3, rtol=1e-3), float(err)

    print("KERNEL_OK")
</pallas_src>

<mosaic_0001>
module attributes {stable_mosaic.version = 11 : i64} {
  func.func @_sparse_attention_kernel(%arg0: i32, %arg1: memref<1x32x256xf32, #tpu.memory_space<vmem>>, %arg2: memref<96x32xf32, #tpu.memory_space<vmem>>, %arg3: memref<27x32x1xf32, #tpu.memory_space<vmem>>, %arg4: memref<9x1x256xf32, #tpu.memory_space<vmem>>, %arg5: memref<32x32xf32, #tpu.memory_space<vmem>>, %arg6: memref<32x32xf32, #tpu.memory_space<vmem>>, %arg7: memref<1x32x256xf32, #tpu.memory_space<vmem>>, %arg8: memref<96x256xf32, #tpu.memory_space<vmem>>) attributes {dimension_semantics = [#tpu.dimension_semantics<core_parallel>], iteration_bounds = array<i64: 2>, scalar_prefetch = 0 : i64, scratch_operands = 1 : i64, tpu.core_type = #tpu.core_type<tc>, window_params = [{transform_indices = @transform_0, window_bounds = array<i64: 1, 32, 256>}, {pipeline_mode = #tpu.pipeline_mode<synchronous>, transform_indices = @transform_1, window_bounds = array<i64: 96, 32>}, {pipeline_mode = #tpu.pipeline_mode<synchronous>, transform_indices = @transform_2, window_bounds = array<i64: 27, 32, 1>}, {pipeline_mode = #tpu.pipeline_mode<synchronous>, transform_indices = @transform_3, window_bounds = array<i64: 9, 1, 256>}, {pipeline_mode = #tpu.pipeline_mode<synchronous>, transform_indices = @transform_4, window_bounds = array<i64: 32, 32>}, {pipeline_mode = #tpu.pipeline_mode<synchronous>, transform_indices = @transform_5, window_bounds = array<i64: 32, 32>}, {transform_indices = @transform_6, window_bounds = array<i64: 1, 32, 256>}]} {
    %c0 = arith.constant 0 : index
    %c0_0 = arith.constant 0 : index
    %c0_1 = arith.constant 0 : index
    %0 = vector.load %arg1[%c0, %c0_0, %c0_1] : memref<1x32x256xf32, #tpu.memory_space<vmem>>, vector<1x32x256xf32>
    %1 = vector.shape_cast %0 : vector<1x32x256xf32> to vector<32x256xf32>
    %c0_2 = arith.constant 0 : index
    %c0_3 = arith.constant 0 : index
    %2 = vector.load %arg2[%c0_2, %c0_3] : memref<96x32xf32, #tpu.memory_space<vmem>>, vector<32x32xf32>
    %cst = arith.constant dense<0.000000e+00> : vector<32x256xf32>
    %3 = tpu.matmul %2, %1, %cst {dimension_numbers = #tpu.dot_dimension_numbers<[1], [0], [0], [1], [0, 0, 1, 1], [], []>} : vector<32x32xf32>, vector<32x256xf32>, vector<32x256xf32> -> vector<32x256xf32>
    %c12 = arith.constant 12 : index
    %c0_4 = arith.constant 0 : index
    %c0_5 = arith.constant 0 : index
    %4 = vector.load %arg3[%c12, %c0_4, %c0_5] : memref<27x32x1xf32, #tpu.memory_space<vmem>>, vector<1x32x1xf32>
    %5 = vector.shape_cast %4 : vector<1x32x1xf32> to vector<32x1xf32>
    %6 = vector.broadcast %5 : vector<32x1xf32> to vector<32x256xf32>
    %7 = arith.mulf %3, %6 : vector<32x256xf32>
    %c17_i32 = arith.constant 17 : i32
    %8 = tpu.dynamic_rotate %3 by %c17_i32 dim 1 : vector<32x256xf32>, i32 -> vector<32x256xf32>
    %c0_6 = arith.constant 0 : index
    %c0_7 = arith.constant 0 : index
    %c0_8 = arith.constant 0 : index
    %9 = vector.load %arg3[%c0_6, %c0_7, %c0_8] : memref<27x32x1xf32, #tpu.memory_space<vmem>>, vector<1x32x1xf32>
    %10 = vector.shape_cast %9 : vector<1x32x1xf32> to vector<32x1xf32>
    %11 = vector.broadcast %10 : vector<32x1xf32> to vector<32x256xf32>
    %12 = arith.mulf %8, %11 : vector<32x256xf32>
    %c0_9 = arith.constant 0 : index
    %c0_10 = arith.constant 0 : index
    %c0_11 = arith.constant 0 : index
    %13 = vector.load %arg4[%c0_9, %c0_10, %c0_11] : memref<9x1x256xf32, #tpu.memory_space<vmem>>, vector<1x1x256xf32>
    %14 = vector.shape_cast %13 : vector<1x1x256xf32> to vector<1x256xf32>
    %15 = vector.broadcast %14 : vector<1x256xf32> to vector<32x256xf32>
    %16 = arith.mulf %12, %15 : vector<32x256xf32>
    %17 = arith.addf %7, %16 : vector<32x256xf32>
    %c16_i32 = arith.constant 16 : i32
    %18 = tpu.dynamic_rotate %3 by %c16_i32 dim 1 : vector<32x256xf32>, i32 -> vector<32x256xf32>
    %c3 = arith.constant 3 : index
    %c0_12 = arith.constant 0 : index
    %c0_13 = arith.constant 0 : index
    %19 = vector.load %arg3[%c3, %c0_12, %c0_13] : memref<27x32x1xf32, #tpu.memory_space<vmem>>, vector<1x32x1xf32>
    %20 = vector.shape_cast %19 : vector<1x32x1xf32> to vector<32x1xf32>
    %21 = vector.broadcast %20 : vector<32x1xf32> to vector<32x256xf32>
    %22 = arith.mulf %18, %21 : vector<32x256xf32>
    %c1 = arith.constant 1 : index
    %c0_14 = arith.constant 0 : index
    %c0_15 = arith.constant 0 : index
    %23 = vector.load %arg4[%c1, %c0_14, %c0_15] : memref<9x1x256xf32, #tpu.memory_space<vmem>>, vector<1x1x256xf32>
    %24 = vector.shape_cast %23 : vector<1x1x256xf32> to vector<1x256xf32>
    %25 = vector.broadcast %24 : vector<1x256xf32> to vector<32x256xf32>
    %26 = arith.mulf %22, %25 : vector<32x256xf32>
    %27 = arith.addf %17, %26 : vector<32x256xf32>
    %c15_i32 = arith.constant 15 : i32
    %28 = tpu.dynamic_rotate %3 by %c15_i32 dim 1 : vector<32x256xf32>, i32 -> vector<32x256xf32>
    %c6 = arith.constant 6 : index
    %c0_16 = arith.constant 0 : index
    %c0_17 = arith.constant 0 : index
    %29 = vector.load %arg3[%c6, %c0_16, %c0_17] : memref<27x32x1xf32, #tpu.memory_space<vmem>>, vector<1x32x1xf32>
    %30 = vector.shape_cast %29 : vector<1x32x1xf32> to vector<32x1xf32>
    %31 = vector.broadcast %30 : vector<32x1xf32> to vector<32x256xf32>
    %32 = arith.mulf %28, %31 : vector<32x256xf32>
    %c2 = arith.constant 2 : index
    %c0_18 = arith.constant 0 : index
    %c0_19 = arith.constant 0 : index
    %33 = vector.load %arg4[%c2, %c0_18, %c0_19] : memref<9x1x256xf32, #tpu.memory_space<vmem>>, vector<1x1x256xf32>
    %34 = vector.shape_cast %33 : vector<1x1x256xf32> to vector<1x256xf32>
    %35 = vector.broadcast %34 : vector<1x256xf32> to vector<32x256xf32>
    %36 = arith.mulf %32, %35 : vector<32x256xf32>
    %37 = arith.addf %27, %36 : vector<32x256xf32>
    %c1_i32 = arith.constant 1 : i32
    %38 = tpu.dynamic_rotate %3 by %c1_i32 dim 1 : vector<32x256xf32>, i32 -> vector<32x256xf32>
    %c9 = arith.constant 9 : index
    %c0_20 = arith.constant 0 : index
    %c0_21 = arith.constant 0 : index
    %39 = vector.load %arg3[%c9, %c0_20, %c0_21] : memref<27x32x1xf32, #tpu.memory_space<vmem>>, vector<1x32x1xf32>
    %40 = vector.shape_cast %39 : vector<1x32x1xf32> to vector<32x1xf32>
    %41 = vector.broadcast %40 : vector<32x1xf32> to vector<32x256xf32>
    %42 = arith.mulf %38, %41 : vector<32x256xf32>
    %c3_22 = arith.constant 3 : index
    %c0_23 = arith.constant 0 : index
    %c0_24 = arith.constant 0 : index
    %43 = vector.load %arg4[%c3_22, %c0_23, %c0_24] : memref<9x1x256xf32, #tpu.memory_space<vmem>>, vector<1x1x256xf32>
    %44 = vector.shape_cast %43 : vector<1x1x256xf32> to vector<1x256xf32>
    %45 = vector.broadcast %44 : vector<1x256xf32> to vector<32x256xf32>
    %46 = arith.mulf %42, %45 : vector<32x256xf32>
    %47 = arith.addf %37, %46 : vector<32x256xf32>
    %c255_i32 = arith.constant 255 : i32
    %48 = tpu.dynamic_rotate %3 by %c255_i32 dim 1 : vector<32x256xf32>, i32 -> vector<32x256xf32>
    %c15 = arith.constant 15 : index
    %c0_25 = arith.constant 0 : index
    %c0_26 = arith.constant 0 : index
    %49 = vector.load %arg3[%c15, %c0_25, %c0_26] : memref<27x32x1xf32, #tpu.memory_space<vmem>>, vector<1x32x1xf32>
    %50 = vector.shape_cast %49 : vector<1x32x1xf32> to vector<32x1xf32>
    %51 = vector.broadcast %50 : vector<32x1xf32> to vector<32x256xf32>
    %52 = arith.mulf %48, %51 : vector<32x256xf32>
    %c5 = arith.constant 5 : index
    %c0_27 = arith.constant 0 : index
    %c0_28 = arith.constant 0 : index
    %53 = vector.load %arg4[%c5, %c0_27, %c0_28] : memref<9x1x256xf32, #tpu.memory_space<vmem>>, vector<1x1x256xf32>
    %54 = vector.shape_cast %53 : vector<1x1x256xf32> to vector<1x256xf32>
    %55 = vector.broadcast %54 : vector<1x256xf32> to vector<32x256xf32>
    %56 = arith.mulf %52, %55 : vector<32x256xf32>
    %57 = arith.addf %47, %56 : vector<32x256xf32>
    %c241_i32 = arith.constant 241 : i32
    %58 = tpu.dynamic_rotate %3 by %c241_i32 dim 1 : vector<32x256xf32>, i32 -> vector<32x256xf32>
    %c18 = arith.constant 18 : index
    %c0_29 = arith.constant 0 : index
    %c0_30 = arith.constant 0 : index
    %59 = vector.load %arg3[%c18, %c0_29, %c0_30] : memref<27x32x1xf32, #tpu.memory_space<vmem>>, vector<1x32x1xf32>
    %60 = vector.shape_cast %59 : vector<1x32x1xf32> to vector<32x1xf32>
    %61 = vector.broadcast %60 : vector<32x1xf32> to vector<32x256xf32>
    %62 = arith.mulf %58, %61 : vector<32x256xf32>
    %c6_31 = arith.constant 6 : index
    %c0_32 = arith.constant 0 : index
    %c0_33 = arith.constant 0 : index
    %63 = vector.load %arg4[%c6_31, %c0_32, %c0_33] : memref<9x1x256xf32, #tpu.memory_space<vmem>>, vector<1x1x256xf32>
    %64 = vector.shape_cast %63 : vector<1x1x256xf32> to vector<1x256xf32>
    %65 = vector.broadcast %64 : vector<1x256xf32> to vector<32x256xf32>
    %66 = arith.mulf %62, %65 : vector<32x256xf32>
    %67 = arith.addf %57, %66 : vector<32x256xf32>
    %c240_i32 = arith.constant 240 : i32
    %68 = tpu.dynamic_rotate %3 by %c240_i32 dim 1 : vector<32x256xf32>, i32 -> vector<32x256xf32>
    %c21 = arith.constant 21 : index
    %c0_34 = arith.constant 0 : index
    %c0_35 = arith.constant 0 : index
    %69 = vector.load %arg3[%c21, %c0_34, %c0_35] : memref<27x32x1xf32, #tpu.memory_space<vmem>>, vector<1x32x1xf32>
    %70 = vector.shape_cast %69 : vector<1x32x1xf32> to vector<32x1xf32>
    %71 = vector.broadcast %70 : vector<32x1xf32> to vector<32x256xf32>
    %72 = arith.mulf %68, %71 : vector<32x256xf32>
    %c7 = arith.constant 7 : index
    %c0_36 = arith.constant 0 : index
    %c0_37 = arith.constant 0 : index
    %73 = vector.load %arg4[%c7, %c0_36, %c0_37] : memref<9x1x256xf32, #tpu.memory_space<vmem>>, vector<1x1x256xf32>
    %74 = vector.shape_cast %73 : vector<1x1x256xf32> to vector<1x256xf32>
    %75 = vector.broadcast %74 : vector<1x256xf32> to vector<32x256xf32>
    %76 = arith.mulf %72, %75 : vector<32x256xf32>
    %77 = arith.addf %67, %76 : vector<32x256xf32>
    %c239_i32 = arith.constant 239 : i32
    %78 = tpu.dynamic_rotate %3 by %c239_i32 dim 1 : vector<32x256xf32>, i32 -> vector<32x256xf32>
    %c24 = arith.constant 24 : index
    %c0_38 = arith.constant 0 : index
    %c0_39 = arith.constant 0 : index
    %79 = vector.load %arg3[%c24, %c0_38, %c0_39] : memref<27x32x1xf32, #tpu.memory_space<vmem>>, vector<1x32x1xf32>
    %80 = vector.shape_cast %79 : vector<1x32x1xf32> to vector<32x1xf32>
    %81 = vector.broadcast %80 : vector<32x1xf32> to vector<32x256xf32>
    %82 = arith.mulf %78, %81 : vector<32x256xf32>
    %c8 = arith.constant 8 : index
    %c0_40 = arith.constant 0 : index
    %c0_41 = arith.constant 0 : index
    %83 = vector.load %arg4[%c8, %c0_40, %c0_41] : memref<9x1x256xf32, #tpu.memory_space<vmem>>, vector<1x1x256xf32>
    %84 = vector.shape_cast %83 : vector<1x1x256xf32> to vector<1x256xf32>
    %85 = vector.broadcast %84 : vector<1x256xf32> to vector<32x256xf32>
    %86 = arith.mulf %82, %85 : vector<32x256xf32>
    %87 = arith.addf %77, %86 : vector<32x256xf32>
    %c0_42 = arith.constant 0 : index
    %c0_43 = arith.constant 0 : index
    %88 = vector.load %arg8[%c0_42, %c0_43] : memref<96x256xf32, #tpu.memory_space<vmem>>, vector<32x256xf32>
    tpu.vector_store %arg8[%c0_42, %c0_43], %87 {strides = array<i32>} : memref<96x256xf32, #tpu.memory_space<vmem>>, vector<32x256xf32>,
    %c32 = arith.constant 32 : index
    %c0_44 = arith.constant 0 : index
    %89 = vector.load %arg2[%c32, %c0_44] : memref<96x32xf32, #tpu.memory_space<vmem>>, vector<32x32xf32>
    %cst_45 = arith.constant dense<0.000000e+00> : vector<32x256xf32>
    %90 = tpu.matmul %89, %1, %cst_45 {dimension_numbers = #tpu.dot_dimension_numbers<[1], [0], [0], [1], [0, 0, 1, 1], [], []>} : vector<32x32xf32>, vector<32x256xf32>, vector<32x256xf32> -> vector<32x256xf32>
    %c13 = arith.constant 13 : index
    %c0_46 = arith.constant 0 : index
    %c0_47 = arith.constant 0 : index
    %91 = vector.load %arg3[%c13, %c0_46, %c0_47] : memref<27x32x1xf32, #tpu.memory_space<vmem>>, vector<1x32x1xf32>
    %92 = vector.shape_cast %91 : vector<1x32x1xf32> to vector<32x1xf32>
    %93 = vector.broadcast %92 : vector<32x1xf32> to vector<32x256xf32>
    %94 = arith.mulf %90, %93 : vector<32x256xf32>
    %c17_i32_48 = arith.constant 17 : i32
    %95 = tpu.dynamic_rotate %90 by %c17_i32_48 dim 1 : vector<32x256xf32>, i32 -> vector<32x256xf32>
    %c1_49 = arith.constant 1 : index
    %c0_50 = arith.constant 0 : index
    %c0_51 = arith.constant 0 : index
    %96 = vector.load %arg3[%c1_49, %c0_50, %c0_51] : memref<27x32x1xf32, #tpu.memory_space<vmem>>, vector<1x32x1xf32>
    %97 = vector.shape_cast %96 : vector<1x32x1xf32> to vector<32x1xf32>
    %98 = vector.broadcast %97 : vector<32x1xf32> to vector<32x256xf32>
    %99 = arith.mulf %95, %98 : vector<32x256xf32>
    %c0_52 = arith.constant 0 : index
    %c0_53 = arith.constant 0 : index
    %c0_54 = arith.constant 0 : index
    %100 = vector.load %arg4[%c0_52, %c0_53, %c0_54] : memref<9x1x256xf32, #tpu.memory_space<vmem>>, vector<1x1x256xf32>
    %101 = vector.shape_cast %100 : vector<1x1x256xf32> to vector<1x256xf32>
    %102 = vector.broadcast %101 : vector<1x256xf32> to vector<32x256xf32>
    %103 = arith.mulf %99, %102 : vector<32x256xf32>
    %104 = arith.addf %94, %103 : vector<32x256xf32>
    %c16_i32_55 = arith.constant 16 : i32
    %105 = tpu.dynamic_rotate %90 by %c16_i32_55 dim 1 : vector<32x256xf32>, i32 -> vector<32x256xf32>
    %c4 = arith.constant 4 : index
    %c0_56 = arith.constant 0 : index
    %c0_57 = arith.constant 0 : index
    %106 = vector.load %arg3[%c4, %c0_56, %c0_57] : memref<27x32x1xf32, #tpu.memory_space<vmem>>, vector<1x32x1xf32>
    %107 = vector.shape_cast %106 : vector<1x32x1xf32> to vector<32x1xf32>
    %108 = vector.broadcast %107 : vector<32x1xf32> to vector<32x256xf32>
    %109 = arith.mulf %105, %108 : vector<32x256xf32>
    %c1_58 = arith.constant 1 : index
    %c0_59 = arith.constant 0 : index
    %c0_60 = arith.constant 0 : index
    %110 = vector.load %arg4[%c1_58, %c0_59, %c0_60] : memref<9x1x256xf32, #tpu.memory_space<vmem>>, vector<1x1x256xf32>
    %111 = vector.shape_cast %110 : vector<1x1x256xf32> to vector<1x256xf32>
    %112 = vector.broadcast %111 : vector<1x256xf32> to vector<32x256xf32>
    %113 = arith.mulf %109, %112 : vector<32x256xf32>
    %114 = arith.addf %104, %113 : vector<32x256xf32>
    %c15_i32_61 = arith.constant 15 : i32
    %115 = tpu.dynamic_rotate %90 by %c15_i32_61 dim 1 : vector<32x256xf32>, i32 -> vector<32x256xf32>
    %c7_62 = arith.constant 7 : index
    %c0_63 = arith.constant 0 : index
    %c0_64 = arith.constant 0 : index
    %116 = vector.load %arg3[%c7_62, %c0_63, %c0_64] : memref<27x32x1xf32, #tpu.memory_space<vmem>>, vector<1x32x1xf32>
    %117 = vector.shape_cast %116 : vector<1x32x1xf32> to vector<32x1xf32>
    %118 = vector.broadcast %117 : vector<32x1xf32> to vector<32x256xf32>
    %119 = arith.mulf %115, %118 : vector<32x256xf32>
    %c2_65 = arith.constant 2 : index
    %c0_66 = arith.constant 0 : index
    %c0_67 = arith.constant 0 : index
    %120 = vector.load %arg4[%c2_65, %c0_66, %c0_67] : memref<9x1x256xf32, #tpu.memory_space<vmem>>, vector<1x1x256xf32>
    %121 = vector.shape_cast %120 : vector<1x1x256xf32> to vector<1x256xf32>
    %122 = vector.broadcast %121 : vector<1x256xf32> to vector<32x256xf32>
    %123 = arith.mulf %119, %122 : vector<32x256xf32>
    %124 = arith.addf %114, %123 : vector<32x256xf32>
    %c1_i32_68 = arith.constant 1 : i32
    %125 = tpu.dynamic_rotate %90 by %c1_i32_68 dim 1 : vector<32x256xf32>, i32 -> vector<32x256xf32>
    %c10 = arith.constant 10 : index
    %c0_69 = arith.constant 0 : index
    %c0_70 = arith.constant 0 : index
    %126 = vector.load %arg3[%c10, %c0_69, %c0_70] : memref<27x32x1xf32, #tpu.memory_space<vmem>>, vector<1x32x1xf32>
    %127 = vector.shape_cast %126 : vector<1x32x1xf32> to vector<32x1xf32>
    %128 = vector.broadcast %127 : vector<32x1xf32> to vector<32x256xf32>
    %129 = arith.mulf %125, %128 : vector<32x256xf32>
    %c3_71 = arith.constant 3 : index
    %c0_72 = arith.constant 0 : index
    %c0_73 = arith.constant 0 : index
    %130 = vector.load %arg4[%c3_71, %c0_72, %c0_73] : memref<9x1x256xf32, #tpu.memory_space<vmem>>, vector<1x1x256xf32>
    %131 = vector.shape_cast %130 : vector<1x1x256xf32> to vector<1x256xf32>
    %132 = vector.broadcast %131 : vector<1x256xf32> to vector<32x256xf32>
    %133 = arith.mulf %129, %132 : vector<32x256xf32>
    %134 = arith.addf %124, %133 : vector<32x256xf32>
    %c255_i32_74 = arith.constant 255 : i32
    %135 = tpu.dynamic_rotate %90 by %c255_i32_74 dim 1 : vector<32x256xf32>, i32 -> vector<32x256xf32>
    %c16 = arith.constant 16 : index
    %c0_75 = arith.constant 0 : index
    %c0_76 = arith.constant 0 : index
    %136 = vector.load %arg3[%c16, %c0_75, %c0_76] : memref<27x32x1xf32, #tpu.memory_space<vmem>>, vector<1x32x1xf32>
    %137 = vector.shape_cast %136 : vector<1x32x1xf32> to vector<32x1xf32>
    %138 = vector.broadcast %137 : vector<32x1xf32> to vector<32x256xf32>
    %139 = arith.mulf %135, %138 : vector<32x256xf32>
    %c5_77 = arith.constant 5 : index
    %c0_78 = arith.constant 0 : index
    %c0_79 = arith.constant 0 : index
    %140 = vector.load %arg4[%c5_77, %c0_78, %c0_79] : memref<9x1x256xf32, #tpu.memory_space<vmem>>, vector<1x1x256xf32>
    %141 = vector.shape_cast %140 : vector<1x1x256xf32> to vector<1x256xf32>
    %142 = vector.broadcast %141 : vector<1x256xf32> to vector<32x256xf32>
    %143 = arith.mulf %139, %142 : vector<32x256xf32>
    %144 = arith.addf %134, %143 : vector<32x256xf32>
    %c241_i32_80 = arith.constant 241 : i32
    %145 = tpu.dynamic_rotate %90 by %c241_i32_80 dim 1 : vector<32x256xf32>, i32 -> vector<32x256xf32>
    %c19 = arith.constant 19 : index
    %c0_81 = arith.constant 0 : index
    %c0_82 = arith.constant 0 : index
    %146 = vector.load %arg3[%c19, %c0_81, %c0_82] : memref<27x32x1xf32, #tpu.memory_space<vmem>>, vector<1x32x1xf32>
    %147 = vector.shape_cast %146 : vector<1x32x1xf32> to vector<32x1xf32>
    %148 = vector.broadcast %147 : vector<32x1xf32> to vector<32x256xf32>
    %149 = arith.mulf %145, %148 : vector<32x256xf32>
    %c6_83 = arith.constant 6 : index
    %c0_84 = arith.constant 0 : index
    %c0_85 = arith.constant 0 : index
    %150 = vector.load %arg4[%c6_83, %c0_84, %c0_85] : memref<9x1x256xf32, #tpu.memory_space<vmem>>, vector<1x1x256xf32>
    %151 = vector.shape_cast %150 : vector<1x1x256xf32> to vector<1x256xf32>
    %152 = vector.broadcast %151 : vector<1x256xf32> to vector<32x256xf32>
    %153 = arith.mulf %149, %152 : vector<32x256xf32>
    %154 = arith.addf %144, %153 : vector<32x256xf32>
    %c240_i32_86 = arith.constant 240 : i32
    %155 = tpu.dynamic_rotate %90 by %c240_i32_86 dim 1 : vector<32x256xf32>, i32 -> vector<32x256xf32>
    %c22 = arith.constant 22 : index
    %c0_87 = arith.constant 0 : index
    %c0_88 = arith.constant 0 : index
    %156 = vector.load %arg3[%c22, %c0_87, %c0_88] : memref<27x32x1xf32, #tpu.memory_space<vmem>>, vector<1x32x1xf32>
    %157 = vector.shape_cast %156 : vector<1x32x1xf32> to vector<32x1xf32>
    %158 = vector.broadcast %157 : vector<32x1xf32> to vector<32x256xf32>
    %159 = arith.mulf %155, %158 : vector<32x256xf32>
    %c7_89 = arith.constant 7 : index
    %c0_90 = arith.constant 0 : index
    %c0_91 = arith.constant 0 : index
    %160 = vector.load %arg4[%c7_89, %c0_90, %c0_91] : memref<9x1x256xf32, #tpu.memory_space<vmem>>, vector<1x1x256xf32>
    %161 = vector.shape_cast %160 : vector<1x1x256xf32> to vector<1x256xf32>
    %162 = vector.broadcast %161 : vector<1x256xf32> to vector<32x256xf32>
    %163 = arith.mulf %159, %162 : vector<32x256xf32>
    %164 = arith.addf %154, %163 : vector<32x256xf32>
    %c239_i32_92 = arith.constant 239 : i32
    %165 = tpu.dynamic_rotate %90 by %c239_i32_92 dim 1 : vector<32x256xf32>, i32 -> vector<32x256xf32>
    %c25 = arith.constant 25 : index
    %c0_93 = arith.constant 0 : index
    %c0_94 = arith.constant 0 : index
    %166 = vector.load %arg3[%c25, %c0_93, %c0_94] : memref<27x32x1xf32, #tpu.memory_space<vmem>>, vector<1x32x1xf32>
    %167 = vector.shape_cast %166 : vector<1x32x1xf32> to vector<32x1xf32>
    %168 = vector.broadcast %167 : vector<32x1xf32> to vector<32x256xf32>
    %169 = arith.mulf %165, %168 : vector<32x256xf32>
    %c8_95 = arith.constant 8 : index
    %c0_96 = arith.constant 0 : index
    %c0_97 = arith.constant 0 : index
    %170 = vector.load %arg4[%c8_95, %c0_96, %c0_97] : memref<9x1x256xf32, #tpu.memory_space<vmem>>, vector<1x1x256xf32>
    %171 = vector.shape_cast %170 : vector<1x1x256xf32> to vector<1x256xf32>
    %172 = vector.broadcast %171 : vector<1x256xf32> to vector<32x256xf32>
    %173 = arith.mulf %169, %172 : vector<32x256xf32>
    %174 = arith.addf %164, %173 : vector<32x256xf32>
    %c32_98 = arith.constant 32 : index
    %c0_99 = arith.constant 0 : index
    %175 = vector.load %arg8[%c32_98, %c0_99] : memref<96x256xf32, #tpu.memory_space<vmem>>, vector<32x256xf32>
    tpu.vector_store %arg8[%c32_98, %c0_99], %174 {strides = array<i32>} : memref<96x256xf32, #tpu.memory_space<vmem>>, vector<32x256xf32>,
    %c64 = arith.constant 64 : index
    %c0_100 = arith.constant 0 : index
    %176 = vector.load %arg2[%c64, %c0_100] : memref<96x32xf32, #tpu.memory_space<vmem>>, vector<32x32xf32>
    %cst_101 = arith.constant dense<0.000000e+00> : vector<32x256xf32>
    %177 = tpu.matmul %176, %1, %cst_101 {dimension_numbers = #tpu.dot_dimension_numbers<[1], [0], [0], [1], [0, 0, 1, 1], [], []>} : vector<32x32xf32>, vector<32x256xf32>, vector<32x256xf32> -> vector<32x256xf32>
    %c14 = arith.constant 14 : index
    %c0_102 = arith.constant 0 : index
    %c0_103 = arith.constant 0 : index
    %178 = vector.load %arg3[%c14, %c0_102, %c0_103] : memref<27x32x1xf32, #tpu.memory_space<vmem>>, vector<1x32x1xf32>
    %179 = vector.shape_cast %178 : vector<1x32x1xf32> to vector<32x1xf32>
    %180 = vector.broadcast %179 : vector<32x1xf32> to vector<32x256xf32>
    %181 = arith.mulf %177, %180 : vector<32x256xf32>
    %c17_i32_104 = arith.constant 17 : i32
    %182 = tpu.dynamic_rotate %177 by %c17_i32_104 dim 1 : vector<32x256xf32>, i32 -> vector<32x256xf32>
    %c2_105 = arith.constant 2 : index
    %c0_106 = arith.constant 0 : index
    %c0_107 = arith.constant 0 : index
    %183 = vector.load %arg3[%c2_105, %c0_106, %c0_107] : memref<27x32x1xf32, #tpu.memory_space<vmem>>, vector<1x32x1xf32>
    %184 = vector.shape_cast %183 : vector<1x32x1xf32> to vector<32x1xf32>
    %185 = vector.broadcast %184 : vector<32x1xf32> to vector<32x256xf32>
    %186 = arith.mulf %182, %185 : vector<32x256xf32>
    %c0_108 = arith.constant 0 : index
    %c0_109 = arith.constant 0 : index
    %c0_110 = arith.constant 0 : index
    %187 = vector.load %arg4[%c0_108, %c0_109, %c0_110] : memref<9x1x256xf32, #tpu.memory_space<vmem>>, vector<1x1x256xf32>
    %188 = vector.shape_cast %187 : vector<1x1x256xf32> to vector<1x256xf32>
    %189 = vector.broadcast %188 : vector<1x256xf32> to vector<32x256xf32>
    %190 = arith.mulf %186, %189 : vector<32x256xf32>
    %191 = arith.addf %181, %190 : vector<32x256xf32>
    %c16_i32_111 = arith.constant 16 : i32
    %192 = tpu.dynamic_rotate %177 by %c16_i32_111 dim 1 : vector<32x256xf32>, i32 -> vector<32x256xf32>
    %c5_112 = arith.constant 5 : index
    %c0_113 = arith.constant 0 : index
    %c0_114 = arith.constant 0 : index
    %193 = vector.load %arg3[%c5_112, %c0_113, %c0_114] : memref<27x32x1xf32, #tpu.memory_space<vmem>>, vector<1x32x1xf32>
    %194 = vector.shape_cast %193 : vector<1x32x1xf32> to vector<32x1xf32>
    %195 = vector.broadcast %194 : vector<32x1xf32> to vector<32x256xf32>
    %196 = arith.mulf %192, %195 : vector<32x256xf32>
    %c1_115 = arith.constant 1 : index
    %c0_116 = arith.constant 0 : index
    %c0_117 = arith.constant 0 : index
    %197 = vector.load %arg4[%c1_115, %c0_116, %c0_117] : memref<9x1x256xf32, #tpu.memory_space<vmem>>, vector<1x1x256xf32>
    %198 = vector.shape_cast %197 : vector<1x1x256xf32> to vector<1x256xf32>
    %199 = vector.broadcast %198 : vector<1x256xf32> to vector<32x256xf32>
    %200 = arith.mulf %196, %199 : vector<32x256xf32>
    %201 = arith.addf %191, %200 : vector<32x256xf32>
    %c15_i32_118 = arith.constant 15 : i32
    %202 = tpu.dynamic_rotate %177 by %c15_i32_118 dim 1 : vector<32x256xf32>, i32 -> vector<32x256xf32>
    %c8_119 = arith.constant 8 : index
    %c0_120 = arith.constant 0 : index
    %c0_121 = arith.constant 0 : index
    %203 = vector.load %arg3[%c8_119, %c0_120, %c0_121] : memref<27x32x1xf32, #tpu.memory_space<vmem>>, vector<1x32x1xf32>
    %204 = vector.shape_cast %203 : vector<1x32x1xf32> to vector<32x1xf32>
    %205 = vector.broadcast %204 : vector<32x1xf32> to vector<32x256xf32>
    %206 = arith.mulf %202, %205 : vector<32x256xf32>
    %c2_122 = arith.constant 2 : index
    %c0_123 = arith.constant 0 : index
    %c0_124 = arith.constant 0 : index
    %207 = vector.load %arg4[%c2_122, %c0_123, %c0_124] : memref<9x1x256xf32, #tpu.memory_space<vmem>>, vector<1x1x256xf32>
    %208 = vector.shape_cast %207 : vector<1x1x256xf32> to vector<1x256xf32>
    %209 = vector.broadcast %208 : vector<1x256xf32> to vector<32x256xf32>
    %210 = arith.mulf %206, %209 : vector<32x256xf32>
    %211 = arith.addf %201, %210 : vector<32x256xf32>
    %c1_i32_125 = arith.constant 1 : i32
    %212 = tpu.dynamic_rotate %177 by %c1_i32_125 dim 1 : vector<32x256xf32>, i32 -> vector<32x256xf32>
    %c11 = arith.constant 11 : index
    %c0_126 = arith.constant 0 : index
    %c0_127 = arith.constant 0 : index
    %213 = vector.load %arg3[%c11, %c0_126, %c0_127] : memref<27x32x1xf32, #tpu.memory_space<vmem>>, vector<1x32x1xf32>
    %214 = vector.shape_cast %213 : vector<1x32x1xf32> to vector<32x1xf32>
    %215 = vector.broadcast %214 : vector<32x1xf32> to vector<32x256xf32>
    %216 = arith.mulf %212, %215 : vector<32x256xf32>
    %c3_128 = arith.constant 3 : index
    %c0_129 = arith.constant 0 : index
    %c0_130 = arith.constant 0 : index
    %217 = vector.load %arg4[%c3_128, %c0_129, %c0_130] : memref<9x1x256xf32, #tpu.memory_space<vmem>>, vector<1x1x256xf32>
    %218 = vector.shape_cast %217 : vector<1x1x256xf32> to vector<1x256xf32>
    %219 = vector.broadcast %218 : vector<1x256xf32> to vector<32x256xf32>
    %220 = arith.mulf %216, %219 : vector<32x256xf32>
    %221 = arith.addf %211, %220 : vector<32x256xf32>
    %c255_i32_131 = arith.constant 255 : i32
    %222 = tpu.dynamic_rotate %177 by %c255_i32_131 dim 1 : vector<32x256xf32>, i32 -> vector<32x256xf32>
    %c17 = arith.constant 17 : index
    %c0_132 = arith.constant 0 : index
    %c0_133 = arith.constant 0 : index
    %223 = vector.load %arg3[%c17, %c0_132, %c0_133] : memref<27x32x1xf32, #tpu.memory_space<vmem>>, vector<1x32x1xf32>
    %224 = vector.shape_cast %223 : vector<1x32x1xf32> to vector<32x1xf32>
    %225 = vector.broadcast %224 : vector<32x1xf32> to vector<32x256xf32>
    %226 = arith.mulf %222, %225 : vector<32x256xf32>
    %c5_134 = arith.constant 5 : index
    %c0_135 = arith.constant 0 : index
    %c0_136 = arith.constant 0 : index
    %227 = vector.load %arg4[%c5_134, %c0_135, %c0_136] : memref<9x1x256xf32, #tpu.memory_space<vmem>>, vector<1x1x256xf32>
    %228 = vector.shape_cast %227 : vector<1x1x256xf32> to vector<1x256xf32>
    %229 = vector.broadcast %228 : vector<1x256xf32> to vector<32x256xf32>
    %230 = arith.mulf %226, %229 : vector<32x256xf32>
    %231 = arith.addf %221, %230 : vector<32x256xf32>
    %c241_i32_137 = arith.constant 241 : i32
    %232 = tpu.dynamic_rotate %177 by %c241_i32_137 dim 1 : vector<32x256xf32>, i32 -> vector<32x256xf32>
    %c20 = arith.constant 20 : index
    %c0_138 = arith.constant 0 : index
    %c0_139 = arith.constant 0 : index
    %233 = vector.load %arg3[%c20, %c0_138, %c0_139] : memref<27x32x1xf32, #tpu.memory_space<vmem>>, vector<1x32x1xf32>
    %234 = vector.shape_cast %233 : vector<1x32x1xf32> to vector<32x1xf32>
    %235 = vector.broadcast %234 : vector<32x1xf32> to vector<32x256xf32>
    %236 = arith.mulf %232, %235 : vector<32x256xf32>
    %c6_140 = arith.constant 6 : index
    %c0_141 = arith.constant 0 : index
    %c0_142 = arith.constant 0 : index
    %237 = vector.load %arg4[%c6_140, %c0_141, %c0_142] : memref<9x1x256xf32, #tpu.memory_space<vmem>>, vector<1x1x256xf32>
    %238 = vector.shape_cast %237 : vector<1x1x256xf32> to vector<1x256xf32>
    %239 = vector.broadcast %238 : vector<1x256xf32> to vector<32x256xf32>
    %240 = arith.mulf %236, %239 : vector<32x256xf32>
    %241 = arith.addf %231, %240 : vector<32x256xf32>
    %c240_i32_143 = arith.constant 240 : i32
    %242 = tpu.dynamic_rotate %177 by %c240_i32_143 dim 1 : vector<32x256xf32>, i32 -> vector<32x256xf32>
    %c23 = arith.constant 23 : index
    %c0_144 = arith.constant 0 : index
    %c0_145 = arith.constant 0 : index
    %243 = vector.load %arg3[%c23, %c0_144, %c0_145] : memref<27x32x1xf32, #tpu.memory_space<vmem>>, vector<1x32x1xf32>
    %244 = vector.shape_cast %243 : vector<1x32x1xf32> to vector<32x1xf32>
    %245 = vector.broadcast %244 : vector<32x1xf32> to vector<32x256xf32>
    %246 = arith.mulf %242, %245 : vector<32x256xf32>
    %c7_146 = arith.constant 7 : index
    %c0_147 = arith.constant 0 : index
    %c0_148 = arith.constant 0 : index
    %247 = vector.load %arg4[%c7_146, %c0_147, %c0_148] : memref<9x1x256xf32, #tpu.memory_space<vmem>>, vector<1x1x256xf32>
    %248 = vector.shape_cast %247 : vector<1x1x256xf32> to vector<1x256xf32>
    %249 = vector.broadcast %248 : vector<1x256xf32> to vector<32x256xf32>
    %250 = arith.mulf %246, %249 : vector<32x256xf32>
    %251 = arith.addf %241, %250 : vector<32x256xf32>
    %c239_i32_149 = arith.constant 239 : i32
    %252 = tpu.dynamic_rotate %177 by %c239_i32_149 dim 1 : vector<32x256xf32>, i32 -> vector<32x256xf32>
    %c26 = arith.constant 26 : index
    %c0_150 = arith.constant 0 : index
    %c0_151 = arith.constant 0 : index
    %253 = vector.load %arg3[%c26, %c0_150, %c0_151] : memref<27x32x1xf32, #tpu.memory_space<vmem>>, vector<1x32x1xf32>
    %254 = vector.shape_cast %253 : vector<1x32x1xf32> to vector<32x1xf32>
    %255 = vector.broadcast %254 : vector<32x1xf32> to vector<32x256xf32>
    %256 = arith.mulf %252, %255 : vector<32x256xf32>
    %c8_152 = arith.constant 8 : index
    %c0_153 = arith.constant 0 : index
    %c0_154 = arith.constant 0 : index
    %257 = vector.load %arg4[%c8_152, %c0_153, %c0_154] : memref<9x1x256xf32, #tpu.memory_space<vmem>>, vector<1x1x256xf32>
    %258 = vector.shape_cast %257 : vector<1x1x256xf32> to vector<1x256xf32>
    %259 = vector.broadcast %258 : vector<1x256xf32> to vector<32x256xf32>
    %260 = arith.mulf %256, %259 : vector<32x256xf32>
    %261 = arith.addf %251, %260 : vector<32x256xf32>
    %c64_155 = arith.constant 64 : index
    %c0_156 = arith.constant 0 : index
    %262 = vector.load %arg8[%c64_155, %c0_156] : memref<96x256xf32, #tpu.memory_space<vmem>>, vector<32x256xf32>
    tpu.vector_store %arg8[%c64_155, %c0_156], %261 {strides = array<i32>} : memref<96x256xf32, #tpu.memory_space<vmem>>, vector<32x256xf32>,
    %c0_157 = arith.constant 0 : index
    %c0_158 = arith.constant 0 : index
    %263 = vector.load %arg8[%c0_157, %c0_158] : memref<96x256xf32, #tpu.memory_space<vmem>>, vector<32x256xf32>
    %c32_159 = arith.constant 32 : index
    %c0_160 = arith.constant 0 : index
    %264 = vector.load %arg8[%c32_159, %c0_160] : memref<96x256xf32, #tpu.memory_space<vmem>>, vector<32x256xf32>
    %265 = arith.mulf %263, %263 : vector<32x256xf32>
    %cst_161 = arith.constant dense<0.000000e+00> : vector<32xf32>
    %266 = vector.multi_reduction <add>, %265, %cst_161 [1] : vector<32x256xf32> to vector<32xf32>
    %267 = vector.shape_cast %266 : vector<32xf32> to vector<32x1xf32>
    %cst_162 = arith.constant 1.000000e-24 : f32
    %268 = vector.broadcast %cst_162 : f32 to vector<32x1xf32>
    %269 = arith.maximumf %267, %268 : vector<32x1xf32>
    %270 = math.rsqrt %269 : vector<32x1xf32>
    %271 = vector.broadcast %270 : vector<32x1xf32> to vector<32x256xf32>
    %272 = arith.mulf %263, %271 : vector<32x256xf32>
    %273 = arith.mulf %264, %264 : vector<32x256xf32>
    %cst_163 = arith.constant dense<0.000000e+00> : vector<32xf32>
    %274 = vector.multi_reduction <add>, %273, %cst_163 [1] : vector<32x256xf32> to vector<32xf32>
    %275 = vector.shape_cast %274 : vector<32xf32> to vector<32x1xf32>
    %cst_164 = arith.constant 1.000000e-24 : f32
    %276 = vector.broadcast %cst_164 : f32 to vector<32x1xf32>
    %277 = arith.maximumf %275, %276 : vector<32x1xf32>
    %278 = math.rsqrt %277 : vector<32x1xf32>
    %279 = vector.broadcast %278 : vector<32x1xf32> to vector<32x256xf32>
    %280 = arith.mulf %264, %279 : vector<32x256xf32>
    %cst_165 = arith.constant dense<0.000000e+00> : vector<32x32xf32>
    %281 = tpu.matmul %272, %280, %cst_165 {dimension_numbers = #tpu.dot_dimension_numbers<[1], [1], [0], [0], [0, 0, 1, 0], [], []>} : vector<32x256xf32>, vector<32x256xf32>, vector<32x32xf32> -> vector<32x32xf32>
    %c0_166 = arith.constant 0 : index
    %c0_167 = arith.constant 0 : index
    %282 = vector.load %arg5[%c0_166, %c0_167] : memref<32x32xf32, #tpu.memory_space<vmem>>, vector<32x32xf32>
    %283 = arith.mulf %281, %282 : vector<32x32xf32>
    %cst_168 = arith.constant 0.000000e+00 : f32
    %284 = vector.broadcast %cst_168 : f32 to vector<32x32xf32>
    %285 = arith.maximumf %283, %284 : vector<32x32xf32>
    %c64_169 = arith.constant 64 : index
    %c0_170 = arith.constant 0 : index
    %286 = vector.load %arg8[%c64_169, %c0_170] : memref<96x256xf32, #tpu.memory_space<vmem>>, vector<32x256xf32>
    %cst_171 = arith.constant dense<0.000000e+00> : vector<32x256xf32>
    %287 = tpu.matmul %285, %286, %cst_171 {dimension_numbers = #tpu.dot_dimension_numbers<[1], [0], [0], [1], [0, 0, 1, 1], [], []>} : vector<32x32xf32>, vector<32x256xf32>, vector<32x256xf32> -> vector<32x256xf32>
    %c0_172 = arith.constant 0 : index
    %c0_173 = arith.constant 0 : index
    %288 = vector.load %arg6[%c0_172, %c0_173] : memref<32x32xf32, #tpu.memory_space<vmem>>, vector<32x32xf32>
    %cst_174 = arith.constant dense<0.000000e+00> : vector<32x256xf32>
    %289 = tpu.matmul %288, %287, %cst_174 {dimension_numbers = #tpu.dot_dimension_numbers<[1], [0], [0], [1], [0, 0, 1, 1], [], []>} : vector<32x32xf32>, vector<32x256xf32>, vector<32x256xf32> -> vector<32x256xf32>
    %c0_175 = arith.constant 0 : index
    %c0_176 = arith.constant 0 : index
    %c0_177 = arith.constant 0 : index
    %290 = vector.load %arg7[%c0_175, %c0_176, %c0_177] : memref<1x32x256xf32, #tpu.memory_space<vmem>>, vector<1x32x256xf32>
    %291 = vector.shape_cast %290 : vector<1x32x256xf32> to vector<32x256xf32>
    %292 = vector.shape_cast %289 : vector<32x256xf32> to vector<1x32x256xf32>
    tpu.vector_store %arg7[%c0_175, %c0_176, %c0_177], %292 {strides = array<i32>} : memref<1x32x256xf32, #tpu.memory_space<vmem>>, vector<1x32x256xf32>,
    return
  }
  func.func @transform_0(%arg0: i32) -> (i32, i32, i32) {
    %c0_i32 = arith.constant 0 : i32
    %c0_i32_0 = arith.constant 0 : i32
    %c0_i32_1 = arith.constant 0 : i32
    return %arg0, %c0_i32, %c0_i32_0 : i32, i32, i32
  }
  func.func @transform_1(%arg0: i32) -> (i32, i32) {
    %c0_i32 = arith.constant 0 : i32
    %c0_i32_0 = arith.constant 0 : i32
    %c0_i32_1 = arith.constant 0 : i32
    return %c0_i32, %c0_i32_0 : i32, i32
  }
  func.func @transform_2(%arg0: i32) -> (i32, i32, i32) {
    %c0_i32 = arith.constant 0 : i32
    %c0_i32_0 = arith.constant 0 : i32
    %c0_i32_1 = arith.constant 0 : i32
    %c0_i32_2 = arith.constant 0 : i32
    return %c0_i32, %c0_i32_0, %c0_i32_1 : i32, i32, i32
  }
  func.func @transform_3(%arg0: i32) -> (i32, i32, i32) {
    %c0_i32 = arith.constant 0 : i32
    %c0_i32_0 = arith.constant 0 : i32
    %c0_i32_1 = arith.constant 0 : i32
    %c0_i32_2 = arith.constant 0 : i32
    return %c0_i32, %c0_i32_0, %c0_i32_1 : i32, i32, i32
  }
  func.func @transform_4(%arg0: i32) -> (i32, i32) {
    %c0_i32 = arith.constant 0 : i32
    %c0_i32_0 = arith.constant 0 : i32
    %c0_i32_1 = arith.constant 0 : i32
    return %c0_i32, %c0_i32_0 : i32, i32
  }
  func.func @transform_5(%arg0: i32) -> (i32, i32) {
    %c0_i32 = arith.constant 0 : i32
    %c0_i32_0 = arith.constant 0 : i32
    %c0_i32_1 = arith.constant 0 : i32
    return %c0_i32, %c0_i32_0 : i32, i32
  }
  func.func @transform_6(%arg0: i32) -> (i32, i32, i32) {
    %c0_i32 = arith.constant 0 : i32
    %c0_i32_0 = arith.constant 0 : i32
    %c0_i32_1 = arith.constant 0 : i32
    return %arg0, %c0_i32, %c0_i32_0 : i32, i32, i32
  }
}

module attributes {stable_mosaic.version = 11 : i64} {
  func.func @_sparse_attention_kernel(%arg0: i32, %arg1: memref<1x32x256xf32, #tpu.memory_space<vmem>>, %arg2: memref<96x32xf32, #tpu.memory_space<vmem>>, %arg3: memref<27x32x1xf32, #tpu.memory_space<vmem>>, %arg4: memref<9x1x256xf32, #tpu.memory_space<vmem>>, %arg5: memref<32x32xf32, #tpu.memory_space<vmem>>, %arg6: memref<32x32xf32, #tpu.memory_space<vmem>>, %arg7: memref<1x32x256xf32, #tpu.memory_space<vmem>>, %arg8: memref<96x256xf32, #tpu.memory_space<vmem>>) attributes {dimension_semantics = [#tpu.dimension_semantics<core_parallel>], iteration_bounds = array<i64: 2>, scalar_prefetch = 0 : i64, scratch_operands = 1 : i64, tpu.core_type = #tpu.core_type<tc>, window_params = [{transform_indices = @transform_0, window_bounds = array<i64: 1, 32, 256>}, {pipeline_mode = #tpu.pipeline_mode<synchronous>, transform_indices = @transform_1, window_bounds = array<i64: 96, 32>}, {pipeline_mode = #tpu.pipeline_mode<synchronous>, transform_indices = @transform_2, window_bounds = array<i64: 27, 32, 1>}, {pipeline_mode = #tpu.pipeline_mode<synchronous>, transform_indices = @transform_3, window_bounds = array<i64: 9, 1, 256>}, {pipeline_mode = #tpu.pipeline_mode<synchronous>, transform_indices = @transform_4, window_bounds = array<i64: 32, 32>}, {pipeline_mode = #tpu.pipeline_mode<synchronous>, transform_indices = @transform_5, window_bounds = array<i64: 32, 32>}, {transform_indices = @transform_6, window_bounds = array<i64: 1, 32, 256>}]} {
    %c0 = arith.constant 0 : index
    %c0_0 = arith.constant 0 : index
    %c0_1 = arith.constant 0 : index
    %0 = vector.load %arg1[%c0, %c0_0, %c0_1] : memref<1x32x256xf32, #tpu.memory_space<vmem>>, vector<1x32x256xf32>
    %1 = vector.shape_cast %0 : vector<1x32x256xf32> to vector<32x256xf32>
    %c0_2 = arith.constant 0 : index
    %c0_3 = arith.constant 0 : index
    %2 = vector.load %arg2[%c0_2, %c0_3] : memref<96x32xf32, #tpu.memory_space<vmem>>, vector<32x32xf32>
    %cst = arith.constant dense<0.000000e+00> : vector<32x256xf32>
    %3 = tpu.matmul %2, %1, %cst {dimension_numbers = #tpu.dot_dimension_numbers<[1], [0], [0], [1], [0, 0, 1, 1], [], []>} : vector<32x32xf32>, vector<32x256xf32>, vector<32x256xf32> -> vector<32x256xf32>
    %c12 = arith.constant 12 : index
    %c0_4 = arith.constant 0 : index
    %c0_5 = arith.constant 0 : index
    %4 = vector.load %arg3[%c12, %c0_4, %c0_5] : memref<27x32x1xf32, #tpu.memory_space<vmem>>, vector<1x32x1xf32>
    %5 = vector.shape_cast %4 : vector<1x32x1xf32> to vector<32x1xf32>
    %6 = vector.broadcast %5 : vector<32x1xf32> to vector<32x256xf32>
    %7 = arith.mulf %3, %6 : vector<32x256xf32>
    %c17_i32 = arith.constant 17 : i32
    %8 = tpu.dynamic_rotate %3 by %c17_i32 dim 1 : vector<32x256xf32>, i32 -> vector<32x256xf32>
    %c0_6 = arith.constant 0 : index
    %c0_7 = arith.constant 0 : index
    %c0_8 = arith.constant 0 : index
    %9 = vector.load %arg3[%c0_6, %c0_7, %c0_8] : memref<27x32x1xf32, #tpu.memory_space<vmem>>, vector<1x32x1xf32>
    %10 = vector.shape_cast %9 : vector<1x32x1xf32> to vector<32x1xf32>
    %11 = vector.broadcast %10 : vector<32x1xf32> to vector<32x256xf32>
    %12 = arith.mulf %8, %11 : vector<32x256xf32>
    %c0_9 = arith.constant 0 : index
    %c0_10 = arith.constant 0 : index
    %c0_11 = arith.constant 0 : index
    %13 = vector.load %arg4[%c0_9, %c0_10, %c0_11] : memref<9x1x256xf32, #tpu.memory_space<vmem>>, vector<1x1x256xf32>
    %14 = vector.shape_cast %13 : vector<1x1x256xf32> to vector<1x256xf32>
    %15 = vector.broadcast %14 : vector<1x256xf32> to vector<32x256xf32>
    %16 = arith.mulf %12, %15 : vector<32x256xf32>
    %17 = arith.addf %7, %16 : vector<32x256xf32>
    %c16_i32 = arith.constant 16 : i32
    %18 = tpu.dynamic_rotate %3 by %c16_i32 dim 1 : vector<32x256xf32>, i32 -> vector<32x256xf32>
    %c3 = arith.constant 3 : index
    %c0_12 = arith.constant 0 : index
    %c0_13 = arith.constant 0 : index
    %19 = vector.load %arg3[%c3, %c0_12, %c0_13] : memref<27x32x1xf32, #tpu.memory_space<vmem>>, vector<1x32x1xf32>
    %20 = vector.shape_cast %19 : vector<1x32x1xf32> to vector<32x1xf32>
    %21 = vector.broadcast %20 : vector<32x1xf32> to vector<32x256xf32>
    %22 = arith.mulf %18, %21 : vector<32x256xf32>
    %c1 = arith.constant 1 : index
    %c0_14 = arith.constant 0 : index
    %c0_15 = arith.constant 0 : index
    %23 = vector.load %arg4[%c1, %c0_14, %c0_15] : memref<9x1x256xf32, #tpu.memory_space<vmem>>, vector<1x1x256xf32>
    %24 = vector.shape_cast %23 : vector<1x1x256xf32> to vector<1x256xf32>
    %25 = vector.broadcast %24 : vector<1x256xf32> to vector<32x256xf32>
    %26 = arith.mulf %22, %25 : vector<32x256xf32>
    %27 = arith.addf %17, %26 : vector<32x256xf32>
    %c15_i32 = arith.constant 15 : i32
    %28 = tpu.dynamic_rotate %3 by %c15_i32 dim 1 : vector<32x256xf32>, i32 -> vector<32x256xf32>
    %c6 = arith.constant 6 : index
    %c0_16 = arith.constant 0 : index
    %c0_17 = arith.constant 0 : index
    %29 = vector.load %arg3[%c6, %c0_16, %c0_17] : memref<27x32x1xf32, #tpu.memory_space<vmem>>, vector<1x32x1xf32>
    %30 = vector.shape_cast %29 : vector<1x32x1xf32> to vector<32x1xf32>
    %31 = vector.broadcast %30 : vector<32x1xf32> to vector<32x256xf32>
    %32 = arith.mulf %28, %31 : vector<32x256xf32>
    %c2 = arith.constant 2 : index
    %c0_18 = arith.constant 0 : index
    %c0_19 = arith.constant 0 : index
    %33 = vector.load %arg4[%c2, %c0_18, %c0_19] : memref<9x1x256xf32, #tpu.memory_space<vmem>>, vector<1x1x256xf32>
    %34 = vector.shape_cast %33 : vector<1x1x256xf32> to vector<1x256xf32>
    %35 = vector.broadcast %34 : vector<1x256xf32> to vector<32x256xf32>
    %36 = arith.mulf %32, %35 : vector<32x256xf32>
    %37 = arith.addf %27, %36 : vector<32x256xf32>
    %c1_i32 = arith.constant 1 : i32
    %38 = tpu.dynamic_rotate %3 by %c1_i32 dim 1 : vector<32x256xf32>, i32 -> vector<32x256xf32>
    %c9 = arith.constant 9 : index
    %c0_20 = arith.constant 0 : index
    %c0_21 = arith.constant 0 : index
    %39 = vector.load %arg3[%c9, %c0_20, %c0_21] : memref<27x32x1xf32, #tpu.memory_space<vmem>>, vector<1x32x1xf32>
    %40 = vector.shape_cast %39 : vector<1x32x1xf32> to vector<32x1xf32>
    %41 = vector.broadcast %40 : vector<32x1xf32> to vector<32x256xf32>
    %42 = arith.mulf %38, %41 : vector<32x256xf32>
    %c3_22 = arith.constant 3 : index
    %c0_23 = arith.constant 0 : index
    %c0_24 = arith.constant 0 : index
    %43 = vector.load %arg4[%c3_22, %c0_23, %c0_24] : memref<9x1x256xf32, #tpu.memory_space<vmem>>, vector<1x1x256xf32>
    %44 = vector.shape_cast %43 : vector<1x1x256xf32> to vector<1x256xf32>
    %45 = vector.broadcast %44 : vector<1x256xf32> to vector<32x256xf32>
    %46 = arith.mulf %42, %45 : vector<32x256xf32>
    %47 = arith.addf %37, %46 : vector<32x256xf32>
    %c255_i32 = arith.constant 255 : i32
    %48 = tpu.dynamic_rotate %3 by %c255_i32 dim 1 : vector<32x256xf32>, i32 -> vector<32x256xf32>
    %c15 = arith.constant 15 : index
    %c0_25 = arith.constant 0 : index
    %c0_26 = arith.constant 0 : index
    %49 = vector.load %arg3[%c15, %c0_25, %c0_26] : memref<27x32x1xf32, #tpu.memory_space<vmem>>, vector<1x32x1xf32>
    %50 = vector.shape_cast %49 : vector<1x32x1xf32> to vector<32x1xf32>
    %51 = vector.broadcast %50 : vector<32x1xf32> to vector<32x256xf32>
    %52 = arith.mulf %48, %51 : vector<32x256xf32>
    %c5 = arith.constant 5 : index
    %c0_27 = arith.constant 0 : index
    %c0_28 = arith.constant 0 : index
    %53 = vector.load %arg4[%c5, %c0_27, %c0_28] : memref<9x1x256xf32, #tpu.memory_space<vmem>>, vector<1x1x256xf32>
    %54 = vector.shape_cast %53 : vector<1x1x256xf32> to vector<1x256xf32>
    %55 = vector.broadcast %54 : vector<1x256xf32> to vector<32x256xf32>
    %56 = arith.mulf %52, %55 : vector<32x256xf32>
    %57 = arith.addf %47, %56 : vector<32x256xf32>
    %c241_i32 = arith.constant 241 : i32
    %58 = tpu.dynamic_rotate %3 by %c241_i32 dim 1 : vector<32x256xf32>, i32 -> vector<32x256xf32>
    %c18 = arith.constant 18 : index
    %c0_29 = arith.constant 0 : index
    %c0_30 = arith.constant 0 : index
    %59 = vector.load %arg3[%c18, %c0_29, %c0_30] : memref<27x32x1xf32, #tpu.memory_space<vmem>>, vector<1x32x1xf32>
    %60 = vector.shape_cast %59 : vector<1x32x1xf32> to vector<32x1xf32>
    %61 = vector.broadcast %60 : vector<32x1xf32> to vector<32x256xf32>
    %62 = arith.mulf %58, %61 : vector<32x256xf32>
    %c6_31 = arith.constant 6 : index
    %c0_32 = arith.constant 0 : index
    %c0_33 = arith.constant 0 : index
    %63 = vector.load %arg4[%c6_31, %c0_32, %c0_33] : memref<9x1x256xf32, #tpu.memory_space<vmem>>, vector<1x1x256xf32>
    %64 = vector.shape_cast %63 : vector<1x1x256xf32> to vector<1x256xf32>
    %65 = vector.broadcast %64 : vector<1x256xf32> to vector<32x256xf32>
    %66 = arith.mulf %62, %65 : vector<32x256xf32>
    %67 = arith.addf %57, %66 : vector<32x256xf32>
    %c240_i32 = arith.constant 240 : i32
    %68 = tpu.dynamic_rotate %3 by %c240_i32 dim 1 : vector<32x256xf32>, i32 -> vector<32x256xf32>
    %c21 = arith.constant 21 : index
    %c0_34 = arith.constant 0 : index
    %c0_35 = arith.constant 0 : index
    %69 = vector.load %arg3[%c21, %c0_34, %c0_35] : memref<27x32x1xf32, #tpu.memory_space<vmem>>, vector<1x32x1xf32>
    %70 = vector.shape_cast %69 : vector<1x32x1xf32> to vector<32x1xf32>
    %71 = vector.broadcast %70 : vector<32x1xf32> to vector<32x256xf32>
    %72 = arith.mulf %68, %71 : vector<32x256xf32>
    %c7 = arith.constant 7 : index
    %c0_36 = arith.constant 0 : index
    %c0_37 = arith.constant 0 : index
    %73 = vector.load %arg4[%c7, %c0_36, %c0_37] : memref<9x1x256xf32, #tpu.memory_space<vmem>>, vector<1x1x256xf32>
    %74 = vector.shape_cast %73 : vector<1x1x256xf32> to vector<1x256xf32>
    %75 = vector.broadcast %74 : vector<1x256xf32> to vector<32x256xf32>
    %76 = arith.mulf %72, %75 : vector<32x256xf32>
    %77 = arith.addf %67, %76 : vector<32x256xf32>
    %c239_i32 = arith.constant 239 : i32
    %78 = tpu.dynamic_rotate %3 by %c239_i32 dim 1 : vector<32x256xf32>, i32 -> vector<32x256xf32>
    %c24 = arith.constant 24 : index
    %c0_38 = arith.constant 0 : index
    %c0_39 = arith.constant 0 : index
    %79 = vector.load %arg3[%c24, %c0_38, %c0_39] : memref<27x32x1xf32, #tpu.memory_space<vmem>>, vector<1x32x1xf32>
    %80 = vector.shape_cast %79 : vector<1x32x1xf32> to vector<32x1xf32>
    %81 = vector.broadcast %80 : vector<32x1xf32> to vector<32x256xf32>
    %82 = arith.mulf %78, %81 : vector<32x256xf32>
    %c8 = arith.constant 8 : index
    %c0_40 = arith.constant 0 : index
    %c0_41 = arith.constant 0 : index
    %83 = vector.load %arg4[%c8, %c0_40, %c0_41] : memref<9x1x256xf32, #tpu.memory_space<vmem>>, vector<1x1x256xf32>
    %84 = vector.shape_cast %83 : vector<1x1x256xf32> to vector<1x256xf32>
    %85 = vector.broadcast %84 : vector<1x256xf32> to vector<32x256xf32>
    %86 = arith.mulf %82, %85 : vector<32x256xf32>
    %87 = arith.addf %77, %86 : vector<32x256xf32>
    %c0_42 = arith.constant 0 : index
    %c0_43 = arith.constant 0 : index
    %88 = vector.load %arg8[%c0_42, %c0_43] : memref<96x256xf32, #tpu.memory_space<vmem>>, vector<32x256xf32>
    tpu.vector_store %arg8[%c0_42, %c0_43], %87 {strides = array<i32>} : memref<96x256xf32, #tpu.memory_space<vmem>>, vector<32x256xf32>,
    %c32 = arith.constant 32 : index
    %c0_44 = arith.constant 0 : index
    %89 = vector.load %arg2[%c32, %c0_44] : memref<96x32xf32, #tpu.memory_space<vmem>>, vector<32x32xf32>
    %cst_45 = arith.constant dense<0.000000e+00> : vector<32x256xf32>
    %90 = tpu.matmul %89, %1, %cst_45 {dimension_numbers = #tpu.dot_dimension_numbers<[1], [0], [0], [1], [0, 0, 1, 1], [], []>} : vector<32x32xf32>, vector<32x256xf32>, vector<32x256xf32> -> vector<32x256xf32>
    %c13 = arith.constant 13 : index
    %c0_46 = arith.constant 0 : index
    %c0_47 = arith.constant 0 : index
    %91 = vector.load %arg3[%c13, %c0_46, %c0_47] : memref<27x32x1xf32, #tpu.memory_space<vmem>>, vector<1x32x1xf32>
    %92 = vector.shape_cast %91 : vector<1x32x1xf32> to vector<32x1xf32>
    %93 = vector.broadcast %92 : vector<32x1xf32> to vector<32x256xf32>
    %94 = arith.mulf %90, %93 : vector<32x256xf32>
    %c17_i32_48 = arith.constant 17 : i32
    %95 = tpu.dynamic_rotate %90 by %c17_i32_48 dim 1 : vector<32x256xf32>, i32 -> vector<32x256xf32>
    %c1_49 = arith.constant 1 : index
    %c0_50 = arith.constant 0 : index
    %c0_51 = arith.constant 0 : index
    %96 = vector.load %arg3[%c1_49, %c0_50, %c0_51] : memref<27x32x1xf32, #tpu.memory_space<vmem>>, vector<1x32x1xf32>
    %97 = vector.shape_cast %96 : vector<1x32x1xf32> to vector<32x1xf32>
    %98 = vector.broadcast %97 : vector<32x1xf32> to vector<32x256xf32>
    %99 = arith.mulf %95, %98 : vector<32x256xf32>
    %c0_52 = arith.constant 0 : index
    %c0_53 = arith.constant 0 : index
    %c0_54 = arith.constant 0 : index
    %100 = vector.load %arg4[%c0_52, %c0_53, %c0_54] : memref<9x1x256xf32, #tpu.memory_space<vmem>>, vector<1x1x256xf32>
    %101 = vector.shape_cast %100 : vector<1x1x256xf32> to vector<1x256xf32>
    %102 = vector.broadcast %101 : vector<1x256xf32> to vector<32x256xf32>
    %103 = arith.mulf %99, %102 : vector<32x256xf32>
    %104 = arith.addf %94, %103 : vector<32x256xf32>
    %c16_i32_55 = arith.constant 16 : i32
    %105 = tpu.dynamic_rotate %90 by %c16_i32_55 dim 1 : vector<32x256xf32>, i32 -> vector<32x256xf32>
    %c4 = arith.constant 4 : index
    %c0_56 = arith.constant 0 : index
    %c0_57 = arith.constant 0 : index
    %106 = vector.load %arg3[%c4, %c0_56, %c0_57] : memref<27x32x1xf32, #tpu.memory_space<vmem>>, vector<1x32x1xf32>
    %107 = vector.shape_cast %106 : vector<1x32x1xf32> to vector<32x1xf32>
    %108 = vector.broadcast %107 : vector<32x1xf32> to vector<32x256xf32>
    %109 = arith.mulf %105, %108 : vector<32x256xf32>
    %c1_58 = arith.constant 1 : index
    %c0_59 = arith.constant 0 : index
    %c0_60 = arith.constant 0 : index
    %110 = vector.load %arg4[%c1_58, %c0_59, %c0_60] : memref<9x1x256xf32, #tpu.memory_space<vmem>>, vector<1x1x256xf32>
    %111 = vector.shape_cast %110 : vector<1x1x256xf32> to vector<1x256xf32>
    %112 = vector.broadcast %111 : vector<1x256xf32> to vector<32x256xf32>
    %113 = arith.mulf %109, %112 : vector<32x256xf32>
    %114 = arith.addf %104, %113 : vector<32x256xf32>
    %c15_i32_61 = arith.constant 15 : i32
    %115 = tpu.dynamic_rotate %90 by %c15_i32_61 dim 1 : vector<32x256xf32>, i32 -> vector<32x256xf32>
    %c7_62 = arith.constant 7 : index
    %c0_63 = arith.constant 0 : index
    %c0_64 = arith.constant 0 : index
    %116 = vector.load %arg3[%c7_62, %c0_63, %c0_64] : memref<27x32x1xf32, #tpu.memory_space<vmem>>, vector<1x32x1xf32>
    %117 = vector.shape_cast %116 : vector<1x32x1xf32> to vector<32x1xf32>
    %118 = vector.broadcast %117 : vector<32x1xf32> to vector<32x256xf32>
    %119 = arith.mulf %115, %118 : vector<32x256xf32>
    %c2_65 = arith.constant 2 : index
    %c0_66 = arith.constant 0 : index
    %c0_67 = arith.constant 0 : index
    %120 = vector.load %arg4[%c2_65, %c0_66, %c0_67] : memref<9x1x256xf32, #tpu.memory_space<vmem>>, vector<1x1x256xf32>
    %121 = vector.shape_cast %120 : vector<1x1x256xf32> to vector<1x256xf32>
    %122 = vector.broadcast %121 : vector<1x256xf32> to vector<32x256xf32>
    %123 = arith.mulf %119, %122 : vector<32x256xf32>
    %124 = arith.addf %114, %123 : vector<32x256xf32>
    %c1_i32_68 = arith.constant 1 : i32
    %125 = tpu.dynamic_rotate %90 by %c1_i32_68 dim 1 : vector<32x256xf32>, i32 -> vector<32x256xf32>
    %c10 = arith.constant 10 : index
    %c0_69 = arith.constant 0 : index
    %c0_70 = arith.constant 0 : index
    %126 = vector.load %arg3[%c10, %c0_69, %c0_70] : memref<27x32x1xf32, #tpu.memory_space<vmem>>, vector<1x32x1xf32>
    %127 = vector.shape_cast %126 : vector<1x32x1xf32> to vector<32x1xf32>
    %128 = vector.broadcast %127 : vector<32x1xf32> to vector<32x256xf32>
    %129 = arith.mulf %125, %128 : vector<32x256xf32>
    %c3_71 = arith.constant 3 : index
    %c0_72 = arith.constant 0 : index
    %c0_73 = arith.constant 0 : index
    %130 = vector.load %arg4[%c3_71, %c0_72, %c0_73] : memref<9x1x256xf32, #tpu.memory_space<vmem>>, vector<1x1x256xf32>
    %131 = vector.shape_cast %130 : vector<1x1x256xf32> to vector<1x256xf32>
    %132 = vector.broadcast %131 : vector<1x256xf32> to vector<32x256xf32>
    %133 = arith.mulf %129, %132 : vector<32x256xf32>
    %134 = arith.addf %124, %133 : vector<32x256xf32>
    %c255_i32_74 = arith.constant 255 : i32
    %135 = tpu.dynamic_rotate %90 by %c255_i32_74 dim 1 : vector<32x256xf32>, i32 -> vector<32x256xf32>
    %c16 = arith.constant 16 : index
    %c0_75 = arith.constant 0 : index
    %c0_76 = arith.constant 0 : index
    %136 = vector.load %arg3[%c16, %c0_75, %c0_76] : memref<27x32x1xf32, #tpu.memory_space<vmem>>, vector<1x32x1xf32>
    %137 = vector.shape_cast %136 : vector<1x32x1xf32> to vector<32x1xf32>
    %138 = vector.broadcast %137 : vector<32x1xf32> to vector<32x256xf32>
    %139 = arith.mulf %135, %138 : vector<32x256xf32>
    %c5_77 = arith.constant 5 : index
    %c0_78 = arith.constant 0 : index
    %c0_79 = arith.constant 0 : index
    %140 = vector.load %arg4[%c5_77, %c0_78, %c0_79] : memref<9x1x256xf32, #tpu.memory_space<vmem>>, vector<1x1x256xf32>
    %141 = vector.shape_cast %140 : vector<1x1x256xf32> to vector<1x256xf32>
    %142 = vector.broadcast %141 : vector<1x256xf32> to vector<32x256xf32>
    %143 = arith.mulf %139, %142 : vector<32x256xf32>
    %144 = arith.addf %134, %143 : vector<32x256xf32>
    %c241_i32_80 = arith.constant 241 : i32
    %145 = tpu.dynamic_rotate %90 by %c241_i32_80 dim 1 : vector<32x256xf32>, i32 -> vector<32x256xf32>
    %c19 = arith.constant 19 : index
    %c0_81 = arith.constant 0 : index
    %c0_82 = arith.constant 0 : index
    %146 = vector.load %arg3[%c19, %c0_81, %c0_82] : memref<27x32x1xf32, #tpu.memory_space<vmem>>, vector<1x32x1xf32>
    %147 = vector.shape_cast %146 : vector<1x32x1xf32> to vector<32x1xf32>
    %148 = vector.broadcast %147 : vector<32x1xf32> to vector<32x256xf32>
    %149 = arith.mulf %145, %148 : vector<32x256xf32>
    %c6_83 = arith.constant 6 : index
    %c0_84 = arith.constant 0 : index
    %c0_85 = arith.constant 0 : index
    %150 = vector.load %arg4[%c6_83, %c0_84, %c0_85] : memref<9x1x256xf32, #tpu.memory_space<vmem>>, vector<1x1x256xf32>
    %151 = vector.shape_cast %150 : vector<1x1x256xf32> to vector<1x256xf32>
    %152 = vector.broadcast %151 : vector<1x256xf32> to vector<32x256xf32>
    %153 = arith.mulf %149, %152 : vector<32x256xf32>
    %154 = arith.addf %144, %153 : vector<32x256xf32>
    %c240_i32_86 = arith.constant 240 : i32
    %155 = tpu.dynamic_rotate %90 by %c240_i32_86 dim 1 : vector<32x256xf32>, i32 -> vector<32x256xf32>
    %c22 = arith.constant 22 : index
    %c0_87 = arith.constant 0 : index
    %c0_88 = arith.constant 0 : index
    %156 = vector.load %arg3[%c22, %c0_87, %c0_88] : memref<27x32x1xf32, #tpu.memory_space<vmem>>, vector<1x32x1xf32>
    %157 = vector.shape_cast %156 : vector<1x32x1xf32> to vector<32x1xf32>
    %158 = vector.broadcast %157 : vector<32x1xf32> to vector<32x256xf32>
    %159 = arith.mulf %155, %158 : vector<32x256xf32>
    %c7_89 = arith.constant 7 : index
    %c0_90 = arith.constant 0 : index
    %c0_91 = arith.constant 0 : index
    %160 = vector.load %arg4[%c7_89, %c0_90, %c0_91] : memref<9x1x256xf32, #tpu.memory_space<vmem>>, vector<1x1x256xf32>
    %161 = vector.shape_cast %160 : vector<1x1x256xf32> to vector<1x256xf32>
    %162 = vector.broadcast %161 : vector<1x256xf32> to vector<32x256xf32>
    %163 = arith.mulf %159, %162 : vector<32x256xf32>
    %164 = arith.addf %154, %163 : vector<32x256xf32>
    %c239_i32_92 = arith.constant 239 : i32
    %165 = tpu.dynamic_rotate %90 by %c239_i32_92 dim 1 : vector<32x256xf32>, i32 -> vector<32x256xf32>
    %c25 = arith.constant 25 : index
    %c0_93 = arith.constant 0 : index
    %c0_94 = arith.constant 0 : index
    %166 = vector.load %arg3[%c25, %c0_93, %c0_94] : memref<27x32x1xf32, #tpu.memory_space<vmem>>, vector<1x32x1xf32>
    %167 = vector.shape_cast %166 : vector<1x32x1xf32> to vector<32x1xf32>
    %168 = vector.broadcast %167 : vector<32x1xf32> to vector<32x256xf32>
    %169 = arith.mulf %165, %168 : vector<32x256xf32>
    %c8_95 = arith.constant 8 : index
    %c0_96 = arith.constant 0 : index
    %c0_97 = arith.constant 0 : index
    %170 = vector.load %arg4[%c8_95, %c0_96, %c0_97] : memref<9x1x256xf32, #tpu.memory_space<vmem>>, vector<1x1x256xf32>
    %171 = vector.shape_cast %170 : vector<1x1x256xf32> to vector<1x256xf32>
    %172 = vector.broadcast %171 : vector<1x256xf32> to vector<32x256xf32>
    %173 = arith.mulf %169, %172 : vector<32x256xf32>
    %174 = arith.addf %164, %173 : vector<32x256xf32>
    %c32_98 = arith.constant 32 : index
    %c0_99 = arith.constant 0 : index
    %175 = vector.load %arg8[%c32_98, %c0_99] : memref<96x256xf32, #tpu.memory_space<vmem>>, vector<32x256xf32>
    tpu.vector_store %arg8[%c32_98, %c0_99], %174 {strides = array<i32>} : memref<96x256xf32, #tpu.memory_space<vmem>>, vector<32x256xf32>,
    %c64 = arith.constant 64 : index
    %c0_100 = arith.constant 0 : index
    %176 = vector.load %arg2[%c64, %c0_100] : memref<96x32xf32, #tpu.memory_space<vmem>>, vector<32x32xf32>
    %cst_101 = arith.constant dense<0.000000e+00> : vector<32x256xf32>
    %177 = tpu.matmul %176, %1, %cst_101 {dimension_numbers = #tpu.dot_dimension_numbers<[1], [0], [0], [1], [0, 0, 1, 1], [], []>} : vector<32x32xf32>, vector<32x256xf32>, vector<32x256xf32> -> vector<32x256xf32>
    %c14 = arith.constant 14 : index
    %c0_102 = arith.constant 0 : index
    %c0_103 = arith.constant 0 : index
    %178 = vector.load %arg3[%c14, %c0_102, %c0_103] : memref<27x32x1xf32, #tpu.memory_space<vmem>>, vector<1x32x1xf32>
    %179 = vector.shape_cast %178 : vector<1x32x1xf32> to vector<32x1xf32>
    %180 = vector.broadcast %179 : vector<32x1xf32> to vector<32x256xf32>
    %181 = arith.mulf %177, %180 : vector<32x256xf32>
    %c17_i32_104 = arith.constant 17 : i32
    %182 = tpu.dynamic_rotate %177 by %c17_i32_104 dim 1 : vector<32x256xf32>, i32 -> vector<32x256xf32>
    %c2_105 = arith.constant 2 : index
    %c0_106 = arith.constant 0 : index
    %c0_107 = arith.constant 0 : index
    %183 = vector.load %arg3[%c2_105, %c0_106, %c0_107] : memref<27x32x1xf32, #tpu.memory_space<vmem>>, vector<1x32x1xf32>
    %184 = vector.shape_cast %183 : vector<1x32x1xf32> to vector<32x1xf32>
    %185 = vector.broadcast %184 : vector<32x1xf32> to vector<32x256xf32>
    %186 = arith.mulf %182, %185 : vector<32x256xf32>
    %c0_108 = arith.constant 0 : index
    %c0_109 = arith.constant 0 : index
    %c0_110 = arith.constant 0 : index
    %187 = vector.load %arg4[%c0_108, %c0_109, %c0_110] : memref<9x1x256xf32, #tpu.memory_space<vmem>>, vector<1x1x256xf32>
    %188 = vector.shape_cast %187 : vector<1x1x256xf32> to vector<1x256xf32>
    %189 = vector.broadcast %188 : vector<1x256xf32> to vector<32x256xf32>
    %190 = arith.mulf %186, %189 : vector<32x256xf32>
    %191 = arith.addf %181, %190 : vector<32x256xf32>
    %c16_i32_111 = arith.constant 16 : i32
    %192 = tpu.dynamic_rotate %177 by %c16_i32_111 dim 1 : vector<32x256xf32>, i32 -> vector<32x256xf32>
    %c5_112 = arith.constant 5 : index
    %c0_113 = arith.constant 0 : index
    %c0_114 = arith.constant 0 : index
    %193 = vector.load %arg3[%c5_112, %c0_113, %c0_114] : memref<27x32x1xf32, #tpu.memory_space<vmem>>, vector<1x32x1xf32>
    %194 = vector.shape_cast %193 : vector<1x32x1xf32> to vector<32x1xf32>
    %195 = vector.broadcast %194 : vector<32x1xf32> to vector<32x256xf32>
    %196 = arith.mulf %192, %195 : vector<32x256xf32>
    %c1_115 = arith.constant 1 : index
    %c0_116 = arith.constant 0 : index
    %c0_117 = arith.constant 0 : index
    %197 = vector.load %arg4[%c1_115, %c0_116, %c0_117] : memref<9x1x256xf32, #tpu.memory_space<vmem>>, vector<1x1x256xf32>
    %198 = vector.shape_cast %197 : vector<1x1x256xf32> to vector<1x256xf32>
    %199 = vector.broadcast %198 : vector<1x256xf32> to vector<32x256xf32>
    %200 = arith.mulf %196, %199 : vector<32x256xf32>
    %201 = arith.addf %191, %200 : vector<32x256xf32>
    %c15_i32_118 = arith.constant 15 : i32
    %202 = tpu.dynamic_rotate %177 by %c15_i32_118 dim 1 : vector<32x256xf32>, i32 -> vector<32x256xf32>
    %c8_119 = arith.constant 8 : index
    %c0_120 = arith.constant 0 : index
    %c0_121 = arith.constant 0 : index
    %203 = vector.load %arg3[%c8_119, %c0_120, %c0_121] : memref<27x32x1xf32, #tpu.memory_space<vmem>>, vector<1x32x1xf32>
    %204 = vector.shape_cast %203 : vector<1x32x1xf32> to vector<32x1xf32>
    %205 = vector.broadcast %204 : vector<32x1xf32> to vector<32x256xf32>
    %206 = arith.mulf %202, %205 : vector<32x256xf32>
    %c2_122 = arith.constant 2 : index
    %c0_123 = arith.constant 0 : index
    %c0_124 = arith.constant 0 : index
    %207 = vector.load %arg4[%c2_122, %c0_123, %c0_124] : memref<9x1x256xf32, #tpu.memory_space<vmem>>, vector<1x1x256xf32>
    %208 = vector.shape_cast %207 : vector<1x1x256xf32> to vector<1x256xf32>
    %209 = vector.broadcast %208 : vector<1x256xf32> to vector<32x256xf32>
    %210 = arith.mulf %206, %209 : vector<32x256xf32>
    %211 = arith.addf %201, %210 : vector<32x256xf32>
    %c1_i32_125 = arith.constant 1 : i32
    %212 = tpu.dynamic_rotate %177 by %c1_i32_125 dim 1 : vector<32x256xf32>, i32 -> vector<32x256xf32>
    %c11 = arith.constant 11 : index
    %c0_126 = arith.constant 0 : index
    %c0_127 = arith.constant 0 : index
    %213 = vector.load %arg3[%c11, %c0_126, %c0_127] : memref<27x32x1xf32, #tpu.memory_space<vmem>>, vector<1x32x1xf32>
    %214 = vector.shape_cast %213 : vector<1x32x1xf32> to vector<32x1xf32>
    %215 = vector.broadcast %214 : vector<32x1xf32> to vector<32x256xf32>
    %216 = arith.mulf %212, %215 : vector<32x256xf32>
    %c3_128 = arith.constant 3 : index
    %c0_129 = arith.constant 0 : index
    %c0_130 = arith.constant 0 : index
    %217 = vector.load %arg4[%c3_128, %c0_129, %c0_130] : memref<9x1x256xf32, #tpu.memory_space<vmem>>, vector<1x1x256xf32>
    %218 = vector.shape_cast %217 : vector<1x1x256xf32> to vector<1x256xf32>
    %219 = vector.broadcast %218 : vector<1x256xf32> to vector<32x256xf32>
    %220 = arith.mulf %216, %219 : vector<32x256xf32>
    %221 = arith.addf %211, %220 : vector<32x256xf32>
    %c255_i32_131 = arith.constant 255 : i32
    %222 = tpu.dynamic_rotate %177 by %c255_i32_131 dim 1 : vector<32x256xf32>, i32 -> vector<32x256xf32>
    %c17 = arith.constant 17 : index
    %c0_132 = arith.constant 0 : index
    %c0_133 = arith.constant 0 : index
    %223 = vector.load %arg3[%c17, %c0_132, %c0_133] : memref<27x32x1xf32, #tpu.memory_space<vmem>>, vector<1x32x1xf32>
    %224 = vector.shape_cast %223 : vector<1x32x1xf32> to vector<32x1xf32>
    %225 = vector.broadcast %224 : vector<32x1xf32> to vector<32x256xf32>
    %226 = arith.mulf %222, %225 : vector<32x256xf32>
    %c5_134 = arith.constant 5 : index
    %c0_135 = arith.constant 0 : index
    %c0_136 = arith.constant 0 : index
    %227 = vector.load %arg4[%c5_134, %c0_135, %c0_136] : memref<9x1x256xf32, #tpu.memory_space<vmem>>, vector<1x1x256xf32>
    %228 = vector.shape_cast %227 : vector<1x1x256xf32> to vector<1x256xf32>
    %229 = vector.broadcast %228 : vector<1x256xf32> to vector<32x256xf32>
    %230 = arith.mulf %226, %229 : vector<32x256xf32>
    %231 = arith.addf %221, %230 : vector<32x256xf32>
    %c241_i32_137 = arith.constant 241 : i32
    %232 = tpu.dynamic_rotate %177 by %c241_i32_137 dim 1 : vector<32x256xf32>, i32 -> vector<32x256xf32>
    %c20 = arith.constant 20 : index
    %c0_138 = arith.constant 0 : index
    %c0_139 = arith.constant 0 : index
    %233 = vector.load %arg3[%c20, %c0_138, %c0_139] : memref<27x32x1xf32, #tpu.memory_space<vmem>>, vector<1x32x1xf32>
    %234 = vector.shape_cast %233 : vector<1x32x1xf32> to vector<32x1xf32>
    %235 = vector.broadcast %234 : vector<32x1xf32> to vector<32x256xf32>
    %236 = arith.mulf %232, %235 : vector<32x256xf32>
    %c6_140 = arith.constant 6 : index
    %c0_141 = arith.constant 0 : index
    %c0_142 = arith.constant 0 : index
    %237 = vector.load %arg4[%c6_140, %c0_141, %c0_142] : memref<9x1x256xf32, #tpu.memory_space<vmem>>, vector<1x1x256xf32>
    %238 = vector.shape_cast %237 : vector<1x1x256xf32> to vector<1x256xf32>
    %239 = vector.broadcast %238 : vector<1x256xf32> to vector<32x256xf32>
    %240 = arith.mulf %236, %239 : vector<32x256xf32>
    %241 = arith.addf %231, %240 : vector<32x256xf32>
    %c240_i32_143 = arith.constant 240 : i32
    %242 = tpu.dynamic_rotate %177 by %c240_i32_143 dim 1 : vector<32x256xf32>, i32 -> vector<32x256xf32>
    %c23 = arith.constant 23 : index
    %c0_144 = arith.constant 0 : index
    %c0_145 = arith.constant 0 : index
    %243 = vector.load %arg3[%c23, %c0_144, %c0_145] : memref<27x32x1xf32, #tpu.memory_space<vmem>>, vector<1x32x1xf32>
    %244 = vector.shape_cast %243 : vector<1x32x1xf32> to vector<32x1xf32>
    %245 = vector.broadcast %244 : vector<32x1xf32> to vector<32x256xf32>
    %246 = arith.mulf %242, %245 : vector<32x256xf32>
    %c7_146 = arith.constant 7 : index
    %c0_147 = arith.constant 0 : index
    %c0_148 = arith.constant 0 : index
    %247 = vector.load %arg4[%c7_146, %c0_147, %c0_148] : memref<9x1x256xf32, #tpu.memory_space<vmem>>, vector<1x1x256xf32>
    %248 = vector.shape_cast %247 : vector<1x1x256xf32> to vector<1x256xf32>
    %249 = vector.broadcast %248 : vector<1x256xf32> to vector<32x256xf32>
    %250 = arith.mulf %246, %249 : vector<32x256xf32>
    %251 = arith.addf %241, %250 : vector<32x256xf32>
    %c239_i32_149 = arith.constant 239 : i32
    %252 = tpu.dynamic_rotate %177 by %c239_i32_149 dim 1 : vector<32x256xf32>, i32 -> vector<32x256xf32>
    %c26 = arith.constant 26 : index
    %c0_150 = arith.constant 0 : index
    %c0_151 = arith.constant 0 : index
    %253 = vector.load %arg3[%c26, %c0_150, %c0_151] : memref<27x32x1xf32, #tpu.memory_space<vmem>>, vector<1x32x1xf32>
    %254 = vector.shape_cast %253 : vector<1x32x1xf32> to vector<32x1xf32>
    %255 = vector.broadcast %254 : vector<32x1xf32> to vector<32x256xf32>
    %256 = arith.mulf %252, %255 : vector<32x256xf32>
    %c8_152 = arith.constant 8 : index
    %c0_153 = arith.constant 0 : index
    %c0_154 = arith.constant 0 : index
    %257 = vector.load %arg4[%c8_152, %c0_153, %c0_154] : memref<9x1x256xf32, #tpu.memory_space<vmem>>, vector<1x1x256xf32>
    %258 = vector.shape_cast %257 : vector<1x1x256xf32> to vector<1x256xf32>
    %259 = vector.broadcast %258 : vector<1x256xf32> to vector<32x256xf32>
    %260 = arith.mulf %256, %259 : vector<32x256xf32>
    %261 = arith.addf %251, %260 : vector<32x256xf32>
    %c64_155 = arith.constant 64 : index
    %c0_156 = arith.constant 0 : index
    %262 = vector.load %arg8[%c64_155, %c0_156] : memref<96x256xf32, #tpu.memory_space<vmem>>, vector<32x256xf32>
    tpu.vector_store %arg8[%c64_155, %c0_156], %261 {strides = array<i32>} : memref<96x256xf32, #tpu.memory_space<vmem>>, vector<32x256xf32>,
    %c0_157 = arith.constant 0 : index
    %c0_158 = arith.constant 0 : index
    %263 = vector.load %arg8[%c0_157, %c0_158] : memref<96x256xf32, #tpu.memory_space<vmem>>, vector<32x256xf32>
    %c32_159 = arith.constant 32 : index
    %c0_160 = arith.constant 0 : index
    %264 = vector.load %arg8[%c32_159, %c0_160] : memref<96x256xf32, #tpu.memory_space<vmem>>, vector<32x256xf32>
    %265 = arith.mulf %263, %263 : vector<32x256xf32>
    %cst_161 = arith.constant dense<0.000000e+00> : vector<32xf32>
    %266 = vector.multi_reduction <add>, %265, %cst_161 [1] : vector<32x256xf32> to vector<32xf32>
    %267 = vector.shape_cast %266 : vector<32xf32> to vector<32x1xf32>
    %cst_162 = arith.constant 1.000000e-24 : f32
    %268 = vector.broadcast %cst_162 : f32 to vector<32x1xf32>
    %269 = arith.maximumf %267, %268 : vector<32x1xf32>
    %270 = math.rsqrt %269 : vector<32x1xf32>
    %271 = vector.broadcast %270 : vector<32x1xf32> to vector<32x256xf32>
    %272 = arith.mulf %263, %271 : vector<32x256xf32>
    %273 = arith.mulf %264, %264 : vector<32x256xf32>
    %cst_163 = arith.constant dense<0.000000e+00> : vector<32xf32>
    %274 = vector.multi_reduction <add>, %273, %cst_163 [1] : vector<32x256xf32> to vector<32xf32>
    %275 = vector.shape_cast %274 : vector<32xf32> to vector<32x1xf32>
    %cst_164 = arith.constant 1.000000e-24 : f32
    %276 = vector.broadcast %cst_164 : f32 to vector<32x1xf32>
    %277 = arith.maximumf %275, %276 : vector<32x1xf32>
    %278 = math.rsqrt %277 : vector<32x1xf32>
    %279 = vector.broadcast %278 : vector<32x1xf32> to vector<32x256xf32>
    %280 = arith.mulf %264, %279 : vector<32x256xf32>
    %cst_165 = arith.constant dense<0.000000e+00> : vector<32x32xf32>
    %281 = tpu.matmul %272, %280, %cst_165 {dimension_numbers = #tpu.dot_dimension_numbers<[1], [1], [0], [0], [0, 0, 1, 0], [], []>} : vector<32x256xf32>, vector<32x256xf32>, vector<32x32xf32> -> vector<32x32xf32>
    %c0_166 = arith.constant 0 : index
    %c0_167 = arith.constant 0 : index
    %282 = vector.load %arg5[%c0_166, %c0_167] : memref<32x32xf32, #tpu.memory_space<vmem>>, vector<32x32xf32>
    %283 = arith.mulf %281, %282 : vector<32x32xf32>
    %cst_168 = arith.constant 0.000000e+00 : f32
    %284 = vector.broadcast %cst_168 : f32 to vector<32x32xf32>
    %285 = arith.maximumf %283, %284 : vector<32x32xf32>
    %c64_169 = arith.constant 64 : index
    %c0_170 = arith.constant 0 : index
    %286 = vector.load %arg8[%c64_169, %c0_170] : memref<96x256xf32, #tpu.memory_space<vmem>>, vector<32x256xf32>
    %cst_171 = arith.constant dense<0.000000e+00> : vector<32x256xf32>
    %287 = tpu.matmul %285, %286, %cst_171 {dimension_numbers = #tpu.dot_dimension_numbers<[1], [0], [0], [1], [0, 0, 1, 1], [], []>} : vector<32x32xf32>, vector<32x256xf32>, vector<32x256xf32> -> vector<32x256xf32>
    %c0_172 = arith.constant 0 : index
    %c0_173 = arith.constant 0 : index
    %288 = vector.load %arg6[%c0_172, %c0_173] : memref<32x32xf32, #tpu.memory_space<vmem>>, vector<32x32xf32>
    %cst_174 = arith.constant dense<0.000000e+00> : vector<32x256xf32>
    %289 = tpu.matmul %288, %287, %cst_174 {dimension_numbers = #tpu.dot_dimension_numbers<[1], [0], [0], [1], [0, 0, 1, 1], [], []>} : vector<32x32xf32>, vector<32x256xf32>, vector<32x256xf32> -> vector<32x256xf32>
    %c0_175 = arith.constant 0 : index
    %c0_176 = arith.constant 0 : index
    %c0_177 = arith.constant 0 : index
    %290 = vector.load %arg7[%c0_175, %c0_176, %c0_177] : memref<1x32x256xf32, #tpu.memory_space<vmem>>, vector<1x32x256xf32>
    %291 = vector.shape_cast %290 : vector<1x32x256xf32> to vector<32x256xf32>
    %292 = vector.shape_cast %289 : vector<32x256xf32> to vector<1x32x256xf32>
    tpu.vector_store %arg7[%c0_175, %c0_176, %c0_177], %292 {strides = array<i32>} : memref<1x32x256xf32, #tpu.memory_space<vmem>>, vector<1x32x256xf32>,
    return
  }
  func.func @transform_0(%arg0: i32) -> (i32, i32, i32) {
    %c0_i32 = arith.constant 0 : i32
    %c0_i32_0 = arith.constant 0 : i32
    %c0_i32_1 = arith.constant 0 : i32
    return %arg0, %c0_i32, %c0_i32_0 : i32, i32, i32
  }
  func.func @transform_1(%arg0: i32) -> (i32, i32) {
    %c0_i32 = arith.constant 0 : i32
    %c0_i32_0 = arith.constant 0 : i32
    %c0_i32_1 = arith.constant 0 : i32
    return %c0_i32, %c0_i32_0 : i32, i32
  }
  func.func @transform_2(%arg0: i32) -> (i32, i32, i32) {
    %c0_i32 = arith.constant 0 : i32
    %c0_i32_0 = arith.constant 0 : i32
    %c0_i32_1 = arith.constant 0 : i32
    %c0_i32_2 = arith.constant 0 : i32
    return %c0_i32, %c0_i32_0, %c0_i32_1 : i32, i32, i32
  }
  func.func @transform_3(%arg0: i32) -> (i32, i32, i32) {
    %c0_i32 = arith.constant 0 : i32
    %c0_i32_0 = arith.constant 0 : i32
    %c0_i32_1 = arith.constant 0 : i32
    %c0_i32_2 = arith.constant 0 : i32
    return %c0_i32, %c0_i32_0, %c0_i32_1 : i32, i32, i32
  }
  func.func @transform_4(%arg0: i32) -> (i32, i32) {
    %c0_i32 = arith.constant 0 : i32
    %c0_i32_0 = arith.constant 0 : i32
    %c0_i32_1 = arith.constant 0 : i32
    return %c0_i32, %c0_i32_0 : i32, i32
  }
  func.func @transform_5(%arg0: i32) -> (i32, i32) {
    %c0_i32 = arith.constant 0 : i32
    %c0_i32_0 = arith.constant 0 : i32
    %c0_i32_1 = arith.constant 0 : i32
    return %c0_i32, %c0_i32_0 : i32, i32
  }
  func.func @transform_6(%arg0: i32) -> (i32, i32, i32) {
    %c0_i32 = arith.constant 0 : i32
    %c0_i32_0 = arith.constant 0 : i32
    %c0_i32_1 = arith.constant 0 : i32
    return %arg0, %c0_i32, %c0_i32_0 : i32, i32, i32
  }
}

module attributes {stable_mosaic.version = 11 : i64} {
  func.func @_sparse_attention_kernel(%arg0: i32, %arg1: memref<1x32x256xf32, #tpu.memory_space<vmem>>, %arg2: memref<96x32xf32, #tpu.memory_space<vmem>>, %arg3: memref<27x32x1xf32, #tpu.memory_space<vmem>>, %arg4: memref<9x1x256xf32, #tpu.memory_space<vmem>>, %arg5: memref<32x32xf32, #tpu.memory_space<vmem>>, %arg6: memref<32x32xf32, #tpu.memory_space<vmem>>, %arg7: memref<1x32x256xf32, #tpu.memory_space<vmem>>, %arg8: memref<96x256xf32, #tpu.memory_space<vmem>>) attributes {dimension_semantics = [#tpu.dimension_semantics<parallel>], iteration_bounds = array<i64: 2>, scalar_prefetch = 0 : i64, scratch_operands = 1 : i64, tpu.core_type = #tpu.core_type<tc>, window_params = [{transform_indices = @transform_0, window_bounds = array<i64: 1, 32, 256>}, {pipeline_mode = #tpu.pipeline_mode<synchronous>, transform_indices = @transform_1, window_bounds = array<i64: 96, 32>}, {pipeline_mode = #tpu.pipeline_mode<synchronous>, transform_indices = @transform_2, window_bounds = array<i64: 27, 32, 1>}, {pipeline_mode = #tpu.pipeline_mode<synchronous>, transform_indices = @transform_3, window_bounds = array<i64: 9, 1, 256>}, {pipeline_mode = #tpu.pipeline_mode<synchronous>, transform_indices = @transform_4, window_bounds = array<i64: 32, 32>}, {pipeline_mode = #tpu.pipeline_mode<synchronous>, transform_indices = @transform_5, window_bounds = array<i64: 32, 32>}, {transform_indices = @transform_6, window_bounds = array<i64: 1, 32, 256>}]} {
    %c0 = arith.constant 0 : index
    %c0_0 = arith.constant 0 : index
    %c0_1 = arith.constant 0 : index
    %0 = vector.load %arg1[%c0, %c0_0, %c0_1] : memref<1x32x256xf32, #tpu.memory_space<vmem>>, vector<1x32x256xf32>
    %1 = vector.shape_cast %0 : vector<1x32x256xf32> to vector<32x256xf32>
    %c0_2 = arith.constant 0 : index
    %c0_3 = arith.constant 0 : index
    %2 = vector.load %arg2[%c0_2, %c0_3] : memref<96x32xf32, #tpu.memory_space<vmem>>, vector<32x32xf32>
    %cst = arith.constant dense<0.000000e+00> : vector<32x256xf32>
    %3 = tpu.matmul %2, %1, %cst {dimension_numbers = #tpu.dot_dimension_numbers<[1], [0], [0], [1], [0, 0, 1, 1], [], []>} : vector<32x32xf32>, vector<32x256xf32>, vector<32x256xf32> -> vector<32x256xf32>
    %c12 = arith.constant 12 : index
    %c0_4 = arith.constant 0 : index
    %c0_5 = arith.constant 0 : index
    %4 = vector.load %arg3[%c12, %c0_4, %c0_5] : memref<27x32x1xf32, #tpu.memory_space<vmem>>, vector<1x32x1xf32>
    %5 = vector.shape_cast %4 : vector<1x32x1xf32> to vector<32x1xf32>
    %6 = vector.broadcast %5 : vector<32x1xf32> to vector<32x256xf32>
    %7 = arith.mulf %3, %6 : vector<32x256xf32>
    %c17_i32 = arith.constant 17 : i32
    %8 = tpu.dynamic_rotate %3 by %c17_i32 dim 1 : vector<32x256xf32>, i32 -> vector<32x256xf32>
    %c0_6 = arith.constant 0 : index
    %c0_7 = arith.constant 0 : index
    %c0_8 = arith.constant 0 : index
    %9 = vector.load %arg3[%c0_6, %c0_7, %c0_8] : memref<27x32x1xf32, #tpu.memory_space<vmem>>, vector<1x32x1xf32>
    %10 = vector.shape_cast %9 : vector<1x32x1xf32> to vector<32x1xf32>
    %11 = vector.broadcast %10 : vector<32x1xf32> to vector<32x256xf32>
    %12 = arith.mulf %8, %11 : vector<32x256xf32>
    %c0_9 = arith.constant 0 : index
    %c0_10 = arith.constant 0 : index
    %c0_11 = arith.constant 0 : index
    %13 = vector.load %arg4[%c0_9, %c0_10, %c0_11] : memref<9x1x256xf32, #tpu.memory_space<vmem>>, vector<1x1x256xf32>
    %14 = vector.shape_cast %13 : vector<1x1x256xf32> to vector<1x256xf32>
    %15 = vector.broadcast %14 : vector<1x256xf32> to vector<32x256xf32>
    %16 = arith.mulf %12, %15 : vector<32x256xf32>
    %17 = arith.addf %7, %16 : vector<32x256xf32>
    %c16_i32 = arith.constant 16 : i32
    %18 = tpu.dynamic_rotate %3 by %c16_i32 dim 1 : vector<32x256xf32>, i32 -> vector<32x256xf32>
    %c3 = arith.constant 3 : index
    %c0_12 = arith.constant 0 : index
    %c0_13 = arith.constant 0 : index
    %19 = vector.load %arg3[%c3, %c0_12, %c0_13] : memref<27x32x1xf32, #tpu.memory_space<vmem>>, vector<1x32x1xf32>
    %20 = vector.shape_cast %19 : vector<1x32x1xf32> to vector<32x1xf32>
    %21 = vector.broadcast %20 : vector<32x1xf32> to vector<32x256xf32>
    %22 = arith.mulf %18, %21 : vector<32x256xf32>
    %c1 = arith.constant 1 : index
    %c0_14 = arith.constant 0 : index
    %c0_15 = arith.constant 0 : index
    %23 = vector.load %arg4[%c1, %c0_14, %c0_15] : memref<9x1x256xf32, #tpu.memory_space<vmem>>, vector<1x1x256xf32>
    %24 = vector.shape_cast %23 : vector<1x1x256xf32> to vector<1x256xf32>
    %25 = vector.broadcast %24 : vector<1x256xf32> to vector<32x256xf32>
    %26 = arith.mulf %22, %25 : vector<32x256xf32>
    %27 = arith.addf %17, %26 : vector<32x256xf32>
    %c15_i32 = arith.constant 15 : i32
    %28 = tpu.dynamic_rotate %3 by %c15_i32 dim 1 : vector<32x256xf32>, i32 -> vector<32x256xf32>
    %c6 = arith.constant 6 : index
    %c0_16 = arith.constant 0 : index
    %c0_17 = arith.constant 0 : index
    %29 = vector.load %arg3[%c6, %c0_16, %c0_17] : memref<27x32x1xf32, #tpu.memory_space<vmem>>, vector<1x32x1xf32>
    %30 = vector.shape_cast %29 : vector<1x32x1xf32> to vector<32x1xf32>
    %31 = vector.broadcast %30 : vector<32x1xf32> to vector<32x256xf32>
    %32 = arith.mulf %28, %31 : vector<32x256xf32>
    %c2 = arith.constant 2 : index
    %c0_18 = arith.constant 0 : index
    %c0_19 = arith.constant 0 : index
    %33 = vector.load %arg4[%c2, %c0_18, %c0_19] : memref<9x1x256xf32, #tpu.memory_space<vmem>>, vector<1x1x256xf32>
    %34 = vector.shape_cast %33 : vector<1x1x256xf32> to vector<1x256xf32>
    %35 = vector.broadcast %34 : vector<1x256xf32> to vector<32x256xf32>
    %36 = arith.mulf %32, %35 : vector<32x256xf32>
    %37 = arith.addf %27, %36 : vector<32x256xf32>
    %c1_i32 = arith.constant 1 : i32
    %38 = tpu.dynamic_rotate %3 by %c1_i32 dim 1 : vector<32x256xf32>, i32 -> vector<32x256xf32>
    %c9 = arith.constant 9 : index
    %c0_20 = arith.constant 0 : index
    %c0_21 = arith.constant 0 : index
    %39 = vector.load %arg3[%c9, %c0_20, %c0_21] : memref<27x32x1xf32, #tpu.memory_space<vmem>>, vector<1x32x1xf32>
    %40 = vector.shape_cast %39 : vector<1x32x1xf32> to vector<32x1xf32>
    %41 = vector.broadcast %40 : vector<32x1xf32> to vector<32x256xf32>
    %42 = arith.mulf %38, %41 : vector<32x256xf32>
    %c3_22 = arith.constant 3 : index
    %c0_23 = arith.constant 0 : index
    %c0_24 = arith.constant 0 : index
    %43 = vector.load %arg4[%c3_22, %c0_23, %c0_24] : memref<9x1x256xf32, #tpu.memory_space<vmem>>, vector<1x1x256xf32>
    %44 = vector.shape_cast %43 : vector<1x1x256xf32> to vector<1x256xf32>
    %45 = vector.broadcast %44 : vector<1x256xf32> to vector<32x256xf32>
    %46 = arith.mulf %42, %45 : vector<32x256xf32>
    %47 = arith.addf %37, %46 : vector<32x256xf32>
    %c255_i32 = arith.constant 255 : i32
    %48 = tpu.dynamic_rotate %3 by %c255_i32 dim 1 : vector<32x256xf32>, i32 -> vector<32x256xf32>
    %c15 = arith.constant 15 : index
    %c0_25 = arith.constant 0 : index
    %c0_26 = arith.constant 0 : index
    %49 = vector.load %arg3[%c15, %c0_25, %c0_26] : memref<27x32x1xf32, #tpu.memory_space<vmem>>, vector<1x32x1xf32>
    %50 = vector.shape_cast %49 : vector<1x32x1xf32> to vector<32x1xf32>
    %51 = vector.broadcast %50 : vector<32x1xf32> to vector<32x256xf32>
    %52 = arith.mulf %48, %51 : vector<32x256xf32>
    %c5 = arith.constant 5 : index
    %c0_27 = arith.constant 0 : index
    %c0_28 = arith.constant 0 : index
    %53 = vector.load %arg4[%c5, %c0_27, %c0_28] : memref<9x1x256xf32, #tpu.memory_space<vmem>>, vector<1x1x256xf32>
    %54 = vector.shape_cast %53 : vector<1x1x256xf32> to vector<1x256xf32>
    %55 = vector.broadcast %54 : vector<1x256xf32> to vector<32x256xf32>
    %56 = arith.mulf %52, %55 : vector<32x256xf32>
    %57 = arith.addf %47, %56 : vector<32x256xf32>
    %c241_i32 = arith.constant 241 : i32
    %58 = tpu.dynamic_rotate %3 by %c241_i32 dim 1 : vector<32x256xf32>, i32 -> vector<32x256xf32>
    %c18 = arith.constant 18 : index
    %c0_29 = arith.constant 0 : index
    %c0_30 = arith.constant 0 : index
    %59 = vector.load %arg3[%c18, %c0_29, %c0_30] : memref<27x32x1xf32, #tpu.memory_space<vmem>>, vector<1x32x1xf32>
    %60 = vector.shape_cast %59 : vector<1x32x1xf32> to vector<32x1xf32>
    %61 = vector.broadcast %60 : vector<32x1xf32> to vector<32x256xf32>
    %62 = arith.mulf %58, %61 : vector<32x256xf32>
    %c6_31 = arith.constant 6 : index
    %c0_32 = arith.constant 0 : index
    %c0_33 = arith.constant 0 : index
    %63 = vector.load %arg4[%c6_31, %c0_32, %c0_33] : memref<9x1x256xf32, #tpu.memory_space<vmem>>, vector<1x1x256xf32>
    %64 = vector.shape_cast %63 : vector<1x1x256xf32> to vector<1x256xf32>
    %65 = vector.broadcast %64 : vector<1x256xf32> to vector<32x256xf32>
    %66 = arith.mulf %62, %65 : vector<32x256xf32>
    %67 = arith.addf %57, %66 : vector<32x256xf32>
    %c240_i32 = arith.constant 240 : i32
    %68 = tpu.dynamic_rotate %3 by %c240_i32 dim 1 : vector<32x256xf32>, i32 -> vector<32x256xf32>
    %c21 = arith.constant 21 : index
    %c0_34 = arith.constant 0 : index
    %c0_35 = arith.constant 0 : index
    %69 = vector.load %arg3[%c21, %c0_34, %c0_35] : memref<27x32x1xf32, #tpu.memory_space<vmem>>, vector<1x32x1xf32>
    %70 = vector.shape_cast %69 : vector<1x32x1xf32> to vector<32x1xf32>
    %71 = vector.broadcast %70 : vector<32x1xf32> to vector<32x256xf32>
    %72 = arith.mulf %68, %71 : vector<32x256xf32>
    %c7 = arith.constant 7 : index
    %c0_36 = arith.constant 0 : index
    %c0_37 = arith.constant 0 : index
    %73 = vector.load %arg4[%c7, %c0_36, %c0_37] : memref<9x1x256xf32, #tpu.memory_space<vmem>>, vector<1x1x256xf32>
    %74 = vector.shape_cast %73 : vector<1x1x256xf32> to vector<1x256xf32>
    %75 = vector.broadcast %74 : vector<1x256xf32> to vector<32x256xf32>
    %76 = arith.mulf %72, %75 : vector<32x256xf32>
    %77 = arith.addf %67, %76 : vector<32x256xf32>
    %c239_i32 = arith.constant 239 : i32
    %78 = tpu.dynamic_rotate %3 by %c239_i32 dim 1 : vector<32x256xf32>, i32 -> vector<32x256xf32>
    %c24 = arith.constant 24 : index
    %c0_38 = arith.constant 0 : index
    %c0_39 = arith.constant 0 : index
    %79 = vector.load %arg3[%c24, %c0_38, %c0_39] : memref<27x32x1xf32, #tpu.memory_space<vmem>>, vector<1x32x1xf32>
    %80 = vector.shape_cast %79 : vector<1x32x1xf32> to vector<32x1xf32>
    %81 = vector.broadcast %80 : vector<32x1xf32> to vector<32x256xf32>
    %82 = arith.mulf %78, %81 : vector<32x256xf32>
    %c8 = arith.constant 8 : index
    %c0_40 = arith.constant 0 : index
    %c0_41 = arith.constant 0 : index
    %83 = vector.load %arg4[%c8, %c0_40, %c0_41] : memref<9x1x256xf32, #tpu.memory_space<vmem>>, vector<1x1x256xf32>
    %84 = vector.shape_cast %83 : vector<1x1x256xf32> to vector<1x256xf32>
    %85 = vector.broadcast %84 : vector<1x256xf32> to vector<32x256xf32>
    %86 = arith.mulf %82, %85 : vector<32x256xf32>
    %87 = arith.addf %77, %86 : vector<32x256xf32>
    %c0_42 = arith.constant 0 : index
    %c0_43 = arith.constant 0 : index
    %88 = vector.load %arg8[%c0_42, %c0_43] : memref<96x256xf32, #tpu.memory_space<vmem>>, vector<32x256xf32>
    tpu.vector_store %arg8[%c0_42, %c0_43], %87 {strides = array<i32>} : memref<96x256xf32, #tpu.memory_space<vmem>>, vector<32x256xf32>,
    %c32 = arith.constant 32 : index
    %c0_44 = arith.constant 0 : index
    %89 = vector.load %arg2[%c32, %c0_44] : memref<96x32xf32, #tpu.memory_space<vmem>>, vector<32x32xf32>
    %cst_45 = arith.constant dense<0.000000e+00> : vector<32x256xf32>
    %90 = tpu.matmul %89, %1, %cst_45 {dimension_numbers = #tpu.dot_dimension_numbers<[1], [0], [0], [1], [0, 0, 1, 1], [], []>} : vector<32x32xf32>, vector<32x256xf32>, vector<32x256xf32> -> vector<32x256xf32>
    %c13 = arith.constant 13 : index
    %c0_46 = arith.constant 0 : index
    %c0_47 = arith.constant 0 : index
    %91 = vector.load %arg3[%c13, %c0_46, %c0_47] : memref<27x32x1xf32, #tpu.memory_space<vmem>>, vector<1x32x1xf32>
    %92 = vector.shape_cast %91 : vector<1x32x1xf32> to vector<32x1xf32>
    %93 = vector.broadcast %92 : vector<32x1xf32> to vector<32x256xf32>
    %94 = arith.mulf %90, %93 : vector<32x256xf32>
    %c17_i32_48 = arith.constant 17 : i32
    %95 = tpu.dynamic_rotate %90 by %c17_i32_48 dim 1 : vector<32x256xf32>, i32 -> vector<32x256xf32>
    %c1_49 = arith.constant 1 : index
    %c0_50 = arith.constant 0 : index
    %c0_51 = arith.constant 0 : index
    %96 = vector.load %arg3[%c1_49, %c0_50, %c0_51] : memref<27x32x1xf32, #tpu.memory_space<vmem>>, vector<1x32x1xf32>
    %97 = vector.shape_cast %96 : vector<1x32x1xf32> to vector<32x1xf32>
    %98 = vector.broadcast %97 : vector<32x1xf32> to vector<32x256xf32>
    %99 = arith.mulf %95, %98 : vector<32x256xf32>
    %c0_52 = arith.constant 0 : index
    %c0_53 = arith.constant 0 : index
    %c0_54 = arith.constant 0 : index
    %100 = vector.load %arg4[%c0_52, %c0_53, %c0_54] : memref<9x1x256xf32, #tpu.memory_space<vmem>>, vector<1x1x256xf32>
    %101 = vector.shape_cast %100 : vector<1x1x256xf32> to vector<1x256xf32>
    %102 = vector.broadcast %101 : vector<1x256xf32> to vector<32x256xf32>
    %103 = arith.mulf %99, %102 : vector<32x256xf32>
    %104 = arith.addf %94, %103 : vector<32x256xf32>
    %c16_i32_55 = arith.constant 16 : i32
    %105 = tpu.dynamic_rotate %90 by %c16_i32_55 dim 1 : vector<32x256xf32>, i32 -> vector<32x256xf32>
    %c4 = arith.constant 4 : index
    %c0_56 = arith.constant 0 : index
    %c0_57 = arith.constant 0 : index
    %106 = vector.load %arg3[%c4, %c0_56, %c0_57] : memref<27x32x1xf32, #tpu.memory_space<vmem>>, vector<1x32x1xf32>
    %107 = vector.shape_cast %106 : vector<1x32x1xf32> to vector<32x1xf32>
    %108 = vector.broadcast %107 : vector<32x1xf32> to vector<32x256xf32>
    %109 = arith.mulf %105, %108 : vector<32x256xf32>
    %c1_58 = arith.constant 1 : index
    %c0_59 = arith.constant 0 : index
    %c0_60 = arith.constant 0 : index
    %110 = vector.load %arg4[%c1_58, %c0_59, %c0_60] : memref<9x1x256xf32, #tpu.memory_space<vmem>>, vector<1x1x256xf32>
    %111 = vector.shape_cast %110 : vector<1x1x256xf32> to vector<1x256xf32>
    %112 = vector.broadcast %111 : vector<1x256xf32> to vector<32x256xf32>
    %113 = arith.mulf %109, %112 : vector<32x256xf32>
    %114 = arith.addf %104, %113 : vector<32x256xf32>
    %c15_i32_61 = arith.constant 15 : i32
    %115 = tpu.dynamic_rotate %90 by %c15_i32_61 dim 1 : vector<32x256xf32>, i32 -> vector<32x256xf32>
    %c7_62 = arith.constant 7 : index
    %c0_63 = arith.constant 0 : index
    %c0_64 = arith.constant 0 : index
    %116 = vector.load %arg3[%c7_62, %c0_63, %c0_64] : memref<27x32x1xf32, #tpu.memory_space<vmem>>, vector<1x32x1xf32>
    %117 = vector.shape_cast %116 : vector<1x32x1xf32> to vector<32x1xf32>
    %118 = vector.broadcast %117 : vector<32x1xf32> to vector<32x256xf32>
    %119 = arith.mulf %115, %118 : vector<32x256xf32>
    %c2_65 = arith.constant 2 : index
    %c0_66 = arith.constant 0 : index
    %c0_67 = arith.constant 0 : index
    %120 = vector.load %arg4[%c2_65, %c0_66, %c0_67] : memref<9x1x256xf32, #tpu.memory_space<vmem>>, vector<1x1x256xf32>
    %121 = vector.shape_cast %120 : vector<1x1x256xf32> to vector<1x256xf32>
    %122 = vector.broadcast %121 : vector<1x256xf32> to vector<32x256xf32>
    %123 = arith.mulf %119, %122 : vector<32x256xf32>
    %124 = arith.addf %114, %123 : vector<32x256xf32>
    %c1_i32_68 = arith.constant 1 : i32
    %125 = tpu.dynamic_rotate %90 by %c1_i32_68 dim 1 : vector<32x256xf32>, i32 -> vector<32x256xf32>
    %c10 = arith.constant 10 : index
    %c0_69 = arith.constant 0 : index
    %c0_70 = arith.constant 0 : index
    %126 = vector.load %arg3[%c10, %c0_69, %c0_70] : memref<27x32x1xf32, #tpu.memory_space<vmem>>, vector<1x32x1xf32>
    %127 = vector.shape_cast %126 : vector<1x32x1xf32> to vector<32x1xf32>
    %128 = vector.broadcast %127 : vector<32x1xf32> to vector<32x256xf32>
    %129 = arith.mulf %125, %128 : vector<32x256xf32>
    %c3_71 = arith.constant 3 : index
    %c0_72 = arith.constant 0 : index
    %c0_73 = arith.constant 0 : index
    %130 = vector.load %arg4[%c3_71, %c0_72, %c0_73] : memref<9x1x256xf32, #tpu.memory_space<vmem>>, vector<1x1x256xf32>
    %131 = vector.shape_cast %130 : vector<1x1x256xf32> to vector<1x256xf32>
    %132 = vector.broadcast %131 : vector<1x256xf32> to vector<32x256xf32>
    %133 = arith.mulf %129, %132 : vector<32x256xf32>
    %134 = arith.addf %124, %133 : vector<32x256xf32>
    %c255_i32_74 = arith.constant 255 : i32
    %135 = tpu.dynamic_rotate %90 by %c255_i32_74 dim 1 : vector<32x256xf32>, i32 -> vector<32x256xf32>
    %c16 = arith.constant 16 : index
    %c0_75 = arith.constant 0 : index
    %c0_76 = arith.constant 0 : index
    %136 = vector.load %arg3[%c16, %c0_75, %c0_76] : memref<27x32x1xf32, #tpu.memory_space<vmem>>, vector<1x32x1xf32>
    %137 = vector.shape_cast %136 : vector<1x32x1xf32> to vector<32x1xf32>
    %138 = vector.broadcast %137 : vector<32x1xf32> to vector<32x256xf32>
    %139 = arith.mulf %135, %138 : vector<32x256xf32>
    %c5_77 = arith.constant 5 : index
    %c0_78 = arith.constant 0 : index
    %c0_79 = arith.constant 0 : index
    %140 = vector.load %arg4[%c5_77, %c0_78, %c0_79] : memref<9x1x256xf32, #tpu.memory_space<vmem>>, vector<1x1x256xf32>
    %141 = vector.shape_cast %140 : vector<1x1x256xf32> to vector<1x256xf32>
    %142 = vector.broadcast %141 : vector<1x256xf32> to vector<32x256xf32>
    %143 = arith.mulf %139, %142 : vector<32x256xf32>
    %144 = arith.addf %134, %143 : vector<32x256xf32>
    %c241_i32_80 = arith.constant 241 : i32
    %145 = tpu.dynamic_rotate %90 by %c241_i32_80 dim 1 : vector<32x256xf32>, i32 -> vector<32x256xf32>
    %c19 = arith.constant 19 : index
    %c0_81 = arith.constant 0 : index
    %c0_82 = arith.constant 0 : index
    %146 = vector.load %arg3[%c19, %c0_81, %c0_82] : memref<27x32x1xf32, #tpu.memory_space<vmem>>, vector<1x32x1xf32>
    %147 = vector.shape_cast %146 : vector<1x32x1xf32> to vector<32x1xf32>
    %148 = vector.broadcast %147 : vector<32x1xf32> to vector<32x256xf32>
    %149 = arith.mulf %145, %148 : vector<32x256xf32>
    %c6_83 = arith.constant 6 : index
    %c0_84 = arith.constant 0 : index
    %c0_85 = arith.constant 0 : index
    %150 = vector.load %arg4[%c6_83, %c0_84, %c0_85] : memref<9x1x256xf32, #tpu.memory_space<vmem>>, vector<1x1x256xf32>
    %151 = vector.shape_cast %150 : vector<1x1x256xf32> to vector<1x256xf32>
    %152 = vector.broadcast %151 : vector<1x256xf32> to vector<32x256xf32>
    %153 = arith.mulf %149, %152 : vector<32x256xf32>
    %154 = arith.addf %144, %153 : vector<32x256xf32>
    %c240_i32_86 = arith.constant 240 : i32
    %155 = tpu.dynamic_rotate %90 by %c240_i32_86 dim 1 : vector<32x256xf32>, i32 -> vector<32x256xf32>
    %c22 = arith.constant 22 : index
    %c0_87 = arith.constant 0 : index
    %c0_88 = arith.constant 0 : index
    %156 = vector.load %arg3[%c22, %c0_87, %c0_88] : memref<27x32x1xf32, #tpu.memory_space<vmem>>, vector<1x32x1xf32>
    %157 = vector.shape_cast %156 : vector<1x32x1xf32> to vector<32x1xf32>
    %158 = vector.broadcast %157 : vector<32x1xf32> to vector<32x256xf32>
    %159 = arith.mulf %155, %158 : vector<32x256xf32>
    %c7_89 = arith.constant 7 : index
    %c0_90 = arith.constant 0 : index
    %c0_91 = arith.constant 0 : index
    %160 = vector.load %arg4[%c7_89, %c0_90, %c0_91] : memref<9x1x256xf32, #tpu.memory_space<vmem>>, vector<1x1x256xf32>
    %161 = vector.shape_cast %160 : vector<1x1x256xf32> to vector<1x256xf32>
    %162 = vector.broadcast %161 : vector<1x256xf32> to vector<32x256xf32>
    %163 = arith.mulf %159, %162 : vector<32x256xf32>
    %164 = arith.addf %154, %163 : vector<32x256xf32>
    %c239_i32_92 = arith.constant 239 : i32
    %165 = tpu.dynamic_rotate %90 by %c239_i32_92 dim 1 : vector<32x256xf32>, i32 -> vector<32x256xf32>
    %c25 = arith.constant 25 : index
    %c0_93 = arith.constant 0 : index
    %c0_94 = arith.constant 0 : index
    %166 = vector.load %arg3[%c25, %c0_93, %c0_94] : memref<27x32x1xf32, #tpu.memory_space<vmem>>, vector<1x32x1xf32>
    %167 = vector.shape_cast %166 : vector<1x32x1xf32> to vector<32x1xf32>
    %168 = vector.broadcast %167 : vector<32x1xf32> to vector<32x256xf32>
    %169 = arith.mulf %165, %168 : vector<32x256xf32>
    %c8_95 = arith.constant 8 : index
    %c0_96 = arith.constant 0 : index
    %c0_97 = arith.constant 0 : index
    %170 = vector.load %arg4[%c8_95, %c0_96, %c0_97] : memref<9x1x256xf32, #tpu.memory_space<vmem>>, vector<1x1x256xf32>
    %171 = vector.shape_cast %170 : vector<1x1x256xf32> to vector<1x256xf32>
    %172 = vector.broadcast %171 : vector<1x256xf32> to vector<32x256xf32>
    %173 = arith.mulf %169, %172 : vector<32x256xf32>
    %174 = arith.addf %164, %173 : vector<32x256xf32>
    %c32_98 = arith.constant 32 : index
    %c0_99 = arith.constant 0 : index
    %175 = vector.load %arg8[%c32_98, %c0_99] : memref<96x256xf32, #tpu.memory_space<vmem>>, vector<32x256xf32>
    tpu.vector_store %arg8[%c32_98, %c0_99], %174 {strides = array<i32>} : memref<96x256xf32, #tpu.memory_space<vmem>>, vector<32x256xf32>,
    %c64 = arith.constant 64 : index
    %c0_100 = arith.constant 0 : index
    %176 = vector.load %arg2[%c64, %c0_100] : memref<96x32xf32, #tpu.memory_space<vmem>>, vector<32x32xf32>
    %cst_101 = arith.constant dense<0.000000e+00> : vector<32x256xf32>
    %177 = tpu.matmul %176, %1, %cst_101 {dimension_numbers = #tpu.dot_dimension_numbers<[1], [0], [0], [1], [0, 0, 1, 1], [], []>} : vector<32x32xf32>, vector<32x256xf32>, vector<32x256xf32> -> vector<32x256xf32>
    %c14 = arith.constant 14 : index
    %c0_102 = arith.constant 0 : index
    %c0_103 = arith.constant 0 : index
    %178 = vector.load %arg3[%c14, %c0_102, %c0_103] : memref<27x32x1xf32, #tpu.memory_space<vmem>>, vector<1x32x1xf32>
    %179 = vector.shape_cast %178 : vector<1x32x1xf32> to vector<32x1xf32>
    %180 = vector.broadcast %179 : vector<32x1xf32> to vector<32x256xf32>
    %181 = arith.mulf %177, %180 : vector<32x256xf32>
    %c17_i32_104 = arith.constant 17 : i32
    %182 = tpu.dynamic_rotate %177 by %c17_i32_104 dim 1 : vector<32x256xf32>, i32 -> vector<32x256xf32>
    %c2_105 = arith.constant 2 : index
    %c0_106 = arith.constant 0 : index
    %c0_107 = arith.constant 0 : index
    %183 = vector.load %arg3[%c2_105, %c0_106, %c0_107] : memref<27x32x1xf32, #tpu.memory_space<vmem>>, vector<1x32x1xf32>
    %184 = vector.shape_cast %183 : vector<1x32x1xf32> to vector<32x1xf32>
    %185 = vector.broadcast %184 : vector<32x1xf32> to vector<32x256xf32>
    %186 = arith.mulf %182, %185 : vector<32x256xf32>
    %c0_108 = arith.constant 0 : index
    %c0_109 = arith.constant 0 : index
    %c0_110 = arith.constant 0 : index
    %187 = vector.load %arg4[%c0_108, %c0_109, %c0_110] : memref<9x1x256xf32, #tpu.memory_space<vmem>>, vector<1x1x256xf32>
    %188 = vector.shape_cast %187 : vector<1x1x256xf32> to vector<1x256xf32>
    %189 = vector.broadcast %188 : vector<1x256xf32> to vector<32x256xf32>
    %190 = arith.mulf %186, %189 : vector<32x256xf32>
    %191 = arith.addf %181, %190 : vector<32x256xf32>
    %c16_i32_111 = arith.constant 16 : i32
    %192 = tpu.dynamic_rotate %177 by %c16_i32_111 dim 1 : vector<32x256xf32>, i32 -> vector<32x256xf32>
    %c5_112 = arith.constant 5 : index
    %c0_113 = arith.constant 0 : index
    %c0_114 = arith.constant 0 : index
    %193 = vector.load %arg3[%c5_112, %c0_113, %c0_114] : memref<27x32x1xf32, #tpu.memory_space<vmem>>, vector<1x32x1xf32>
    %194 = vector.shape_cast %193 : vector<1x32x1xf32> to vector<32x1xf32>
    %195 = vector.broadcast %194 : vector<32x1xf32> to vector<32x256xf32>
    %196 = arith.mulf %192, %195 : vector<32x256xf32>
    %c1_115 = arith.constant 1 : index
    %c0_116 = arith.constant 0 : index
    %c0_117 = arith.constant 0 : index
    %197 = vector.load %arg4[%c1_115, %c0_116, %c0_117] : memref<9x1x256xf32, #tpu.memory_space<vmem>>, vector<1x1x256xf32>
    %198 = vector.shape_cast %197 : vector<1x1x256xf32> to vector<1x256xf32>
    %199 = vector.broadcast %198 : vector<1x256xf32> to vector<32x256xf32>
    %200 = arith.mulf %196, %199 : vector<32x256xf32>
    %201 = arith.addf %191, %200 : vector<32x256xf32>
    %c15_i32_118 = arith.constant 15 : i32
    %202 = tpu.dynamic_rotate %177 by %c15_i32_118 dim 1 : vector<32x256xf32>, i32 -> vector<32x256xf32>
    %c8_119 = arith.constant 8 : index
    %c0_120 = arith.constant 0 : index
    %c0_121 = arith.constant 0 : index
    %203 = vector.load %arg3[%c8_119, %c0_120, %c0_121] : memref<27x32x1xf32, #tpu.memory_space<vmem>>, vector<1x32x1xf32>
    %204 = vector.shape_cast %203 : vector<1x32x1xf32> to vector<32x1xf32>
    %205 = vector.broadcast %204 : vector<32x1xf32> to vector<32x256xf32>
    %206 = arith.mulf %202, %205 : vector<32x256xf32>
    %c2_122 = arith.constant 2 : index
    %c0_123 = arith.constant 0 : index
    %c0_124 = arith.constant 0 : index
    %207 = vector.load %arg4[%c2_122, %c0_123, %c0_124] : memref<9x1x256xf32, #tpu.memory_space<vmem>>, vector<1x1x256xf32>
    %208 = vector.shape_cast %207 : vector<1x1x256xf32> to vector<1x256xf32>
    %209 = vector.broadcast %208 : vector<1x256xf32> to vector<32x256xf32>
    %210 = arith.mulf %206, %209 : vector<32x256xf32>
    %211 = arith.addf %201, %210 : vector<32x256xf32>
    %c1_i32_125 = arith.constant 1 : i32
    %212 = tpu.dynamic_rotate %177 by %c1_i32_125 dim 1 : vector<32x256xf32>, i32 -> vector<32x256xf32>
    %c11 = arith.constant 11 : index
    %c0_126 = arith.constant 0 : index
    %c0_127 = arith.constant 0 : index
    %213 = vector.load %arg3[%c11, %c0_126, %c0_127] : memref<27x32x1xf32, #tpu.memory_space<vmem>>, vector<1x32x1xf32>
    %214 = vector.shape_cast %213 : vector<1x32x1xf32> to vector<32x1xf32>
    %215 = vector.broadcast %214 : vector<32x1xf32> to vector<32x256xf32>
    %216 = arith.mulf %212, %215 : vector<32x256xf32>
    %c3_128 = arith.constant 3 : index
    %c0_129 = arith.constant 0 : index
    %c0_130 = arith.constant 0 : index
    %217 = vector.load %arg4[%c3_128, %c0_129, %c0_130] : memref<9x1x256xf32, #tpu.memory_space<vmem>>, vector<1x1x256xf32>
    %218 = vector.shape_cast %217 : vector<1x1x256xf32> to vector<1x256xf32>
    %219 = vector.broadcast %218 : vector<1x256xf32> to vector<32x256xf32>
    %220 = arith.mulf %216, %219 : vector<32x256xf32>
    %221 = arith.addf %211, %220 : vector<32x256xf32>
    %c255_i32_131 = arith.constant 255 : i32
    %222 = tpu.dynamic_rotate %177 by %c255_i32_131 dim 1 : vector<32x256xf32>, i32 -> vector<32x256xf32>
    %c17 = arith.constant 17 : index
    %c0_132 = arith.constant 0 : index
    %c0_133 = arith.constant 0 : index
    %223 = vector.load %arg3[%c17, %c0_132, %c0_133] : memref<27x32x1xf32, #tpu.memory_space<vmem>>, vector<1x32x1xf32>
    %224 = vector.shape_cast %223 : vector<1x32x1xf32> to vector<32x1xf32>
    %225 = vector.broadcast %224 : vector<32x1xf32> to vector<32x256xf32>
    %226 = arith.mulf %222, %225 : vector<32x256xf32>
    %c5_134 = arith.constant 5 : index
    %c0_135 = arith.constant 0 : index
    %c0_136 = arith.constant 0 : index
    %227 = vector.load %arg4[%c5_134, %c0_135, %c0_136] : memref<9x1x256xf32, #tpu.memory_space<vmem>>, vector<1x1x256xf32>
    %228 = vector.shape_cast %227 : vector<1x1x256xf32> to vector<1x256xf32>
    %229 = vector.broadcast %228 : vector<1x256xf32> to vector<32x256xf32>
    %230 = arith.mulf %226, %229 : vector<32x256xf32>
    %231 = arith.addf %221, %230 : vector<32x256xf32>
    %c241_i32_137 = arith.constant 241 : i32
    %232 = tpu.dynamic_rotate %177 by %c241_i32_137 dim 1 : vector<32x256xf32>, i32 -> vector<32x256xf32>
    %c20 = arith.constant 20 : index
    %c0_138 = arith.constant 0 : index
    %c0_139 = arith.constant 0 : index
    %233 = vector.load %arg3[%c20, %c0_138, %c0_139] : memref<27x32x1xf32, #tpu.memory_space<vmem>>, vector<1x32x1xf32>
    %234 = vector.shape_cast %233 : vector<1x32x1xf32> to vector<32x1xf32>
    %235 = vector.broadcast %234 : vector<32x1xf32> to vector<32x256xf32>
    %236 = arith.mulf %232, %235 : vector<32x256xf32>
    %c6_140 = arith.constant 6 : index
    %c0_141 = arith.constant 0 : index
    %c0_142 = arith.constant 0 : index
    %237 = vector.load %arg4[%c6_140, %c0_141, %c0_142] : memref<9x1x256xf32, #tpu.memory_space<vmem>>, vector<1x1x256xf32>
    %238 = vector.shape_cast %237 : vector<1x1x256xf32> to vector<1x256xf32>
    %239 = vector.broadcast %238 : vector<1x256xf32> to vector<32x256xf32>
    %240 = arith.mulf %236, %239 : vector<32x256xf32>
    %241 = arith.addf %231, %240 : vector<32x256xf32>
    %c240_i32_143 = arith.constant 240 : i32
    %242 = tpu.dynamic_rotate %177 by %c240_i32_143 dim 1 : vector<32x256xf32>, i32 -> vector<32x256xf32>
    %c23 = arith.constant 23 : index
    %c0_144 = arith.constant 0 : index
    %c0_145 = arith.constant 0 : index
    %243 = vector.load %arg3[%c23, %c0_144, %c0_145] : memref<27x32x1xf32, #tpu.memory_space<vmem>>, vector<1x32x1xf32>
    %244 = vector.shape_cast %243 : vector<1x32x1xf32> to vector<32x1xf32>
    %245 = vector.broadcast %244 : vector<32x1xf32> to vector<32x256xf32>
    %246 = arith.mulf %242, %245 : vector<32x256xf32>
    %c7_146 = arith.constant 7 : index
    %c0_147 = arith.constant 0 : index
    %c0_148 = arith.constant 0 : index
    %247 = vector.load %arg4[%c7_146, %c0_147, %c0_148] : memref<9x1x256xf32, #tpu.memory_space<vmem>>, vector<1x1x256xf32>
    %248 = vector.shape_cast %247 : vector<1x1x256xf32> to vector<1x256xf32>
    %249 = vector.broadcast %248 : vector<1x256xf32> to vector<32x256xf32>
    %250 = arith.mulf %246, %249 : vector<32x256xf32>
    %251 = arith.addf %241, %250 : vector<32x256xf32>
    %c239_i32_149 = arith.constant 239 : i32
    %252 = tpu.dynamic_rotate %177 by %c239_i32_149 dim 1 : vector<32x256xf32>, i32 -> vector<32x256xf32>
    %c26 = arith.constant 26 : index
    %c0_150 = arith.constant 0 : index
    %c0_151 = arith.constant 0 : index
    %253 = vector.load %arg3[%c26, %c0_150, %c0_151] : memref<27x32x1xf32, #tpu.memory_space<vmem>>, vector<1x32x1xf32>
    %254 = vector.shape_cast %253 : vector<1x32x1xf32> to vector<32x1xf32>
    %255 = vector.broadcast %254 : vector<32x1xf32> to vector<32x256xf32>
    %256 = arith.mulf %252, %255 : vector<32x256xf32>
    %c8_152 = arith.constant 8 : index
    %c0_153 = arith.constant 0 : index
    %c0_154 = arith.constant 0 : index
    %257 = vector.load %arg4[%c8_152, %c0_153, %c0_154] : memref<9x1x256xf32, #tpu.memory_space<vmem>>, vector<1x1x256xf32>
    %258 = vector.shape_cast %257 : vector<1x1x256xf32> to vector<1x256xf32>
    %259 = vector.broadcast %258 : vector<1x256xf32> to vector<32x256xf32>
    %260 = arith.mulf %256, %259 : vector<32x256xf32>
    %261 = arith.addf %251, %260 : vector<32x256xf32>
    %c64_155 = arith.constant 64 : index
    %c0_156 = arith.constant 0 : index
    %262 = vector.load %arg8[%c64_155, %c0_156] : memref<96x256xf32, #tpu.memory_space<vmem>>, vector<32x256xf32>
    tpu.vector_store %arg8[%c64_155, %c0_156], %261 {strides = array<i32>} : memref<96x256xf32, #tpu.memory_space<vmem>>, vector<32x256xf32>,
    %c0_157 = arith.constant 0 : index
    %c0_158 = arith.constant 0 : index
    %263 = vector.load %arg8[%c0_157, %c0_158] : memref<96x256xf32, #tpu.memory_space<vmem>>, vector<32x256xf32>
    %c32_159 = arith.constant 32 : index
    %c0_160 = arith.constant 0 : index
    %264 = vector.load %arg8[%c32_159, %c0_160] : memref<96x256xf32, #tpu.memory_space<vmem>>, vector<32x256xf32>
    %265 = arith.mulf %263, %263 : vector<32x256xf32>
    %cst_161 = arith.constant dense<0.000000e+00> : vector<32xf32>
    %266 = vector.multi_reduction <add>, %265, %cst_161 [1] : vector<32x256xf32> to vector<32xf32>
    %267 = vector.shape_cast %266 : vector<32xf32> to vector<32x1xf32>
    %cst_162 = arith.constant 1.000000e-24 : f32
    %268 = vector.broadcast %cst_162 : f32 to vector<32x1xf32>
    %269 = arith.maximumf %267, %268 : vector<32x1xf32>
    %270 = math.rsqrt %269 : vector<32x1xf32>
    %271 = vector.broadcast %270 : vector<32x1xf32> to vector<32x256xf32>
    %272 = arith.mulf %263, %271 : vector<32x256xf32>
    %273 = arith.mulf %264, %264 : vector<32x256xf32>
    %cst_163 = arith.constant dense<0.000000e+00> : vector<32xf32>
    %274 = vector.multi_reduction <add>, %273, %cst_163 [1] : vector<32x256xf32> to vector<32xf32>
    %275 = vector.shape_cast %274 : vector<32xf32> to vector<32x1xf32>
    %cst_164 = arith.constant 1.000000e-24 : f32
    %276 = vector.broadcast %cst_164 : f32 to vector<32x1xf32>
    %277 = arith.maximumf %275, %276 : vector<32x1xf32>
    %278 = math.rsqrt %277 : vector<32x1xf32>
    %279 = vector.broadcast %278 : vector<32x1xf32> to vector<32x256xf32>
    %280 = arith.mulf %264, %279 : vector<32x256xf32>
    %cst_165 = arith.constant dense<0.000000e+00> : vector<32x32xf32>
    %281 = tpu.matmul %272, %280, %cst_165 {dimension_numbers = #tpu.dot_dimension_numbers<[1], [1], [0], [0], [0, 0, 1, 0], [], []>} : vector<32x256xf32>, vector<32x256xf32>, vector<32x32xf32> -> vector<32x32xf32>
    %c0_166 = arith.constant 0 : index
    %c0_167 = arith.constant 0 : index
    %282 = vector.load %arg5[%c0_166, %c0_167] : memref<32x32xf32, #tpu.memory_space<vmem>>, vector<32x32xf32>
    %283 = arith.mulf %281, %282 : vector<32x32xf32>
    %cst_168 = arith.constant 0.000000e+00 : f32
    %284 = vector.broadcast %cst_168 : f32 to vector<32x32xf32>
    %285 = arith.maximumf %283, %284 : vector<32x32xf32>
    %c64_169 = arith.constant 64 : index
    %c0_170 = arith.constant 0 : index
    %286 = vector.load %arg8[%c64_169, %c0_170] : memref<96x256xf32, #tpu.memory_space<vmem>>, vector<32x256xf32>
    %cst_171 = arith.constant dense<0.000000e+00> : vector<32x256xf32>
    %287 = tpu.matmul %285, %286, %cst_171 {dimension_numbers = #tpu.dot_dimension_numbers<[1], [0], [0], [1], [0, 0, 1, 1], [], []>} : vector<32x32xf32>, vector<32x256xf32>, vector<32x256xf32> -> vector<32x256xf32>
    %c0_172 = arith.constant 0 : index
    %c0_173 = arith.constant 0 : index
    %288 = vector.load %arg6[%c0_172, %c0_173] : memref<32x32xf32, #tpu.memory_space<vmem>>, vector<32x32xf32>
    %cst_174 = arith.constant dense<0.000000e+00> : vector<32x256xf32>
    %289 = tpu.matmul %288, %287, %cst_174 {dimension_numbers = #tpu.dot_dimension_numbers<[1], [0], [0], [1], [0, 0, 1, 1], [], []>} : vector<32x32xf32>, vector<32x256xf32>, vector<32x256xf32> -> vector<32x256xf32>
    %c0_175 = arith.constant 0 : index
    %c0_176 = arith.constant 0 : index
    %c0_177 = arith.constant 0 : index
    %290 = vector.load %arg7[%c0_175, %c0_176, %c0_177] : memref<1x32x256xf32, #tpu.memory_space<vmem>>, vector<1x32x256xf32>
    %291 = vector.shape_cast %290 : vector<1x32x256xf32> to vector<32x256xf32>
    %292 = vector.shape_cast %289 : vector<32x256xf32> to vector<1x32x256xf32>
    tpu.vector_store %arg7[%c0_175, %c0_176, %c0_177], %292 {strides = array<i32>} : memref<1x32x256xf32, #tpu.memory_space<vmem>>, vector<1x32x256xf32>,
    return
  }
  func.func @transform_0(%arg0: i32) -> (i32, i32, i32) {
    %c0_i32 = arith.constant 0 : i32
    %c0_i32_0 = arith.constant 0 : i32
    %c0_i32_1 = arith.constant 0 : i32
    return %arg0, %c0_i32, %c0_i32_0 : i32, i32, i32
  }
  func.func @transform_1(%arg0: i32) -> (i32, i32) {
    %c0_i32 = arith.constant 0 : i32
    %c0_i32_0 = arith.constant 0 : i32
    %c0_i32_1 = arith.constant 0 : i32
    return %c0_i32, %c0_i32_0 : i32, i32
  }
  func.func @transform_2(%arg0: i32) -> (i32, i32, i32) {
    %c0_i32 = arith.constant 0 : i32
    %c0_i32_0 = arith.constant 0 : i32
    %c0_i32_1 = arith.constant 0 : i32
    %c0_i32_2 = arith.constant 0 : i32
    return %c0_i32, %c0_i32_0, %c0_i32_1 : i32, i32, i32
  }
  func.func @transform_3(%arg0: i32) -> (i32, i32, i32) {
    %c0_i32 = arith.constant 0 : i32
    %c0_i32_0 = arith.constant 0 : i32
    %c0_i32_1 = arith.constant 0 : i32
    %c0_i32_2 = arith.constant 0 : i32
    return %c0_i32, %c0_i32_0, %c0_i32_1 : i32, i32, i32
  }
  func.func @transform_4(%arg0: i32) -> (i32, i32) {
    %c0_i32 = arith.constant 0 : i32
    %c0_i32_0 = arith.constant 0 : i32
    %c0_i32_1 = arith.constant 0 : i32
    return %c0_i32, %c0_i32_0 : i32, i32
  }
  func.func @transform_5(%arg0: i32) -> (i32, i32) {
    %c0_i32 = arith.constant 0 : i32
    %c0_i32_0 = arith.constant 0 : i32
    %c0_i32_1 = arith.constant 0 : i32
    return %c0_i32, %c0_i32_0 : i32, i32
  }
  func.func @transform_6(%arg0: i32) -> (i32, i32, i32) {
    %c0_i32 = arith.constant 0 : i32
    %c0_i32_0 = arith.constant 0 : i32
    %c0_i32_1 = arith.constant 0 : i32
    return %arg0, %c0_i32, %c0_i32_0 : i32, i32, i32
  }
}

</mosaic_0001>

<bundles_post_ra>
// kernel: tpu_custom_call.1
= control target key start
LH: loop header
LB: loop body
LE: loop exit
PB: predicated region body
PF: predicated region fallthrough
CT: control target
= control target key end

     0   :  { %11 = vsyncpa [#allocation4], 0  ;;  %s6092_s0 = inlined_call_operand.vmem [shape: f32[2,32,256], index: 0, kind: input, shape index: {}]   ;;  %s6093_s1 = inlined_call_operand.vmem [shape: f32[96,32], index: 1, kind: input, shape index: {}]   ;;  %s6094_s2 = inlined_call_operand.vmem [shape: f32[27,32,1], index: 2, kind: input, shape index: {}]   ;;  %s6095_s3 = inlined_call_operand.vmem [shape: f32[9,1,256], index: 3, kind: input, shape index: {}]   ;;  %s6096_s4 = inlined_call_operand.vmem [shape: f32[32,32], index: 4, kind: input, shape index: {}]   ;;  %s6097_s5 = inlined_call_operand.vmem [shape: f32[32,32], index: 5, kind: input, shape index: {}]   ;;  %s6098_s6 = inlined_call_operand.hbm [shape: f32[2,32,256], index: 6, kind: output, shape index: {}]  }
   0x1   :  { %13 = vsyncpa [#allocation4 + $0x1], 0  ;;  %s3340_s21 = smov 0   ;;  %s3342_s22 = smov 0  }
   0x2   :  { %s3344_s23 = smov 0   ;;  %s3346_s24 = smov 0  }
   0x3 LB: > { %s3361_s25 = sadd.s32 4294967295, %s3293_s24   ;;  %s2984_s26 = sadd.s32 4294967294, %s3293_s24   ;;  %s3293_s24 = sphi %s3346_s24, %s6569_s24   ;;  %s3289_s23 = sphi %s3344_s23, %s6568_s23   ;;  %s3285_s22 = sphi %s3342_s22, %s6567_s22   ;;  %s3281_s21 = sphi %s3340_s21, %s6566_s21  }
   0x4   : > { %s3365_s27 = sadd.s32 1, %s3293_s24   ;;  %s157_s28 = sadd.s32 1, %s3289_s23 }
   0x5   : > { %s154_s29 = ssub.s32 %s3293_s24, %s3365_s27  ;;  %p167_p0 = scmp.ne.s32.totalorder %s3289_s23, %s3285_s22 }
   0x6   : > { %p155_p1 = scmp.eq.s32.totalorder %s154_s29, 0  ;;  %p168_p2 = scmp.eq.s32.totalorder %s3361_s25, 1 }
   0x7   : > { %p173_p3 = scmp.ne.s32.totalorder %s3285_s22, %s3281_s21  ;;  %p174_p4 = scmp.eq.s32.totalorder %s2984_s26, 1 }
   0x8   : > { %s3376_s30 = scalar_select %p155_p1, %s3289_s23, %s157_s28  }
   0x9   : > { %p3378_p5 = por %p168_p2, %p167_p0  ;;  %p3382_p6 = por %p174_p4, %p173_p3 }
   0xa   : > { %p2987_p7 = scmp.ge.s32.totalorder %s3293_s24, 1  ;;  %p215_p8 = scmp.lt.s32.totalorder %s3293_s24, 3 }
   0xc   : > { %p216_p9 = pnand %p2987_p7, %p215_p8 }
   0xe   : > { %219 = sbr.rel (%p216_p9) target bundleno = 1485 (0x5cd), region = 44 }
  0x13   : > { %p245_p10 = scmp.lt.s32.totalorder %s3361_s25, 1  ;;  %v2999_v0 = vld [vmem:[%s6094_s2 + $0x180] sm:$0xff]  ;;  %v3295_v1 = vmov 0   ;;  %v3001_v2 = vld [vmem:[%s6094_s2 + $0x190] sm:$0xff]  ;;  %v3000_v7 = vld [vmem:[%s6094_s2 + $0x188] sm:$0xff]  ;;  %vm262_vm0 = vcmask 261120  }
  0x14   : > { %3212 = vset.pattern.permute.xlu0 %v3295_v1  ;;  %3213 = vset.pattern.permute.xlu1 %v3295_v1  ;;  %v3002_v12 = vld [vmem:[%s6094_s2 + $0x198] sm:$0xff]  ;;  %v258_v13 = vld [vmem:[%s6093_s1] sm:$0xff]  ;;  %v394_v15 = vld [vmem:[%s6094_s2 + $0x8] sm:$0xff]  ;;  %s3297_s18 = smov 17   ;;  %s3298_s19 = smov 15  }
  0x15   : > { %s246_s11 = scalar_select %p245_p10, %s3361_s25, 1  ;;  %340 = vperm.xlu0 %3212, %v2999_v0   ;;  %3214 = vset.pattern.permute.xlu2 %v3295_v1  ;;  %v393_v14 = vld [vmem:[%s6094_s2] sm:$0xff]  ;;  %v259_v16 = vld [vmem:[%s6093_s1 + $0x8] sm:$0xff]  ;;  %v396_v17 = vld [vmem:[%s6094_s2 + $0x18] sm:$0xff] }
  0x16   : > { %350 = vperm.xlu1 %3213, %v3001_v2   ;;  %v3004_v18 = vld [vmem:[%s6094_s2 + $0x68] sm:$0xff]  ;;  %v260_v19 = vld [vmem:[%s6093_s1 + $0x10] sm:$0xff]  ;;  %v3003_v20 = vld [vmem:[%s6094_s2 + $0x60] sm:$0xff]  ;;  %s3299_s20 = smov 1   ;;  %s3300_s26 = smov 127  }
  0x17   : > { %s3161_s14 = sshll.u32 %s246_s11, 6  ;;  %v3009_v21 = vld [vmem:[%s6094_s2 + $0xc8] sm:$0xff]  ;;  %v261_v22 = vld [vmem:[%s6093_s1 + $0x18] sm:$0xff]  ;;  %v395_v25 = vld [vmem:[%s6094_s2 + $0x10] sm:$0xff]  ;;  %s3301_s13 = smov 113  }
  0x18   : > { %s249_s17 = scalar_lea.vmem %s6092_s0, %s3161_s14  ;;  %v3006_v23 = vld [vmem:[%s6094_s2 + $0x78] sm:$0xff]  ;;  %v3014_v24 = vld [vmem:[%s6094_s2 + $0x128] sm:$0xff]  ;;  %409 = vperm.xlu2 %3214, %v395_v25   ;;  %v3008_v26 = vld [vmem:[%s6094_s2 + $0xc0] sm:$0xff]  ;;  %s3302_s29 = smov 112  }
  0x19   : > { %v256_v3 = vld [vmem:[%s249_s17 + $0x30] sm:$0xff]  ;;  %v257_v4 = vld [vmem:[%s249_s17 + $0x38] sm:$0xff]  ;;  %v254_v5 = vld [vmem:[%s249_s17 + $0x20] sm:$0xff]  ;;  %s3303_s9 = smov 111   ;;  %s3162_s14 = sshll.u32 %s3361_s25, 6 }
  0x1a   : > { %287 = vmatpush.msra.mxu0 %v256_v3  ;;  %316 = vmatpush.msra.mxu1 %v257_v4  ;;  %v255_v6 = vld [vmem:[%s249_s17 + $0x28] sm:$0xff]  ;;  %v252_v8 = vld [vmem:[%s249_s17 + $0x10] sm:$0xff]  ;;  %v253_v9 = vld [vmem:[%s249_s17 + $0x18] sm:$0xff]  ;;  %s3251_s11 = scalar_lea.hbm %s6098_s6, 128 }
  0x1b   : > { %1050 = vmatpush.msra.mxu2 %v256_v3  ;;  %1079 = vmatpush.msra.mxu3 %v257_v4  ;;  %v250_v10 = vld [vmem:[%s249_s17] sm:$0xff]  ;;  %v251_v11 = vld [vmem:[%s249_s17 + $0x8] sm:$0xff]  ;;  %v3005_v27 = vld [vmem:[%s6094_s2 + $0x70] sm:$0xff]  ;;  %s3296_s17 = smov 16  }
  0x1c   : > { %288 = vmatpush.msra.mxu0 %v254_v5  ;;  %317 = vmatpush.msra.mxu1 %v255_v6  ;;  %v3011_v28 = vld [vmem:[%s6094_s2 + $0xd8] sm:$0xff]  ;;  %v3010_v29 = vld [vmem:[%s6094_s2 + $0xd0] sm:$0xff]  ;;  %v3013_v30 = vld [vmem:[%s6094_s2 + $0x120] sm:$0xff] }
  0x1d   : > { %345 = vperm.xlu0 %3212, %v3000_v7   ;;  %1051 = vmatpush.msra.mxu2 %v254_v5  ;;  %v3015_v31 = vld [vmem:[%s6094_s2 + $0x130] sm:$0xff]  ;;  %v3016_v32 = vld [vmem:[%s6094_s2 + $0x138] sm:$0xff]  ;;  %v1022_v38 = vld [vmem:[%s6093_s1 + $0x20] sm:$0xff] }
  0x1e   : > { %289 = vmatpush.msra.mxu0 %v252_v8  ;;  %318 = vmatpush.msra.mxu1 %v253_v9  ;;  %v1023_v41 = vld [vmem:[%s6093_s1 + $0x28] sm:$0xff]  ;;  %v1024_v44 = vld [vmem:[%s6093_s1 + $0x30] sm:$0xff]  ;;  %v1025_v48 = vld [vmem:[%s6093_s1 + $0x38] sm:$0xff] }
  0x1f   : > { %355 = vperm.xlu1 %3213, %v3002_v12   ;;  %1080 = vmatpush.msra.mxu3 %v255_v6  ;;  %v3019_v49 = vld [vmem:[%s6094_s2 + $0x1e8] sm:$0xff]  ;;  %v3018_v59 = vld [vmem:[%s6094_s2 + $0x1e0] sm:$0xff]  ;;  %v3020_v61 = vld [vmem:[%s6094_s2 + $0x1f0] sm:$0xff] }
  0x20   : > { %290 = vmatpush.msra.mxu0 %v250_v10  ;;  %319 = vmatpush.msra.mxu1 %v251_v11  ;;  %v3021_v63 = vld [vmem:[%s6094_s2 + $0x1f8] sm:$0xff]  ;;  %v3028_v25 = vld [vmem:[%s6094_s2 + $0x2a0] sm:$0xff] }
  0x21   : > { %2991 = vmatmul.msk.f32.vlgmr.msra.gmra.mxu0 %vm262_vm0, %v258_v13  ;;  %2995 = vmatmul.msk.f32.vlgmr.msra.gmra.mxu1 %vm262_vm0, %v258_v13 }
  0x22   : > { %1052 = vmatpush.msra.mxu2 %v252_v8  ;;  %1081 = vmatpush.msra.mxu3 %v253_v9 }
  0x23   : > { %1826 = vmatpush.msrb.mxu1 %v257_v4  ;;  %1797 = vmatpush.msrb.mxu0 %v256_v3 }
  0x24   : > { %1053 = vmatpush.msra.mxu2 %v250_v10  ;;  %1082 = vmatpush.msra.mxu3 %v251_v11 }
  0x25   : > { %399 = vperm.xlu0 %3212, %v393_v14   ;;  %1827 = vmatpush.msrb.mxu1 %v255_v6  ;;  %v3026_v14 = vld [vmem:[%s6094_s2 + $0x258] sm:$0xff] }
  0x26   : > { %1798 = vmatpush.msrb.mxu0 %v254_v5  ;;  %489 = vperm.xlu2 %3214, %v3005_v27  }
  0x27   : > { %404 = vperm.xlu1 %3213, %v394_v15   ;;  %1828 = vmatpush.msrb.mxu1 %v253_v9 }
  0x28   : > { %1799 = vmatpush.msrb.mxu0 %v252_v8  ;;  %3038 = vmatmul.msk.f32.vlgmr.msra.gmra.mxu2 %vm262_vm0, %v1022_v38 }
  0x29   : > { %2996 = vmatmul.msk.f32.gmra.mxu1 %vm262_vm0, %v259_v16  ;;  %2992 = vmatmul.msk.f32.gmra.mxu0 %vm262_vm0, %v259_v16 }
  0x2a   : > { %1829 = vmatpush.msrb.mxu1 %v251_v11  ;;  %1800 = vmatpush.msrb.mxu0 %v250_v10  ;;  %v3023_v10 = vld [vmem:[%s6094_s2 + $0x240] sm:$0xff] }
  0x2b   : > { %3042 = vmatmul.msk.f32.vlgmr.msra.gmra.mxu3 %vm262_vm0, %v1022_v38 }
  0x2d   : > { %414 = vperm.xlu0 %3212, %v396_v17  }
  0x2e   : > { %570 = vperm.xlu2 %3214, %v3010_v29   ;;  %v3031_v29 = vld [vmem:[%s6094_s2 + $0x2b8] sm:$0xff] }
  0x2f   : > { %484 = vperm.xlu1 %3213, %v3004_v18  }
  0x30   : > { %3039 = vmatmul.msk.f32.gmra.mxu2 %vm262_vm0, %v1023_v41 }
  0x31   : > { %2997 = vmatmul.msk.f32.gmra.mxu1 %vm262_vm0, %v260_v19  ;;  %2993 = vmatmul.msk.f32.gmra.mxu0 %vm262_vm0, %v260_v19 }
  0x33   : > { %3043 = vmatmul.msk.f32.gmra.mxu3 %vm262_vm0, %v1023_v41 }
  0x35   : > { %479 = vperm.xlu0 %3212, %v3003_v20  }
  0x36   : > { %651 = vperm.xlu2 %3214, %v3015_v31  }
  0x37   : > { %565 = vperm.xlu1 %3213, %v3009_v21   ;;  %v3024_v21 = vld [vmem:[%s6094_s2 + $0x248] sm:$0xff] }
  0x38   : > { %3040 = vmatmul.msk.f32.gmra.mxu2 %vm262_vm0, %v1024_v44 }
  0x39   : > { %2994 = vmatmul.msk.f32.gmra.mxu0 %vm262_vm0, %v261_v22  ;;  %2998 = vmatmul.msk.f32.gmra.mxu1 %vm262_vm0, %v261_v22 }
  0x3b   : > { %3044 = vmatmul.msk.f32.gmra.mxu3 %vm262_vm0, %v1024_v44 }
  0x3d   : > { %494 = vperm.xlu0 %3212, %v3006_v23  }
  0x3f   : > { %646 = vperm.xlu1 %3213, %v3014_v24  }
  0x40   : > { %3041 = vmatmul.msk.f32.gmra.mxu2 %vm262_vm0, %v1025_v48 }
  0x43   : > { %3045 = vmatmul.msk.f32.gmra.mxu3 %vm262_vm0, %v1025_v48 }
  0x45   : > { %560 = vperm.xlu0 %3212, %v3008_v26  }
  0x4d   : > { %575 = vperm.xlu0 %3212, %v3011_v28  }
  0x55   : > { %641 = vperm.xlu0 %3212, %v3013_v30   ;;  %v3025_v30 = vld [vmem:[%s6094_s2 + $0x250] sm:$0xff] }
  0x5d   : > { %656 = vperm.xlu0 %3212, %v3016_v32  }
  0x72   : > { %v3546_v45 = vpop.permute.xlu2 %409 }
  0x73   : > { %6254 = vst [vmem:[#allocation6_spill] sm:$0xff] %v3546_v45 }
  0x80   : > { %v3566_v50 = vpop.permute.xlu2 %489 }
  0x81   : > { %6256 = vst [vmem:[#allocation8_spill] sm:$0xff] %v3566_v50 }
  0x87   : > { %v3495_v36 = vpop.permute.xlu0 %340 }
  0x88   : > { %v3550_v47 = vpop.permute.xlu1 %350  ;;  %v3576_v53 = vpop.permute.xlu2 %570 }
  0x89   : > { %6257 = vst [vmem:[#allocation9_spill] sm:$0xff] %v3576_v53 }
  0x8f   : > { %v3514_v39 = vpop.permute.xlu0 %345 }
  0x90   : > { %v3596_v57 = vpop.permute.xlu2 %651 }
  0x91   : > { %v3574_v52 = vpop.permute.xlu1 %355  ;;  %6259 = vst [vmem:[#allocation11_spill] sm:$0xff] %v3596_v57  ;;  %v3047_v57 = vld [vmem:[%s6094_s2 + $0x1a8] sm:$0xff] }
  0x97   : > { %v3531_v42 = vpop.permute.xlu0 %399 }
  0x99   : > { %v3586_v55 = vpop.permute.xlu1 %404 }
  0x9e   : > { %v3473_v33 = vpop.f32.mrf.mxu0  ;;  %v3475_v34 = vpop.f32.mrf.mxu1 }
  0x9f   : > { %447 = vrot.lane.b32.xlu1 %v3473_v33, %s3296_s17  ;;  %366 = vrot.lane.b32.xlu2 %v3473_v33, %s3297_s18  ;;  %v3548_v46 = vpop.permute.xlu0 %414 }
  0xa0   : > { %6255 = vst [vmem:[#allocation7_spill] sm:$0xff] %v3548_v46 }
  0xa1   : > { %v3603_v60 = vpop.permute.xlu1 %484 }
  0xa6   : > { %v3481_v35 = vpop.f32.mrf.mxu1  ;;  %v3518_v40 = vpop.f32.mrf.mxu0 }
  0xa7   : > { %376 = vrot.lane.b32.xlu0 %v3481_v35, %s3297_s18  ;;  %528 = vrot.lane.b32.xlu1 %v3473_v33, %s3298_s19  ;;  %v3568_v51 = vpop.permute.xlu0 %479 }
  0xa8   : > { %374 = vrot.lane.b32.xlu2 %v3475_v34, %s3297_s18 }
  0xa9   : > { %v3617_v1 = vpop.permute.xlu1 %565 }
  0xae   : > { %v3503_v37 = vpop.f32.mrf.mxu1  ;;  %v3533_v43 = vpop.f32.mrf.mxu0 }
  0xaf   : > { %457 = vrot.lane.b32.xlu0 %v3481_v35, %s3296_s17  ;;  %609 = vrot.lane.b32.xlu1 %v3473_v33, %s3299_s20  ;;  %v3584_v54 = vpop.permute.xlu0 %494 }
  0xb0   : > { %455 = vrot.lane.b32.xlu2 %v3475_v34, %s3296_s17  ;;  %6258 = vst [vmem:[#allocation10_spill] sm:$0xff] %v3584_v54  ;;  %v3783_v54 = vpop.f32.mrf.mxu2 }
  0xb1   : > { %v3635_v5 = vpop.permute.xlu1 %646 }
  0xb2   : > { %6261 = vst [vmem:[#allocation13_spill] sm:$0xff] %v3635_v5  ;;  %v3082_v5 = vld [vmem:[%s6094_s2 + $0x2d8] sm:$0xff] }
  0xb6   : > { %v3588_v56 = vpop.f32.mrf.mxu0  ;;  %v3619_v2 = vpop.f32.mrf.mxu1 }
  0xb7   : > { %538 = vrot.lane.b32.xlu0 %v3481_v35, %s3298_s19  ;;  %690 = vrot.lane.b32.xlu1 %v3473_v33, %s3300_s26  ;;  %v3598_v58 = vpop.permute.xlu0 %560 }
  0xb8   : > { %536 = vrot.lane.b32.xlu2 %v3475_v34, %s3298_s19  ;;  %v3800_v46 = vpop.f32.mrf.mxu2 }
  0xb9   : > { %6288 = vst [vmem:[#allocation40_spill] sm:$0xff] %v3800_v46 }
  0xbf   : > { %619 = vrot.lane.b32.xlu0 %v3481_v35, %s3299_s20  ;;  %378 = vrot.lane.b32.xlu1 %v3503_v37, %s3297_s18  ;;  %v3615_v0 = vpop.permute.xlu0 %575 }
  0xc0   : > { %617 = vrot.lane.b32.xlu2 %v3475_v34, %s3299_s20  ;;  %6260 = vst [vmem:[#allocation12_spill] sm:$0xff] %v3615_v0 }
  0xc7   : > { %700 = vrot.lane.b32.xlu0 %v3481_v35, %s3300_s26  ;;  %459 = vrot.lane.b32.xlu1 %v3503_v37, %s3296_s17  ;;  %v3627_v4 = vpop.permute.xlu0 %641 }
  0xc8   : > { %698 = vrot.lane.b32.xlu2 %v3475_v34, %s3300_s26 }
  0xcf   : > { %540 = vrot.lane.b32.xlu1 %v3503_v37, %s3298_s19  ;;  %370 = vrot.lane.b32.xlu0 %v3533_v43, %s3297_s18  ;;  %v3645_v7 = vpop.permute.xlu0 %656 }
  0xd0   : > { %368 = vrot.lane.b32.xlu2 %v3518_v40, %s3297_s18  ;;  %6262 = vst [vmem:[#allocation14_spill] sm:$0xff] %v3645_v7 }
  0xd7   : > { %621 = vrot.lane.b32.xlu1 %v3503_v37, %s3299_s20  ;;  %451 = vrot.lane.b32.xlu0 %v3533_v43, %s3296_s17 }
  0xd8   : > { %449 = vrot.lane.b32.xlu2 %v3518_v40, %s3296_s17 }
  0xdf   : > { %727 = vperm.xlu1 %3213, %v3019_v49   ;;  %532 = vrot.lane.b32.xlu0 %v3533_v43, %s3298_s19  ;;  %v3029_v49 = vld [vmem:[%s6094_s2 + $0x2a8] sm:$0xff] }
  0xe0   : > { %530 = vrot.lane.b32.xlu2 %v3518_v40, %s3298_s19 }
  0xe7   : > { %702 = vrot.lane.b32.xlu1 %v3503_v37, %s3300_s26  ;;  %613 = vrot.lane.b32.xlu0 %v3533_v43, %s3299_s20 }
  0xe8   : > { %611 = vrot.lane.b32.xlu2 %v3518_v40, %s3299_s20 }
  0xef   : > { %694 = vrot.lane.b32.xlu0 %v3533_v43, %s3300_s26  ;;  %372 = vrot.lane.b32.xlu1 %v3588_v56, %s3297_s18 }
  0xf0   : > { %692 = vrot.lane.b32.xlu2 %v3518_v40, %s3300_s26 }
  0xf7   : > { %722 = vperm.xlu0 %3212, %v3018_v59   ;;  %453 = vrot.lane.b32.xlu1 %v3588_v56, %s3296_s17 }
  0xf8   : > { %732 = vperm.xlu2 %3214, %v3020_v61  }
  0xf9   : > { %v3610_v62 = vpop.permute.xlu2 %366 }
  0xff   : > { %737 = vperm.xlu0 %3212, %v3021_v63   ;;  %534 = vrot.lane.b32.xlu1 %v3588_v56, %s3298_s19 }
 0x100   : > { %380 = vrot.lane.b32.xlu2 %v3619_v2, %s3297_s18 }
 0x102   : > { %v3625_v3 = vpop.permute.xlu2 %374 }
 0x107   : > { %775 = vrot.lane.b32.xlu0 %v3533_v43, %s3301_s13  ;;  %615 = vrot.lane.b32.xlu1 %v3588_v56, %s3299_s20 }
 0x108   : > { %461 = vrot.lane.b32.xlu2 %v3619_v2, %s3296_s17 }
 0x10a   : > { %v3637_v6 = vpop.permute.xlu2 %455 }
 0x10f   : > { %781 = vrot.lane.b32.xlu0 %v3481_v35, %s3301_s13  ;;  %696 = vrot.lane.b32.xlu1 %v3588_v56, %s3300_s26 }
 0x110   : > { %542 = vrot.lane.b32.xlu2 %v3619_v2, %s3298_s19 }
 0x111   : > { %v3647_v8 = vpop.permute.xlu1 %447 }
 0x112   : > { %v3649_v9 = vpop.permute.xlu2 %536 }
 0x117   : > { %803 = vperm.xlu0 %3212, %v3023_v10   ;;  %771 = vrot.lane.b32.xlu1 %v3473_v33, %s3301_s13  ;;  %v3033_v10 = vld [vmem:[%s6094_s2 + $0x300] sm:$0xff] }
 0x118   : > { %623 = vrot.lane.b32.xlu2 %v3619_v2, %s3299_s20 }
 0x119   : > { %v3658_v11 = vpop.permute.xlu0 %376  ;;  %v3660_v12 = vpop.permute.xlu1 %528 }
 0x11a   : > { %v3662_v13 = vpop.permute.xlu2 %617 }
 0x11f   : > { %818 = vperm.xlu0 %3212, %v3026_v14   ;;  %777 = vrot.lane.b32.xlu1 %v3588_v56, %s3301_s13 }
 0x120   : > { %704 = vrot.lane.b32.xlu2 %v3619_v2, %s3300_s26 }
 0x121   : > { %v3671_v15 = vpop.permute.xlu0 %457  ;;  %v3673_v16 = vpop.permute.xlu1 %609 }
 0x122   : > { %v3675_v17 = vpop.permute.xlu2 %698 }
 0x123   : > { %6263 = vst [vmem:[#allocation15_spill] sm:$0xff] %v3675_v17 }
 0x127   : > { %856 = vrot.lane.b32.xlu0 %v3533_v43, %s3302_s29  ;;  %783 = vrot.lane.b32.xlu1 %v3503_v37, %s3301_s13 }
 0x128   : > { %773 = vrot.lane.b32.xlu2 %v3518_v40, %s3301_s13 }
 0x129   : > { %v3683_v18 = vpop.permute.xlu0 %538  ;;  %v3685_v19 = vpop.permute.xlu1 %690 }
 0x12a   : > { %6264 = vst [vmem:[#allocation16_spill] sm:$0xff] %v3685_v19  ;;  %v3687_v20 = vpop.permute.xlu2 %368  ;;  %v3048_v19 = vld [vmem:[%s6094_s2 + $0x1b0] sm:$0xff] }
 0x12f   : > { %862 = vrot.lane.b32.xlu0 %v3481_v35, %s3302_s29  ;;  %808 = vperm.xlu1 %3213, %v3024_v21  }
 0x130   : > { %779 = vrot.lane.b32.xlu2 %v3475_v34, %s3301_s13 }
 0x131   : > { %v3696_v22 = vpop.permute.xlu0 %619  ;;  %v3698_v23 = vpop.permute.xlu1 %378 }
 0x132   : > { %6265 = vst [vmem:[#allocation17_spill] sm:$0xff] %v3696_v22  ;;  %v3700_v24 = vpop.permute.xlu2 %449 }
 0x133   : > { %6266 = vst [vmem:[#allocation18_spill] sm:$0xff] %v3698_v23 }
 0x137   : > { %884 = vperm.xlu0 %3212, %v3028_v25   ;;  %852 = vrot.lane.b32.xlu1 %v3473_v33, %s3302_s29 }
 0x138   : > { %785 = vrot.lane.b32.xlu2 %v3619_v2, %s3301_s13 }
 0x139   : > { %v3709_v26 = vpop.permute.xlu0 %700  ;;  %v3711_v27 = vpop.permute.xlu1 %459 }
 0x13a   : > { %6267 = vst [vmem:[#allocation19_spill] sm:$0xff] %v3709_v26  ;;  %v3713_v28 = vpop.permute.xlu2 %530 }
 0x13b   : > { %6268 = vst [vmem:[#allocation20_spill] sm:$0xff] %v3711_v27 }
 0x13f   : > { %899 = vperm.xlu0 %3212, %v3031_v29   ;;  %858 = vrot.lane.b32.xlu1 %v3588_v56, %s3302_s29  ;;  %v3036_v29 = vld [vmem:[%s6094_s2 + $0x318] sm:$0xff] }
 0x140   : > { %813 = vperm.xlu2 %3214, %v3025_v30   ;;  %v3030_v30 = vld [vmem:[%s6094_s2 + $0x2b0] sm:$0xff] }
 0x141   : > { %v3723_v31 = vpop.permute.xlu1 %540  ;;  %v3725_v32 = vpop.permute.xlu0 %370 }
 0x142   : > { %6269 = vst [vmem:[#allocation21_spill] sm:$0xff] %v3723_v31  ;;  %v3727_v38 = vpop.permute.xlu2 %611 }
 0x143   : > { %6270 = vst [vmem:[#allocation22_spill] sm:$0xff] %v3725_v32 }
 0x144   : > { %6271 = vst [vmem:[#allocation23_spill] sm:$0xff] %v3727_v38 }
 0x147   : > { %937 = vrot.lane.b32.xlu0 %v3533_v43, %s3303_s9  ;;  %864 = vrot.lane.b32.xlu1 %v3503_v37, %s3302_s29 }
 0x148   : > { %854 = vrot.lane.b32.xlu2 %v3518_v40, %s3302_s29 }
 0x149   : > { %v3735_v41 = vpop.permute.xlu1 %621  ;;  %v3737_v44 = vpop.permute.xlu0 %451 }
 0x14a   : > { %6272 = vst [vmem:[#allocation24_spill] sm:$0xff] %v3735_v41  ;;  %v3739_v48 = vpop.permute.xlu2 %692 }
 0x14b   : > { %6273 = vst [vmem:[#allocation25_spill] sm:$0xff] %v3737_v44 }
 0x14c   : > { %6274 = vst [vmem:[#allocation26_spill] sm:$0xff] %v3739_v48 }
 0x14f   : > { %943 = vrot.lane.b32.xlu0 %v3481_v35, %s3303_s9  ;;  %889 = vperm.xlu1 %3213, %v3029_v49   ;;  %v3773_v49 = vpop.f32.mrf.mxu3 }
 0x150   : > { %860 = vrot.lane.b32.xlu2 %v3475_v34, %s3302_s29 }
 0x151   : > { %v3748_v59 = vpop.permute.xlu1 %727  ;;  %v3750_v61 = vpop.permute.xlu0 %532 }
 0x152   : > { %6275 = vst [vmem:[#allocation27_spill] sm:$0xff] %v3748_v59  ;;  %v3752_v63 = vpop.permute.xlu2 %732 }
 0x153   : > { %6276 = vst [vmem:[#allocation28_spill] sm:$0xff] %v3750_v61  ;;  %v3072_v61 = vld [vmem:[%s6094_s2 + $0x218] sm:$0xff] }
 0x154   : > { %6277 = vst [vmem:[#allocation29_spill] sm:$0xff] %v3752_v63 }
 0x157   : > { %965 = vperm.xlu0 %3212, %v3033_v10   ;;  %933 = vrot.lane.b32.xlu1 %v3473_v33, %s3303_s9 }
 0x158   : > { %866 = vrot.lane.b32.xlu2 %v3619_v2, %s3302_s29 }
 0x159   : > { %v3761_v14 = vpop.permute.xlu1 %702  ;;  %v3763_v21 = vpop.permute.xlu0 %613 }
 0x15a   : > { %6278 = vst [vmem:[#allocation30_spill] sm:$0xff] %v3761_v14  ;;  %v3765_v25 = vpop.permute.xlu2 %380  ;;  %v3849_v14 = vpop.f32.mrf.mxu2 }
 0x15b   : > { %6279 = vst [vmem:[#allocation31_spill] sm:$0xff] %v3763_v21  ;;  %v3069_v21 = vld [vmem:[%s6094_s2 + $0x200] sm:$0xff] }
 0x15c   : > { %6280 = vst [vmem:[#allocation32_spill] sm:$0xff] %v3765_v25  ;;  %v3046_v25 = vld [vmem:[%s6094_s2 + $0x1a0] sm:$0xff] }
 0x15f   : > { %980 = vperm.xlu0 %3212, %v3036_v29   ;;  %939 = vrot.lane.b32.xlu1 %v3588_v56, %s3303_s9  ;;  %v3792_v29 = vpop.f32.mrf.mxu3 }
 0x160   : > { %894 = vperm.xlu2 %3214, %v3030_v30   ;;  %6284 = vst [vmem:[#allocation36_spill] sm:$0xff] %v3792_v29 }
 0x161   : > { %v3777_v10 = vpop.permute.xlu0 %694  ;;  %v3779_v7 = vpop.permute.xlu1 %372 }
 0x162   : > { %6281 = vst [vmem:[#allocation33_spill] sm:$0xff] %v3777_v10  ;;  %v3781_v0 = vpop.permute.xlu2 %461  ;;  %v3049_v10 = vld [vmem:[%s6094_s2 + $0x1b8] sm:$0xff] }
 0x163   : > { %6282 = vst [vmem:[#allocation34_spill] sm:$0xff] %v3779_v7  ;;  %v3035_v7 = vld [vmem:[%s6094_s2 + $0x310] sm:$0xff] }
 0x164   : > { %6283 = vst [vmem:[#allocation35_spill] sm:$0xff] %v3781_v0 }
 0x167   : > { %1113 = vperm.xlu0 %3212, %v3048_v19   ;;  %945 = vrot.lane.b32.xlu1 %v3503_v37, %s3303_s9  ;;  %v3034_v19 = vld [vmem:[%s6094_s2 + $0x308] sm:$0xff] }
 0x168   : > { %935 = vrot.lane.b32.xlu2 %v3518_v40, %s3303_s9 }
 0x169   : > { %v3794_v30 = vpop.permute.xlu0 %722  ;;  %v3796_v17 = vpop.permute.xlu1 %453 }
 0x16a   : > { %6285 = vst [vmem:[#allocation37_spill] sm:$0xff] %v3794_v30  ;;  %v3798_v0 = vpop.permute.xlu2 %542 }
 0x16b   : > { %6286 = vst [vmem:[#allocation38_spill] sm:$0xff] %v3796_v17 }
 0x16c   : > { %6287 = vst [vmem:[#allocation39_spill] sm:$0xff] %v3798_v0  ;;  %v3815_v0 = vpop.f32.mrf.mxu3 }
 0x16f   : > { %1131 = vrot.lane.b32.xlu0 %v3800_v46, %s3297_s18  ;;  %970 = vperm.xlu1 %3213, %v3034_v19  }
 0x170   : > { %941 = vrot.lane.b32.xlu2 %v3475_v34, %s3303_s9 }
 0x171   : > { %v3809_v63 = vpop.permute.xlu0 %737  ;;  %v3811_v30 = vpop.permute.xlu1 %534 }
 0x172   : > { %6289 = vst [vmem:[#allocation41_spill] sm:$0xff] %v3809_v63  ;;  %v3813_v17 = vpop.permute.xlu2 %623 }
 0x173   : > { %6290 = vst [vmem:[#allocation42_spill] sm:$0xff] %v3811_v30 }
 0x174   : > { %6291 = vst [vmem:[#allocation43_spill] sm:$0xff] %v3813_v17  ;;  %v3830_v17 = vpop.f32.mrf.mxu3 }
 0x177   : > { %1137 = vrot.lane.b32.xlu0 %v3773_v49, %s3297_s18  ;;  %1103 = vperm.xlu1 %3213, %v3046_v25  }
 0x178   : > { %947 = vrot.lane.b32.xlu2 %v3619_v2, %s3303_s9 }
 0x179   : > { %v3824_v19 = vpop.permute.xlu0 %775  ;;  %v3826_v63 = vpop.permute.xlu1 %615 }
 0x17a   : > { %6292 = vst [vmem:[#allocation44_spill] sm:$0xff] %v3824_v19  ;;  %v3828_v30 = vpop.permute.xlu2 %704  ;;  %v3052_v19 = vld [vmem:[%s6094_s2 + $0x30] sm:$0xff] }
 0x17b   : > { %6293 = vst [vmem:[#allocation45_spill] sm:$0xff] %v3826_v63 }
 0x17c   : > { %6294 = vst [vmem:[#allocation46_spill] sm:$0xff] %v3828_v30 }
 0x17f   : > { %1143 = vrot.lane.b32.xlu0 %v3830_v17, %s3297_s18  ;;  %1118 = vperm.xlu1 %3213, %v3049_v10  }
 0x180   : > { %975 = vperm.xlu2 %3214, %v3035_v7  }
 0x181   : > { %v3840_v25 = vpop.permute.xlu0 %781  ;;  %v3842_v63 = vpop.permute.xlu1 %696 }
 0x182   : > { %6295 = vst [vmem:[#allocation47_spill] sm:$0xff] %v3840_v25  ;;  %v3844_v30 = vpop.permute.xlu2 %773 }
 0x183   : > { %6296 = vst [vmem:[#allocation48_spill] sm:$0xff] %v3842_v63 }
 0x184   : > { %6297 = vst [vmem:[#allocation49_spill] sm:$0xff] %v3844_v30 }
 0x187   : > { %1170 = vperm.xlu0 %3212, %v3052_v19   ;;  %1133 = vrot.lane.b32.xlu1 %v3849_v14, %s3297_s18 }
 0x188   : > { %1108 = vperm.xlu2 %3214, %v3047_v57  }
 0x189   : > { %v3856_v7 = vpop.permute.xlu0 %803  ;;  %v3858_v10 = vpop.permute.xlu1 %771 }
 0x18a   : > { %6298 = vst [vmem:[#allocation50_spill] sm:$0xff] %v3856_v7  ;;  %v3860_v63 = vpop.permute.xlu2 %779  ;;  %v3874_v7 = vpop.f32.mrf.mxu2 }
 0x18b   : > { %6299 = vst [vmem:[#allocation51_spill] sm:$0xff] %v3858_v10  ;;  %v3050_v10 = vld [vmem:[%s6094_s2 + $0x20] sm:$0xff] }
 0x18c   : > { %6300 = vst [vmem:[#allocation52_spill] sm:$0xff] %v3860_v63 }
 0x18f   : > { %1210 = vrot.lane.b32.xlu0 %v3800_v46, %s3296_s17  ;;  %1139 = vrot.lane.b32.xlu1 %v3792_v29, %s3297_s18 }
 0x190   : > { %1129 = vrot.lane.b32.xlu2 %v3783_v54, %s3297_s18 }
 0x191   : > { %v3868_v19 = vpop.permute.xlu0 %818  ;;  %v3870_v57 = vpop.permute.xlu1 %777 }
 0x192   : > { %6301 = vst [vmem:[#allocation53_spill] sm:$0xff] %v3868_v19  ;;  %v3872_v30 = vpop.permute.xlu2 %785 }
 0x193   : > { %6302 = vst [vmem:[#allocation54_spill] sm:$0xff] %v3870_v57 }
 0x194   : > { %6303 = vst [vmem:[#allocation55_spill] sm:$0xff] %v3872_v30  ;;  %v3053_v30 = vld [vmem:[%s6094_s2 + $0x38] sm:$0xff] }
 0x197   : > { %1216 = vrot.lane.b32.xlu0 %v3773_v49, %s3296_s17  ;;  %1160 = vperm.xlu1 %3213, %v3050_v10  }
 0x198   : > { %1135 = vrot.lane.b32.xlu2 %v3874_v7, %s3297_s18 }
 0x199   : > { %v3883_v63 = vpop.permute.xlu0 %856  ;;  %v3885_v19 = vpop.permute.xlu1 %783 }
 0x19a   : > { %6304 = vst [vmem:[#allocation56_spill] sm:$0xff] %v3883_v63  ;;  %v3887_v57 = vpop.permute.xlu2 %813 }
 0x19b   : > { %6305 = vst [vmem:[#allocation57_spill] sm:$0xff] %v3885_v19  ;;  %v3051_v19 = vld [vmem:[%s6094_s2 + $0x28] sm:$0xff] }
 0x19c   : > { %6306 = vst [vmem:[#allocation58_spill] sm:$0xff] %v3887_v57  ;;  %v3056_v57 = vld [vmem:[%s6094_s2 + $0x90] sm:$0xff] }
 0x19f   : > { %1222 = vrot.lane.b32.xlu0 %v3830_v17, %s3296_s17  ;;  %1175 = vperm.xlu1 %3213, %v3053_v30  }
 0x1a0   : > { %1141 = vrot.lane.b32.xlu2 %v3815_v0, %s3297_s18 }
 0x1a1   : > { %v3896_v25 = vpop.permute.xlu0 %862  ;;  %v3898_v10 = vpop.permute.xlu1 %808 }
 0x1a2   : > { %6307 = vst [vmem:[#allocation59_spill] sm:$0xff] %v3896_v25  ;;  %v3900_v63 = vpop.permute.xlu2 %854 }
 0x1a3   : > { %6308 = vst [vmem:[#allocation60_spill] sm:$0xff] %v3898_v10 }
 0x1a4   : > { %6309 = vst [vmem:[#allocation61_spill] sm:$0xff] %v3900_v63 }
 0x1a7   : > { %1249 = vperm.xlu0 %3212, %v3056_v57   ;;  %1212 = vrot.lane.b32.xlu1 %v3849_v14, %s3296_s17 }
 0x1a8   : > { %1165 = vperm.xlu2 %3214, %v3051_v19  }
 0x1a9   : > { %v3910_v30 = vpop.permute.xlu0 %884  ;;  %v3912_v25 = vpop.permute.xlu1 %852 }
 0x1aa   : > { %6310 = vst [vmem:[#allocation62_spill] sm:$0xff] %v3910_v30  ;;  %v3914_v10 = vpop.permute.xlu2 %860  ;;  %v3054_v30 = vld [vmem:[%s6094_s2 + $0x80] sm:$0xff] }
 0x1ab   : > { %6311 = vst [vmem:[#allocation63_spill] sm:$0xff] %v3912_v25 }
 0x1ac   : > { %6312 = vst [vmem:[#allocation64_spill] sm:$0xff] %v3914_v10 }
 0x1af   : > { %1289 = vrot.lane.b32.xlu0 %v3800_v46, %s3298_s19  ;;  %1218 = vrot.lane.b32.xlu1 %v3792_v29, %s3296_s17 }
 0x1b0   : > { %1208 = vrot.lane.b32.xlu2 %v3783_v54, %s3296_s17 }
 0x1b1   : > { %v3922_v57 = vpop.permute.xlu0 %899  ;;  %v3924_v19 = vpop.permute.xlu1 %858 }
 0x1b2   : > { %6313 = vst [vmem:[#allocation65_spill] sm:$0xff] %v3922_v57  ;;  %v3926_v63 = vpop.permute.xlu2 %866 }
 0x1b3   : > { %6314 = vst [vmem:[#allocation66_spill] sm:$0xff] %v3924_v19  ;;  %v3057_v19 = vld [vmem:[%s6094_s2 + $0x98] sm:$0xff] }
 0x1b4   : > { %6315 = vst [vmem:[#allocation67_spill] sm:$0xff] %v3926_v63 }
 0x1b7   : > { %1295 = vrot.lane.b32.xlu0 %v3773_v49, %s3298_s19  ;;  %1239 = vperm.xlu1 %3213, %v3054_v30  }
 0x1b8   : > { %1214 = vrot.lane.b32.xlu2 %v3874_v7, %s3296_s17 }
 0x1b9   : > { %v3935_v25 = vpop.permute.xlu0 %937  ;;  %v3937_v10 = vpop.permute.xlu1 %864 }
 0x1ba   : > { %6316 = vst [vmem:[#allocation68_spill] sm:$0xff] %v3935_v25  ;;  %v3939_v57 = vpop.permute.xlu2 %894 }
 0x1bb   : > { %6317 = vst [vmem:[#allocation69_spill] sm:$0xff] %v3937_v10  ;;  %v3055_v10 = vld [vmem:[%s6094_s2 + $0x88] sm:$0xff] }
 0x1bc   : > { %6318 = vst [vmem:[#allocation70_spill] sm:$0xff] %v3939_v57  ;;  %v3061_v57 = vld [vmem:[%s6094_s2 + $0xf0] sm:$0xff] }
 0x1bf   : > { %1301 = vrot.lane.b32.xlu0 %v3830_v17, %s3298_s19  ;;  %1254 = vperm.xlu1 %3213, %v3057_v19  }
 0x1c0   : > { %1220 = vrot.lane.b32.xlu2 %v3815_v0, %s3296_s17 }
 0x1c1   : > { %v3948_v63 = vpop.permute.xlu0 %943  ;;  %v3950_v30 = vpop.permute.xlu1 %889 }
 0x1c2   : > { %6319 = vst [vmem:[#allocation71_spill] sm:$0xff] %v3948_v63  ;;  %v3952_v25 = vpop.permute.xlu2 %935 }
 0x1c3   : > { %6320 = vst [vmem:[#allocation72_spill] sm:$0xff] %v3950_v30 }
 0x1c4   : > { %6321 = vst [vmem:[#allocation73_spill] sm:$0xff] %v3952_v25 }
 0x1c7   : > { %1328 = vperm.xlu0 %3212, %v3061_v57   ;;  %1291 = vrot.lane.b32.xlu1 %v3849_v14, %s3298_s19 }
 0x1c8   : > { %1244 = vperm.xlu2 %3214, %v3055_v10  }
 0x1c9   : > { %v3962_v19 = vpop.permute.xlu0 %965  ;;  %v3964_v63 = vpop.permute.xlu1 %933 }
 0x1ca   : > { %6322 = vst [vmem:[#allocation74_spill] sm:$0xff] %v3962_v19  ;;  %v3966_v30 = vpop.permute.xlu2 %941  ;;  %v3059_v19 = vld [vmem:[%s6094_s2 + $0xe0] sm:$0xff] }
 0x1cb   : > { %6323 = vst [vmem:[#allocation75_spill] sm:$0xff] %v3964_v63 }
 0x1cc   : > { %6324 = vst [vmem:[#allocation76_spill] sm:$0xff] %v3966_v30 }
 0x1cf   : > { %1368 = vrot.lane.b32.xlu0 %v3800_v46, %s3299_s20  ;;  %1297 = vrot.lane.b32.xlu1 %v3792_v29, %s3298_s19 }
 0x1d0   : > { %1287 = vrot.lane.b32.xlu2 %v3783_v54, %s3298_s19 }
 0x1d1   : > { %v3974_v57 = vpop.permute.xlu0 %980  ;;  %v3976_v10 = vpop.permute.xlu1 %939 }
 0x1d2   : > { %6325 = vst [vmem:[#allocation77_spill] sm:$0xff] %v3974_v57  ;;  %v3978_v25 = vpop.permute.xlu2 %947 }
 0x1d3   : > { %6326 = vst [vmem:[#allocation78_spill] sm:$0xff] %v3976_v10  ;;  %v3062_v10 = vld [vmem:[%s6094_s2 + $0xf8] sm:$0xff] }
 0x1d4   : > { %6327 = vst [vmem:[#allocation79_spill] sm:$0xff] %v3978_v25 }
 0x1d7   : > { %1374 = vrot.lane.b32.xlu0 %v3773_v49, %s3299_s20  ;;  %1318 = vperm.xlu1 %3213, %v3059_v19  }
 0x1d8   : > { %1293 = vrot.lane.b32.xlu2 %v3874_v7, %s3298_s19 }
 0x1d9   : > { %v3987_v63 = vpop.permute.xlu0 %1113  ;;  %v3991_v57 = vpop.permute.xlu1 %945 }
 0x1da   : > { %6328 = vst [vmem:[#allocation80_spill] sm:$0xff] %v3987_v63  ;;  %v3989_v30 = vpop.permute.xlu2 %975 }
 0x1db   : > { %6329 = vst [vmem:[#allocation81_spill] sm:$0xff] %v3989_v30  ;;  %v3066_v30 = vld [vmem:[%s6094_s2 + $0x150] sm:$0xff] }
 0x1dc   : > { %6330 = vst [vmem:[#allocation82_spill] sm:$0xff] %v3991_v57  ;;  %v3060_v57 = vld [vmem:[%s6094_s2 + $0xe8] sm:$0xff] }
 0x1df   : > { %1380 = vrot.lane.b32.xlu0 %v3830_v17, %s3299_s20  ;;  %1333 = vperm.xlu1 %3213, %v3062_v10  }
 0x1e0   : > { %1299 = vrot.lane.b32.xlu2 %v3815_v0, %s3298_s19 }
 0x1e1   : > { %v4000_v25 = vpop.permute.xlu0 %1131  ;;  %v4004_v63 = vpop.permute.xlu1 %970 }
 0x1e2   : > { %6331 = vst [vmem:[#allocation83_spill] sm:$0xff] %v4000_v25  ;;  %v4002_v19 = vpop.permute.xlu2 %1108 }
 0x1e3   : > { %6332 = vst [vmem:[#allocation84_spill] sm:$0xff] %v4002_v19 }
 0x1e4   : > { %6333 = vst [vmem:[#allocation85_spill] sm:$0xff] %v4004_v63  ;;  %v3064_v63 = vld [vmem:[%s6094_s2 + $0x140] sm:$0xff] }
 0x1e7   : > { %1407 = vperm.xlu0 %3212, %v3066_v30   ;;  %1370 = vrot.lane.b32.xlu1 %v3849_v14, %s3299_s20 }
 0x1e8   : > { %1323 = vperm.xlu2 %3214, %v3060_v57  }
 0x1e9   : > { %v1138_v10 = vpop.permute.xlu0 %1137  ;;  %v4014_v25 = vpop.permute.xlu1 %1103 }
 0x1ea   : > { %v1130_v59 = vpop.permute.xlu2 %1129 }
 0x1ef   : > { %1447 = vrot.lane.b32.xlu0 %v3800_v46, %s3300_s26  ;;  %1376 = vrot.lane.b32.xlu1 %v3792_v29, %s3299_s20 }
 0x1f0   : > { %1366 = vrot.lane.b32.xlu2 %v3783_v54, %s3299_s20 }
 0x1f1   : > { %v4022_v19 = vpop.permute.xlu0 %1143  ;;  %v4026_v57 = vpop.permute.xlu1 %1118 }
 0x1f2   : > { %6334 = vst [vmem:[#allocation86_spill] sm:$0xff] %v4022_v19  ;;  %v4024_v30 = vpop.permute.xlu2 %1135 }
 0x1f3   : > { %6335 = vst [vmem:[#allocation87_spill] sm:$0xff] %v4024_v30 }
 0x1f4   : > { %6336 = vst [vmem:[#allocation88_spill] sm:$0xff] %v4026_v57  ;;  %v3067_v57 = vld [vmem:[%s6094_s2 + $0x158] sm:$0xff] }
 0x1f7   : > { %1453 = vrot.lane.b32.xlu0 %v3773_v49, %s3300_s26  ;;  %1397 = vperm.xlu1 %3213, %v3064_v63  }
 0x1f8   : > { %1372 = vrot.lane.b32.xlu2 %v3874_v7, %s3299_s20 }
 0x1f9   : > { %v4035_v48 = vpop.permute.xlu0 %1170  ;;  %v4039_v19 = vpop.permute.xlu1 %1133 }
 0x1fa   : > { %6337 = vst [vmem:[#allocation89_spill] sm:$0xff] %v4035_v48  ;;  %v4037_v26 = vpop.permute.xlu2 %1141 }
 0x1fb   : > { %6338 = vst [vmem:[#allocation90_spill] sm:$0xff] %v4037_v26  ;;  %v3065_v26 = vld [vmem:[%s6094_s2 + $0x148] sm:$0xff] }
 0x1fc   : > { %6339 = vst [vmem:[#allocation91_spill] sm:$0xff] %v4039_v19  ;;  %v3071_v19 = vld [vmem:[%s6094_s2 + $0x210] sm:$0xff] }
 0x1ff   : > { %1459 = vrot.lane.b32.xlu0 %v3830_v17, %s3300_s26  ;;  %1412 = vperm.xlu1 %3213, %v3067_v57  }
 0x200   : > { %1378 = vrot.lane.b32.xlu2 %v3815_v0, %s3299_s20 }
 0x201   : > { %v4048_v30 = vpop.permute.xlu0 %1210  ;;  %v4052_v48 = vpop.permute.xlu1 %1139 }
 0x202   : > { %6340 = vst [vmem:[#allocation92_spill] sm:$0xff] %v4048_v30  ;;  %v4050_v63 = vpop.permute.xlu2 %1165 }
 0x203   : > { %6341 = vst [vmem:[#allocation93_spill] sm:$0xff] %v4050_v63 }
 0x204   : > { %6342 = vst [vmem:[#allocation94_spill] sm:$0xff] %v4052_v48 }
 0x207   : > { %1486 = vperm.xlu0 %3212, %v3071_v19   ;;  %1449 = vrot.lane.b32.xlu1 %v3849_v14, %s3300_s26  ;;  %v3077_v19 = vld [vmem:[%s6094_s2 + $0x278] sm:$0xff] }
 0x208   : > { %1402 = vperm.xlu2 %3214, %v3065_v26  }
 0x209   : > { %v1217_v57 = vpop.permute.xlu0 %1216  ;;  %v1161_v30 = vpop.permute.xlu1 %1160 }
 0x20a   : > { %v1209_v53 = vpop.permute.xlu2 %1208 }
 0x20f   : > { %1526 = vrot.lane.b32.xlu0 %v3800_v46, %s3301_s13  ;;  %1455 = vrot.lane.b32.xlu1 %v3792_v29, %s3300_s26 }
 0x210   : > { %1445 = vrot.lane.b32.xlu2 %v3783_v54, %s3300_s26 }
 0x211   : > { %v4068_v63 = vpop.permute.xlu0 %1222  ;;  %v4072_v26 = vpop.permute.xlu1 %1175 }
 0x212   : > { %6343 = vst [vmem:[#allocation95_spill] sm:$0xff] %v4068_v63  ;;  %v4070_v48 = vpop.permute.xlu2 %1214 }
 0x213   : > { %6344 = vst [vmem:[#allocation96_spill] sm:$0xff] %v4070_v48 }
 0x214   : > { %6345 = vst [vmem:[#allocation97_spill] sm:$0xff] %v4072_v26  ;;  %v382_v26 = vlaneseq }
 0x217   : > { %1570 = vperm.xlu0 %3212, %v3077_v19   ;;  %1476 = vperm.xlu1 %3213, %v3069_v21   ;;  %v4094_v19 = vand.u32 127, %v382_v26 }
 0x218   : > { %1451 = vrot.lane.b32.xlu2 %v3874_v7, %s3300_s26 }
 0x219   : > { %v4082_v41 = vpop.permute.xlu0 %1249  ;;  %v4086_v48 = vpop.permute.xlu1 %1212  ;;  %vm384_vm1 = vcmp.lt.s32.totalorder %v4094_v19, 17  ;;  %vm463_vm2 = vcmp.lt.s32.totalorder %v4094_v19, 16  ;;  %vm544_vm3 = vcmp.lt.s32.totalorder %v4094_v19, 15  ;;  %vm625_vm4 = vcmp.lt.s32.totalorder %v4094_v19, 1 }
 0x21a   : > { %6346 = vst [vmem:[#allocation98_spill] sm:$0xff] %v4082_v41  ;;  %v4084_v63 = vpop.permute.xlu2 %1220  ;;  %v1149_v26 = vsel %vm384_vm1, %v1138_v10, %v1130_v59  ;;  %v1224_v50 = vsel %vm463_vm2, %v1209_v53, %v1217_v57  ;;  %vm706_vm5 = vcmp.lt.s32.totalorder %v4094_v19, 127  ;;  %vm787_vm6 = vcmp.lt.s32.totalorder %v4094_v19, 113 }
 0x21b   : > { %6347 = vst [vmem:[#allocation99_spill] sm:$0xff] %v4084_v63  ;;  %v1145_v63 = vsel %vm384_vm1, %v1130_v59, %v1138_v10  ;;  %v1178_v31 = vmul.f32 %v1161_v30, %v1149_v26  ;;  %v3058_v59 = vld [vmem:[%s6095_s3 + $0x2] sm:$0x3]  ;;  %v1121_v26 = vmul.f32 %v4014_v25, %v3783_v54  ;;  %vm868_vm7 = vcmp.lt.s32.totalorder %v4094_v19, 112 }
 0x21c   : > { %6348 = vst [vmem:[#allocation100_spill] sm:$0xff] %v4086_v48  ;;  %v4137_v22 = vperm.slane %v3058_v59, 0  ;;  %vm949_vm8 = vcmp.lt.s32.totalorder %v4094_v19, 111  ;;  %v2735_v19 = vld [vmem:[%s6096_s4 + $0x8] sm:$0xff] }
 0x21e   : > { %6354 = vst [vmem:[#allocation106_spill] sm:$0xff] %v4137_v22 }
 0x21f   : > { %1649 = vperm.xlu0 %3212, %v3082_v5   ;;  %1491 = vperm.xlu1 %3213, %v3072_v61   ;;  %v1186_v5 = vld [vmem:[%s6095_s3] sm:$0x3]  ;;  %v1179_v61 = vmul.f32 %v1161_v30, %v1145_v63 }
 0x220   : > { %1457 = vrot.lane.b32.xlu2 %v3815_v0, %s3300_s26 }
 0x221   : > { %v4098_v21 = vpop.permute.xlu0 %1289  ;;  %v4102_v48 = vpop.permute.xlu1 %1218 }
 0x222   : > { %6349 = vst [vmem:[#allocation101_spill] sm:$0xff] %v4098_v21  ;;  %v4100_v41 = vpop.permute.xlu2 %1244  ;;  %v3070_v21 = vld [vmem:[%s6094_s2 + $0x208] sm:$0xff] }
 0x223   : > { %6350 = vst [vmem:[#allocation102_spill] sm:$0xff] %v4100_v41  ;;  %v4115_v41 = vperm.slane %v1186_v5, 0 }
 0x224   : > { %6351 = vst [vmem:[#allocation103_spill] sm:$0xff] %v4102_v48  ;;  %v4117_v48 = vperm.slane %v1186_v5, 1  ;;  %v1122_v5 = vmul.f32 %v4014_v25, %v3773_v49 }
 0x225   : > { %6352 = vst [vmem:[#allocation104_spill] sm:$0xff] %v4115_v41  ;;  %v1192_v10 = vmul.f32 %v4115_v41, %v1178_v31  ;;  %v4139_v31 = vperm.slane %v3058_v59, 1  ;;  %v3087_v41 = vld [vmem:[%s6094_s2 + $0x338] sm:$0xff]  ;;  %v3081_v59 = vld [vmem:[%s6094_s2 + $0x2d0] sm:$0xff] }
 0x226   : > { %6353 = vst [vmem:[#allocation105_spill] sm:$0xff] %v4117_v48  ;;  %v1193_v30 = vmul.f32 %v4117_v48, %v1179_v61 }
 0x227   : > { %1688 = vrot.lane.b32.xlu0 %v3874_v7, %s3303_s9  ;;  %1530 = vrot.lane.b32.xlu1 %v3874_v7, %s3301_s13  ;;  %6355 = vst [vmem:[#allocation107_spill] sm:$0xff] %v4139_v31  ;;  %v1200_v44 = vadd.f32 %v1192_v10, %v1121_v26  ;;  %v3063_v26 = vld [vmem:[%s6095_s3 + $0x4] sm:$0x3] }
 0x228   : > { %1481 = vperm.xlu2 %3214, %v3070_v21   ;;  %v1228_v21 = vsel %vm463_vm2, %v1217_v57, %v1209_v53  ;;  %v1201_v25 = vadd.f32 %v1193_v30, %v1122_v5  ;;  %v1769_v30 = vld [vmem:[%s6093_s1 + $0x40] sm:$0xff] }
 0x229   : > { %v1296_v63 = vpop.permute.xlu0 %1295  ;;  %v1240_v38 = vpop.permute.xlu1 %1239  ;;  %3093 = vmatmul.msk.f32.vlgmr.msrb.gmra.mxu1 %vm262_vm0, %v1769_v30  ;;  %3089 = vmatmul.msk.f32.vlgmr.msrb.gmra.mxu0 %vm262_vm0, %v1769_v30  ;;  %v1770_v30 = vld [vmem:[%s6093_s1 + $0x48] sm:$0xff] }
 0x22a   : > { %v1288_v45 = vpop.permute.xlu2 %1287  ;;  %v1257_v61 = vmul.f32 %v1240_v38, %v1228_v21  ;;  %v1258_v48 = vmul.f32 %v1240_v38, %v1224_v50 }
 0x22b   : > { %v1303_v21 = vsel %vm544_vm3, %v1288_v45, %v1296_v63 }
 0x22c   : > { %v1271_v27 = vmul.f32 %v4137_v22, %v1257_v61  ;;  %v1272_v32 = vmul.f32 %v4139_v31, %v1258_v48  ;;  %v1307_v61 = vsel %vm544_vm3, %v1296_v63, %v1288_v45  ;;  %v3076_v63 = vld [vmem:[%s6094_s2 + $0x270] sm:$0xff] }
 0x22e   : > { %v1279_v23 = vadd.f32 %v1271_v27, %v1200_v44  ;;  %v1280_v53 = vadd.f32 %v1272_v32, %v1201_v25 }
 0x22f   : > { %1728 = vperm.xlu0 %3212, %v3087_v41   ;;  %1609 = vrot.lane.b32.xlu1 %v3874_v7, %s3302_s29 }
 0x230   : > { %1524 = vrot.lane.b32.xlu2 %v3783_v54, %s3301_s13 }
 0x231   : > { %v4150_v50 = vpop.permute.xlu0 %1301  ;;  %v4154_v57 = vpop.permute.xlu1 %1254  ;;  %3094 = vmatmul.msk.f32.gmra.mxu1 %vm262_vm0, %v1770_v30  ;;  %3090 = vmatmul.msk.f32.gmra.mxu0 %vm262_vm0, %v1770_v30  ;;  %v1772_v30 = vld [vmem:[%s6093_s1 + $0x58] sm:$0xff] }
 0x232   : > { %v4152_v38 = vpop.permute.xlu2 %1293 }
 0x237   : > { %1644 = vperm.xlu0 %3212, %v3081_v59   ;;  %1528 = vrot.lane.b32.xlu1 %v3849_v14, %s3301_s13 }
 0x238   : > { %1538 = vrot.lane.b32.xlu2 %v3830_v17, %s3301_s13 }
 0x239   : > { %v4163_v27 = vpop.permute.xlu0 %1328  ;;  %v4167_v41 = vpop.permute.xlu1 %1291 }
 0x23a   : > { %6356 = vst [vmem:[#allocation108_spill] sm:$0xff] %v4163_v27  ;;  %v4165_v32 = vpop.permute.xlu2 %1299 }
 0x23b   : > { %6357 = vst [vmem:[#allocation109_spill] sm:$0xff] %v4165_v32 }
 0x23c   : > { %6358 = vst [vmem:[#allocation110_spill] sm:$0xff] %v4167_v41 }
 0x23f   : > { %1694 = vrot.lane.b32.xlu0 %v3815_v0, %s3303_s9  ;;  %1696 = vrot.lane.b32.xlu1 %v3830_v17, %s3303_s9 }
 0x240   : > { %1617 = vrot.lane.b32.xlu2 %v3830_v17, %s3302_s29 }
 0x241   : > { %v4175_v44 = vpop.permute.xlu0 %1368  ;;  %v4179_v10 = vpop.permute.xlu1 %1297 }
 0x242   : > { %6359 = vst [vmem:[#allocation111_spill] sm:$0xff] %v4175_v44  ;;  %v4177_v48 = vpop.permute.xlu2 %1323  ;;  %v4203_v44 = vperm.slane %v3063_v26, 0 }
 0x243   : > { %6360 = vst [vmem:[#allocation112_spill] sm:$0xff] %v4177_v48  ;;  %v4205_v48 = vperm.slane %v3063_v26, 1 }
 0x244   : > { %6361 = vst [vmem:[#allocation113_spill] sm:$0xff] %v4179_v10 }
 0x245   : > { %6362 = vst [vmem:[#allocation114_spill] sm:$0xff] %v4203_v44 }
 0x246   : > { %6363 = vst [vmem:[#allocation115_spill] sm:$0xff] %v4205_v48 }
 0x247   : > { %1605 = vrot.lane.b32.xlu0 %v3800_v46, %s3302_s29  ;;  %1607 = vrot.lane.b32.xlu1 %v3849_v14, %s3302_s29 }
 0x248   : > { %1536 = vrot.lane.b32.xlu2 %v3815_v0, %s3301_s13 }
 0x249   : > { %v1375_v5 = vpop.permute.xlu0 %1374  ;;  %v1319_v59 = vpop.permute.xlu1 %1318 }
 0x24a   : > { %v1367_v25 = vpop.permute.xlu2 %1366  ;;  %v1336_v10 = vmul.f32 %v1319_v59, %v1307_v61  ;;  %v1337_v27 = vmul.f32 %v1319_v59, %v1303_v21 }
 0x24c   : > { %v1350_v41 = vmul.f32 %v4203_v44, %v1336_v10  ;;  %v1351_v45 = vmul.f32 %v4205_v48, %v1337_v27  ;;  %v1771_v27 = vld [vmem:[%s6093_s1 + $0x50] sm:$0xff]  ;;  %v3080_v44 = vld [vmem:[%s6094_s2 + $0x2c8] sm:$0xff] }
 0x24d   : > { %3095 = vmatmul.msk.f32.gmra.mxu1 %vm262_vm0, %v1771_v27  ;;  %3091 = vmatmul.msk.f32.gmra.mxu0 %vm262_vm0, %v1771_v27 }
 0x24e   : > { %v1358_v32 = vadd.f32 %v1350_v41, %v1279_v23  ;;  %v1359_v31 = vadd.f32 %v1351_v45, %v1280_v53  ;;  %v3074_v23 = vld [vmem:[%s6094_s2 + $0x260] sm:$0xff]  ;;  %v3075_v53 = vld [vmem:[%s6094_s2 + $0x268] sm:$0xff] }
 0x24f   : > { %1532 = vrot.lane.b32.xlu0 %v3773_v49, %s3301_s13  ;;  %1534 = vrot.lane.b32.xlu1 %v3792_v29, %s3301_s13 }
 0x250   : > { %1565 = vperm.xlu2 %3214, %v3076_v63  }
 0x251   : > { %v4218_v26 = vpop.permute.xlu0 %1380  ;;  %v4222_v10 = vpop.permute.xlu1 %1333 }
 0x252   : > { %v4220_v21 = vpop.permute.xlu2 %1372 }
 0x253   : > { %6364 = vst [vmem:[#allocation116_spill] sm:$0xff] %v4220_v21 }
 0x255   : > { %3096 = vmatmul.msk.f32.gmra.mxu1 %vm262_vm0, %v1772_v30  ;;  %3092 = vmatmul.msk.f32.gmra.mxu0 %vm262_vm0, %v1772_v30 }
 0x257   : > { %1555 = vperm.xlu0 %3212, %v3074_v23   ;;  %1560 = vperm.xlu1 %3213, %v3075_v53   ;;  %v3086_v23 = vld [vmem:[%s6094_s2 + $0x330] sm:$0xff]  ;;  %v3068_v53 = vld [vmem:[%s6095_s3 + $0x6] sm:$0x3] }
 0x258   : > { %1615 = vrot.lane.b32.xlu2 %v3815_v0, %s3302_s29 }
 0x259   : > { %v4237_v41 = vpop.permute.xlu0 %1407  ;;  %v4241_v59 = vpop.permute.xlu1 %1370 }
 0x25a   : > { %6365 = vst [vmem:[#allocation117_spill] sm:$0xff] %v4237_v41  ;;  %v4239_v61 = vpop.permute.xlu2 %1378  ;;  %v4279_v41 = vperm.slane %v3068_v53, 0 }
 0x25b   : > { %6366 = vst [vmem:[#allocation118_spill] sm:$0xff] %v4239_v61 }
 0x25c   : > { %6367 = vst [vmem:[#allocation119_spill] sm:$0xff] %v4241_v59  ;;  %v4281_v59 = vperm.slane %v3068_v53, 1 }
 0x25d   : > { %6371 = vst [vmem:[#allocation123_spill] sm:$0xff] %v4279_v41 }
 0x25e   : > { %6372 = vst [vmem:[#allocation124_spill] sm:$0xff] %v4281_v59 }
 0x25f   : > { %1611 = vrot.lane.b32.xlu0 %v3773_v49, %s3302_s29  ;;  %1613 = vrot.lane.b32.xlu1 %v3792_v29, %s3302_s29 }
 0x260   : > { %1686 = vrot.lane.b32.xlu2 %v3849_v14, %s3303_s9 }
 0x261   : > { %v4254_v45 = vpop.permute.xlu0 %1447  ;;  %v4258_v27 = vpop.permute.xlu1 %1376 }
 0x262   : > { %6368 = vst [vmem:[#allocation120_spill] sm:$0xff] %v4254_v45  ;;  %v4256_v63 = vpop.permute.xlu2 %1402  ;;  %v1386_v45 = vsel %vm625_vm4, %v1375_v5, %v1367_v25 }
 0x263   : > { %6369 = vst [vmem:[#allocation121_spill] sm:$0xff] %v4256_v63  ;;  %v1382_v63 = vsel %vm625_vm4, %v1367_v25, %v1375_v5  ;;  %v3085_v5 = vld [vmem:[%s6094_s2 + $0x328] sm:$0xff] }
 0x264   : > { %6370 = vst [vmem:[#allocation122_spill] sm:$0xff] %v4258_v27 }
 0x267   : > { %1690 = vrot.lane.b32.xlu0 %v3773_v49, %s3303_s9  ;;  %1684 = vrot.lane.b32.xlu1 %v3800_v46, %s3303_s9 }
 0x268   : > { %1723 = vperm.xlu2 %3214, %v3086_v23  }
 0x269   : > { %v4271_v30 = vpop.permute.xlu0 %1453  ;;  %v1398_v49 = vpop.permute.xlu1 %1397 }
 0x26a   : > { %v4277_v27 = vpop.permute.xlu2 %1445  ;;  %v1415_v23 = vmul.f32 %v1398_v49, %v1386_v45  ;;  %v1416_v61 = vmul.f32 %v1398_v49, %v1382_v63  ;;  %v425_v49 = vld [vmem:[%s6095_s3] sm:$0x3] }
 0x26c   : > { %v1429_v46 = vmul.f32 %v4279_v41, %v1415_v23  ;;  %v1430_v48 = vmul.f32 %v4281_v59, %v1416_v61  ;;  %v3079_v61 = vld [vmem:[%s6094_s2 + $0x2c0] sm:$0xff]  ;;  %v4324_v23 = vperm.slane %v425_v49, 1 }
 0x26e   : > { %v4291_v25 = vadd.f32 %v1429_v46, %v1358_v32  ;;  %v4293_v21 = vadd.f32 %v1430_v48, %v1359_v31  ;;  %v385_v46 = vsel %vm384_vm1, %v3610_v62, %v3625_v3  ;;  %v389_v31 = vsel %vm384_vm1, %v3625_v3, %v3610_v62  ;;  %6374 = vst [vmem:[#allocation126_spill] sm:$0xff] %v4324_v23  ;;  %v3012_v62 = vld [vmem:[%s6095_s3 + $0x4] sm:$0x3] }
 0x26f   : > { %1718 = vperm.xlu1 %3213, %v3085_v5   ;;  %v359_v32 = vmul.f32 %v3495_v36, %v3475_v34  ;;  %v4322_v48 = vperm.slane %v425_v49, 0  ;;  %v358_v5 = vmul.f32 %v3495_v36, %v3473_v33  ;;  %v361_v34 = vmul.f32 %v3514_v39, %v3481_v35 }
 0x270   : > { %1639 = vperm.xlu2 %3214, %v3080_v44   ;;  %v3007_v44 = vld [vmem:[%s6095_s3 + $0x2] sm:$0x3]  ;;  %v417_v59 = vmul.f32 %v3531_v42, %v389_v31  ;;  %v464_v49 = vsel %vm463_vm2, %v3647_v8, %v3637_v6  ;;  %v468_v33 = vsel %vm463_vm2, %v3637_v6, %v3647_v8  ;;  %v4361_v31 = vmul.f32 %v3550_v47, %v3503_v37 }
 0x271   : > { %v4295_v45 = vpop.permute.xlu0 %1459  ;;  %v4299_v53 = vpop.permute.xlu1 %1412  ;;  %v4349_v35 = vperm.slane %v3007_v44, 0  ;;  %v4363_v6 = vperm.slane %v3007_v44, 1  ;;  %v4365_v8 = vperm.slane %v3012_v62, 0  ;;  %v465_v37 = vsel %vm463_vm2, %v3700_v24, %v3671_v15 }
 0x272   : > { %v4297_v63 = vpop.permute.xlu2 %1451  ;;  %v469_v44 = vsel %vm463_vm2, %v3671_v15, %v3700_v24  ;;  %v4395_v41 = vperm.slane %v3012_v62, 1 }
 0x273   : > { %6373 = vst [vmem:[#allocation125_spill] sm:$0xff] %v4297_v63 }
 0x274   : > { %6378 = vst [vmem:[#allocation130_spill] sm:$0xff] %v4349_v35 }
 0x275   : > { %6379 = vst [vmem:[#allocation131_spill] sm:$0xff] %v4363_v6 }
 0x276   : > { %6380 = vst [vmem:[#allocation132_spill] sm:$0xff] %v4365_v8 }
 0x277   : > { %1634 = vperm.xlu1 %3213, %v3079_v61   ;;  %v418_v61 = vmul.f32 %v3531_v42, %v385_v46  ;;  %v386_v42 = vsel %vm384_vm1, %v3687_v20, %v3658_v11  ;;  %v390_v46 = vsel %vm384_vm1, %v3658_v11, %v3687_v20  ;;  %v497_v11 = vmul.f32 %v3568_v51, %v468_v33 }
 0x278   : > { %1692 = vrot.lane.b32.xlu2 %v3792_v29, %s3303_s9  ;;  %v498_v20 = vmul.f32 %v3568_v51, %v464_v49  ;;  %v3017_v51 = vld [vmem:[%s6095_s3 + $0x6] sm:$0x3]  ;;  %v419_v49 = vmul.f32 %v3586_v55, %v390_v46  ;;  %v420_v33 = vmul.f32 %v3586_v55, %v386_v42  ;;  %6381 = vst [vmem:[#allocation133_spill] sm:$0xff] %v4395_v41 }
 0x279   : > { %v4333_v3 = vpop.permute.xlu0 %1486  ;;  %v4347_v29 = vpop.permute.xlu1 %1449  ;;  %v499_v46 = vmul.f32 %v3603_v60, %v469_v44  ;;  %v500_v55 = vmul.f32 %v3603_v60, %v465_v37  ;;  %v4413_v62 = vperm.slane %v3017_v51, 0 }
 0x27a   : > { %6375 = vst [vmem:[#allocation127_spill] sm:$0xff] %v4333_v3  ;;  %v4345_v36 = vpop.permute.xlu2 %1457  ;;  %v545_v3 = vsel %vm544_vm3, %v3660_v12, %v3649_v9  ;;  %v434_v60 = vmul.f32 %v4324_v23, %v420_v33 }
 0x27b   : > { %6376 = vst [vmem:[#allocation128_spill] sm:$0xff] %v4345_v36  ;;  %v3084_v36 = vld [vmem:[%s6094_s2 + $0x320] sm:$0xff]  ;;  %v579_v24 = vmul.f32 %v3598_v58, %v545_v3  ;;  %v4415_v3 = vperm.slane %v3017_v51, 1 }
 0x27c   : > { %6377 = vst [vmem:[#allocation129_spill] sm:$0xff] %v4347_v29  ;;  %v549_v29 = vsel %vm544_vm3, %v3649_v9, %v3660_v12  ;;  %v431_v9 = vmul.f32 %v4322_v48, %v417_v59  ;;  %v432_v12 = vmul.f32 %v4324_v23, %v418_v61  ;;  %v626_v59 = vsel %vm625_vm4, %v3673_v16, %v3662_v13 }
 0x27d   : > { %v578_v15 = vmul.f32 %v3598_v58, %v549_v29  ;;  %v630_v61 = vsel %vm625_vm4, %v3662_v13, %v3673_v16  ;;  %v512_v58 = vmul.f32 %v4349_v35, %v497_v11  ;;  %v513_v29 = vmul.f32 %v4363_v6, %v498_v20  ;;  %6382 = vst [vmem:[#allocation134_spill] sm:$0xff] %v4413_v62 }
 0x27e   : > { %6383 = vst [vmem:[#allocation135_spill] sm:$0xff] %v4415_v3  ;;  %v439_v63 = vadd.f32 %v431_v9, %v358_v5  ;;  %v440_v13 = vadd.f32 %v432_v12, %v359_v32  ;;  %v433_v16 = vmul.f32 %v4322_v48, %v419_v49  ;;  %v594_v11 = vmul.f32 %v4395_v41, %v579_v24 }
 0x27f   : > { %1713 = vperm.xlu1 %3213, %v3084_v36   ;;  %v593_v36 = vmul.f32 %v4365_v8, %v578_v15  ;;  %v659_v20 = vmul.f32 %v3627_v4, %v630_v61  ;;  %v660_v51 = vmul.f32 %v3627_v4, %v626_v59  ;;  %v360_v5 = vmul.f32 %v3514_v39, %v3518_v40  ;;  %v3022_v15 = vld [vmem:[%s6095_s3 + $0xa] sm:$0x3] }
 0x280   : > { %1603 = vrot.lane.b32.xlu2 %v3783_v54, %s3302_s29  ;;  %v514_v32 = vmul.f32 %v4349_v35, %v499_v46  ;;  %v515_v9 = vmul.f32 %v4363_v6, %v500_v55  ;;  %v4435_v12 = vmul.f32 %v3550_v47, %v3533_v43  ;;  %v520_v49 = vadd.f32 %v512_v58, %v439_v63  ;;  %v3073_v46 = vld [vmem:[%s6095_s3 + $0xa] sm:$0x3] }
 0x281   : > { %v4417_v42 = vpop.permute.xlu0 %1526  ;;  %v4423_v44 = vpop.permute.xlu1 %1455  ;;  %v521_v33 = vadd.f32 %v513_v29, %v440_v13  ;;  %v4442_v4 = vmul.f32 %v3574_v52, %v3619_v2  ;;  %v4446_v39 = vmul.f32 %v3574_v52, %v3588_v56  ;;  %v441_v40 = vadd.f32 %v433_v16, %v360_v5  ;;  %v6391_v29 = vld [vmem:[#allocation18_spill] sm:$0xff] }
 0x282   : > { %6384 = vst [vmem:[#allocation136_spill] sm:$0xff] %v4417_v42  ;;  %v4421_v37 = vpop.permute.xlu2 %1481  ;;  %v442_v24 = vadd.f32 %v434_v60, %v361_v34  ;;  %v550_v43 = vsel %vm544_vm3, %v3683_v18, %v3713_v28  ;;  %v4453_v47 = vadd.f32 %v593_v36, %v520_v49  ;;  %v4458_v2 = vmul.f32 %v4413_v62, %v659_v20  ;;  %v6392_v13 = vld [vmem:[#allocation22_spill] sm:$0xff] }
 0x283   : > { %6385 = vst [vmem:[#allocation137_spill] sm:$0xff] %v4421_v37  ;;  %v4455_v63 = vadd.f32 %v594_v11, %v521_v33  ;;  %v4461_v59 = vmul.f32 %v4415_v3, %v660_v51  ;;  %v522_v52 = vadd.f32 %v514_v32, %v441_v40  ;;  %v4465_v61 = vperm.slane %v3022_v15, 0  ;;  %v6394_v11 = vld [vmem:[#allocation25_spill] sm:$0xff] }
 0x284   : > { %6386 = vst [vmem:[#allocation138_spill] sm:$0xff] %v4423_v44  ;;  %v4463_v56 = vadd.f32 %v515_v9, %v442_v24  ;;  %v4467_v34 = vperm.slane %v3022_v15, 1  ;;  %v546_v55 = vsel %vm544_vm3, %v3713_v28, %v3683_v18  ;;  %v580_v58 = vmul.f32 %v3617_v1, %v550_v43  ;;  %v6395_v40 = vld [vmem:[#allocation17_spill] sm:$0xff]  ;;  %v6396_v24 = vld [vmem:[#allocation23_spill] sm:$0xff]  ;;  %v6400_v44 = vld [vmem:[#allocation28_spill] sm:$0xff] }
 0x285   : > { %6387 = vst [vmem:[#allocation139_spill] sm:$0xff] %v4442_v4  ;;  %v387_v16 = vsel %vm384_vm1, %v6392_v13, %v6391_v29  ;;  %v391_v60 = vsel %vm384_vm1, %v6391_v29, %v6392_v13  ;;  %v1461_v51 = vsel %vm706_vm5, %v4277_v27, %v4271_v30  ;;  %v1465_v5 = vsel %vm706_vm5, %v4271_v30, %v4277_v27  ;;  %v6397_v13 = vld [vmem:[#allocation6_spill] sm:$0xff]  ;;  %v6399_v37 = vld [vmem:[#allocation21_spill] sm:$0xff] }
 0x286   : > { %6388 = vst [vmem:[#allocation140_spill] sm:$0xff] %v4446_v39  ;;  %v4507_v9 = vperm.slane %v3073_v46, 0  ;;  %v4509_v49 = vperm.slane %v3073_v46, 1  ;;  %v627_v43 = vsel %vm625_vm4, %v6396_v24, %v6395_v40  ;;  %v631_v29 = vsel %vm625_vm4, %v6395_v40, %v6396_v24  ;;  %v6405_v24 = vld [vmem:[#allocation31_spill] sm:$0xff] }
 0x287   : > { %6389 = vst [vmem:[#allocation141_spill] sm:$0xff] %v4465_v61  ;;  %v422_v27 = vmul.f32 %v6397_v13, %v387_v16  ;;  %v581_v30 = vmul.f32 %v3617_v1, %v546_v55  ;;  %v595_v46 = vmul.f32 %v4365_v8, %v580_v58  ;;  %v547_v40 = vsel %vm544_vm3, %v6400_v44, %v6399_v37  ;;  %v6401_v55 = vld [vmem:[#allocation13_spill] sm:$0xff] }
 0x288   : > { %6390 = vst [vmem:[#allocation142_spill] sm:$0xff] %v4467_v34  ;;  %1682 = vrot.lane.b32.xlu2 %v3783_v54, %s3303_s9  ;;  %v6393_v54 = vld [vmem:[#allocation20_spill] sm:$0xff]  ;;  %v551_v1 = vsel %vm544_vm3, %v6399_v37, %v6400_v44  ;;  %v661_v58 = vmul.f32 %v6401_v55, %v631_v29  ;;  %v662_v16 = vmul.f32 %v6401_v55, %v627_v43  ;;  %v6406_v43 = vld [vmem:[#allocation9_spill] sm:$0xff] }
 0x289   : > { %v4487_v36 = vpop.permute.xlu0 %1570  ;;  %v466_v20 = vsel %vm463_vm2, %v6394_v11, %v6393_v54  ;;  %v470_v18 = vsel %vm463_vm2, %v6393_v54, %v6394_v11  ;;  %v1477_v32 = vpop.permute.xlu1 %1476  ;;  %v421_v54 = vmul.f32 %v6397_v13, %v391_v60  ;;  %v603_v44 = vadd.f32 %v595_v46, %v522_v52 }
 0x28a   : > { %v4497_v28 = vpop.permute.xlu2 %1524  ;;  %v1494_v33 = vmul.f32 %v1477_v32, %v1461_v51  ;;  %v1495_v15 = vmul.f32 %v1477_v32, %v1465_v5  ;;  %v6398_v5 = vld [vmem:[#allocation8_spill] sm:$0xff]  ;;  %v583_v29 = vmul.f32 %v6406_v43, %v547_v40  ;;  %v6409_v40 = vld [vmem:[#allocation27_spill] sm:$0xff]  ;;  %v676_v39 = vmul.f32 %v4413_v62, %v661_v58 }
 0x28b   : > { %v501_v32 = vmul.f32 %v6398_v5, %v470_v18  ;;  %v502_v42 = vmul.f32 %v6398_v5, %v466_v20  ;;  %v435_v20 = vmul.f32 %v4322_v48, %v421_v54 }
 0x28c   : > { %v1508_v11 = vmul.f32 %v4507_v9, %v1494_v33  ;;  %v1509_v51 = vmul.f32 %v4509_v49, %v1495_v15  ;;  %v436_v33 = vmul.f32 %v4324_v23, %v422_v27  ;;  %v6404_v15 = vld [vmem:[#allocation24_spill] sm:$0xff]  ;;  %v6407_v27 = vld [vmem:[#allocation19_spill] sm:$0xff] }
 0x28d   : > { %v628_v13 = vsel %vm625_vm4, %v6405_v24, %v6404_v15  ;;  %v632_v37 = vsel %vm625_vm4, %v6404_v15, %v6405_v24  ;;  %v516_v55 = vmul.f32 %v4349_v35, %v501_v32  ;;  %v517_v52 = vmul.f32 %v4363_v6, %v502_v42  ;;  %v6410_v24 = vld [vmem:[#allocation11_spill] sm:$0xff]  ;;  %v6444_v35 = vld [vmem:[#allocation100_spill] sm:$0xff] }
 0x28e   : > { %v4538_v60 = vadd.f32 %v1508_v11, %v4291_v25  ;;  %v4541_v18 = vadd.f32 %v1509_v51, %v4293_v21  ;;  %v596_v25 = vmul.f32 %v4395_v41, %v581_v30  ;;  %v582_v21 = vmul.f32 %v6406_v43, %v551_v1  ;;  %v6408_v11 = vld [vmem:[#allocation26_spill] sm:$0xff]  ;;  %v6443_v6 = vld [vmem:[#allocation99_spill] sm:$0xff] }
 0x28f   : > { %v708_v51 = vsel %vm706_vm5, %v6408_v11, %v6407_v27  ;;  %v712_v5 = vsel %vm706_vm5, %v6407_v27, %v6408_v11  ;;  %v663_v43 = vmul.f32 %v6410_v24, %v632_v37  ;;  %v664_v4 = vmul.f32 %v6410_v24, %v628_v13 }
 0x290   : > { %6402 = vst [vmem:[#allocation18_spill] sm:$0xff] %v4538_v60  ;;  %v742_v1 = vmul.f32 %v6409_v40, %v708_v51  ;;  %v743_v15 = vmul.f32 %v6409_v40, %v712_v5  ;;  %v677_v27 = vmul.f32 %v4415_v3, %v662_v16  ;;  %v443_v32 = vadd.f32 %v435_v20, %v4435_v12  ;;  %v6411_v60 = vld [vmem:[#allocation30_spill] sm:$0xff]  ;;  %v6412_v51 = vld [vmem:[#allocation33_spill] sm:$0xff] }
 0x291   : > { %6403 = vst [vmem:[#allocation22_spill] sm:$0xff] %v4541_v18  ;;  %v4556_v54 = vpop.permute.xlu0 %1649  ;;  %v4570_v46 = vpop.permute.xlu1 %1491  ;;  %v444_v42 = vadd.f32 %v436_v33, %v4361_v31  ;;  %v597_v11 = vmul.f32 %v4365_v8, %v582_v21  ;;  %v598_v18 = vmul.f32 %v4395_v41, %v583_v29  ;;  %v709_v5 = vsel %vm706_vm5, %v6412_v51, %v6411_v60  ;;  %v6413_v20 = vld [vmem:[#allocation34_spill] sm:$0xff]  ;;  %v6414_v31 = vld [vmem:[#allocation32_spill] sm:$0xff] }
 0x292   : > { %v4568_v30 = vpop.permute.xlu2 %1538  ;;  %v713_v58 = vsel %vm706_vm5, %v6411_v60, %v6412_v51  ;;  %v604_v16 = vadd.f32 %v596_v25, %v4463_v56  ;;  %v524_v13 = vadd.f32 %v516_v55, %v443_v32  ;;  %v392_v33 = vsel %vm384_vm1, %v6414_v31, %v6413_v20  ;;  %v6415_v60 = vld [vmem:[#allocation29_spill] sm:$0xff] }
 0x293   : > { %v525_v12 = vadd.f32 %v517_v52, %v444_v42  ;;  %v757_v37 = vmul.f32 %v4465_v61, %v742_v1  ;;  %v758_v21 = vmul.f32 %v4467_v34, %v743_v15  ;;  %v678_v29 = vmul.f32 %v4413_v62, %v663_v43  ;;  %v6416_v1 = vld [vmem:[#allocation7_spill] sm:$0xff]  ;;  %v6420_v43 = vld [vmem:[#allocation16_spill] sm:$0xff] }
 0x294   : > { %v679_v40 = vmul.f32 %v4415_v3, %v664_v4  ;;  %v684_v24 = vadd.f32 %v676_v39, %v603_v44  ;;  %v685_v41 = vadd.f32 %v677_v27, %v604_v16  ;;  %v744_v51 = vmul.f32 %v6415_v60, %v709_v5  ;;  %v6419_v44 = vld [vmem:[#allocation15_spill] sm:$0xff]  ;;  %v6436_v3 = vld [vmem:[#allocation89_spill] sm:$0xff] }
 0x295   : > { %v745_v56 = vmul.f32 %v6415_v60, %v713_v58  ;;  %v605_v25 = vadd.f32 %v597_v11, %v524_v13  ;;  %v606_v55 = vadd.f32 %v598_v18, %v525_v12  ;;  %v388_v52 = vsel %vm384_vm1, %v6413_v20, %v6414_v31  ;;  %v6427_v20 = vld [vmem:[#allocation38_spill] sm:$0xff] }
 0x296   : > { %v423_v32 = vmul.f32 %v6416_v1, %v392_v33  ;;  %v4610_v4 = vadd.f32 %v4458_v2, %v4453_v47  ;;  %v4614_v39 = vadd.f32 %v4461_v59, %v4455_v63  ;;  %v4620_v18 = vsel %vm706_vm5, %v6420_v43, %v6419_v44  ;;  %v3027_v47 = vld [vmem:[%s6095_s3 + $0xc] sm:$0x3]  ;;  %v6430_v60 = vld [vmem:[#allocation90_spill] sm:$0xff] }
 0x297   : > { %v4626_v27 = vsel %vm706_vm5, %v6419_v44, %v6420_v43  ;;  %v4635_v59 = vadd.f32 %v757_v37, %v684_v24  ;;  %v4637_v42 = vadd.f32 %v758_v21, %v685_v41  ;;  %v4639_v11 = vadd.f32 %v678_v29, %v605_v25  ;;  %v6426_v41 = vld [vmem:[#allocation35_spill] sm:$0xff]  ;;  %v6434_v44 = vld [vmem:[#allocation97_spill] sm:$0xff] }
 0x298   : > { %6417 = vst [vmem:[#allocation20_spill] sm:$0xff] %v4610_v4  ;;  %v4641_v5 = vadd.f32 %v679_v40, %v606_v55  ;;  %v4644_v58 = vmul.f32 %v4465_v61, %v744_v51  ;;  %v4647_v16 = vmul.f32 %v4467_v34, %v745_v56  ;;  %v4650_v13 = vmul.f32 %v6416_v1, %v388_v52  ;;  %v4673_v21 = vld [vmem:[%s6095_s3 + $0xe] sm:$0x3]  ;;  %v6433_v52 = vld [vmem:[#allocation49_spill] sm:$0xff] }
 0x299   : > { %v4606_v15 = vpop.permute.xlu0 %1688  ;;  %6418 = vst [vmem:[#allocation25_spill] sm:$0xff] %v4614_v39  ;;  %v4633_v63 = vpop.permute.xlu1 %1530  ;;  %v4654_v12 = vmul.f32 %v4322_v48, %v423_v32  ;;  %v4660_v31 = vsel %vm463_vm2, %v6427_v20, %v6426_v41  ;;  %v4666_v33 = vsel %vm463_vm2, %v6426_v41, %v6427_v20  ;;  %v4668_v37 = vperm.slane %v3027_v47, 0  ;;  %v6428_v48 = vld [vmem:[#allocation86_spill] sm:$0xff]  ;;  %v6429_v29 = vld [vmem:[#allocation87_spill] sm:$0xff]  ;;  %v6441_v39 = vld [vmem:[#allocation105_spill] sm:$0xff] }
 0x29a   : > { %v4631_v2 = vpop.permute.xlu2 %1617  ;;  %6421 = vst [vmem:[#allocation17_spill] sm:$0xff] %v4639_v11  ;;  %v1148_v40 = vsel %vm384_vm1, %v6429_v29, %v6428_v48  ;;  %v1152_v24 = vsel %vm384_vm1, %v6428_v48, %v6429_v29  ;;  %v6431_v51 = vld [vmem:[#allocation91_spill] sm:$0xff]  ;;  %v4701_v20 = vperm.slane %v3027_v47, 1  ;;  %v6435_v48 = vld [vmem:[#allocation60_spill] sm:$0xff]  ;;  %v6450_v11 = vld [vmem:[#allocation125_spill] sm:$0xff] }
 0x29b   : > { %6422 = vst [vmem:[#allocation23_spill] sm:$0xff] %v4641_v5  ;;  %v1147_v56 = vsel %vm384_vm1, %v6431_v51, %v6430_v60  ;;  %v1151_v25 = vsel %vm384_vm1, %v6430_v60, %v6431_v51  ;;  %v6432_v55 = vld [vmem:[#allocation47_spill] sm:$0xff]  ;;  %v1184_v43 = vmul.f32 %v6434_v44, %v1152_v24  ;;  %v1185_v41 = vmul.f32 %v6434_v44, %v1148_v40 }
 0x29c   : > { %6423 = vst [vmem:[#allocation6_spill] sm:$0xff] %v4644_v58  ;;  %v789_v1 = vsel %vm787_vm6, %v6433_v52, %v6432_v55  ;;  %v793_v32 = vsel %vm787_vm6, %v6432_v55, %v6433_v52  ;;  %v4710_v51 = vperm.slane %v4673_v21, 0  ;;  %v1182_v62 = vmul.f32 %v6436_v3, %v1151_v25  ;;  %v6437_v55 = vld [vmem:[#allocation95_spill] sm:$0xff]  ;;  %v6438_v52 = vld [vmem:[#allocation96_spill] sm:$0xff] }
 0x29d   : > { %6424 = vst [vmem:[#allocation8_spill] sm:$0xff] %v4647_v16  ;;  %v4704_v29 = vmul.f32 %v6435_v48, %v789_v1  ;;  %v4707_v60 = vmul.f32 %v6435_v48, %v793_v32  ;;  %v1183_v8 = vmul.f32 %v6436_v3, %v1147_v56  ;;  %v1227_v40 = vsel %vm463_vm2, %v6438_v52, %v6437_v55  ;;  %v6439_v1 = vld [vmem:[#allocation80_spill] sm:$0xff]  ;;  %v6449_v5 = vld [vmem:[#allocation115_spill] sm:$0xff] }
 0x29e   : > { %6425 = vst [vmem:[#allocation21_spill] sm:$0xff] %v4654_v12  ;;  %v1231_v47 = vsel %vm463_vm2, %v6437_v55, %v6438_v52  ;;  %v4727_v32 = vmul.f32 %v6439_v1, %v3849_v14  ;;  %v4731_v3 = vmul.f32 %v6439_v1, %v3815_v0  ;;  %v1264_v25 = vmul.f32 %v4154_v57, %v1227_v40  ;;  %v6440_v55 = vld [vmem:[#allocation104_spill] sm:$0xff] }
 0x29f   : > { %v1263_v56 = vmul.f32 %v4154_v57, %v1231_v47  ;;  %v1198_v52 = vmul.f32 %v6440_v55, %v1184_v43  ;;  %v1199_v4 = vmul.f32 %v6441_v39, %v1185_v41  ;;  %v1306_v14 = vsel %vm544_vm3, %v4152_v38, %v4150_v50  ;;  %v6442_v47 = vld [vmem:[#allocation88_spill] sm:$0xff] }
 0x2a0   : > { %v1310_v0 = vsel %vm544_vm3, %v4150_v50, %v4152_v38  ;;  %v1127_v57 = vmul.f32 %v6442_v47, %v3874_v7  ;;  %v1128_v40 = vmul.f32 %v6442_v47, %v3830_v17  ;;  %v1343_v41 = vmul.f32 %v4222_v10, %v1306_v14  ;;  %v6445_v38 = vld [vmem:[#allocation107_spill] sm:$0xff] }
 0x2a1   : > { %v4722_v24 = vpop.permute.xlu0 %1728  ;;  %v1610_v48 = vpop.permute.xlu1 %1609  ;;  %v1342_v43 = vmul.f32 %v4222_v10, %v1310_v0  ;;  %v4754_v1 = vmul.f32 %v6440_v55, %v1182_v62  ;;  %v4757_v12 = vmul.f32 %v6441_v39, %v1183_v8  ;;  %v1226_v50 = vsel %vm463_vm2, %v6444_v35, %v6443_v6  ;;  %v6446_v62 = vld [vmem:[#allocation116_spill] sm:$0xff]  ;;  %v6448_v55 = vld [vmem:[#allocation114_spill] sm:$0xff] }
 0x2a2   : > { %v4735_v44 = vpop.permute.xlu2 %1536  ;;  %v1230_v17 = vsel %vm463_vm2, %v6443_v6, %v6444_v35  ;;  %v1277_v7 = vmul.f32 %v4137_v22, %v1263_v56  ;;  %v1278_v10 = vmul.f32 %v6445_v38, %v1264_v25  ;;  %v1385_v8 = vsel %vm625_vm4, %v6446_v62, %v4218_v26  ;;  %v6447_v6 = vld [vmem:[#allocation98_spill] sm:$0xff] }
 0x2a3   : > { %v1389_v14 = vsel %vm625_vm4, %v4218_v26, %v6446_v62  ;;  %v1206_v0 = vadd.f32 %v1198_v52, %v1127_v57  ;;  %v1207_v47 = vadd.f32 %v1199_v4, %v1128_v40  ;;  %v1422_v35 = vmul.f32 %v4299_v53, %v1385_v8  ;;  %v6451_v62 = vld [vmem:[#allocation123_spill] sm:$0xff] }
 0x2a4   : > { %v1421_v39 = vmul.f32 %v4299_v53, %v1389_v14  ;;  %v1261_v56 = vmul.f32 %v6447_v6, %v1230_v17  ;;  %v1262_v25 = vmul.f32 %v6447_v6, %v1226_v50  ;;  %v1356_v16 = vmul.f32 %v6448_v55, %v1342_v43  ;;  %v3078_v53 = vld [vmem:[%s6095_s3 + $0xc] sm:$0x3] }
 0x2a5   : > { %v1357_v58 = vmul.f32 %v6449_v5, %v1343_v41  ;;  %v1464_v34 = vsel %vm706_vm5, %v6450_v11, %v4295_v45  ;;  %v1468_v26 = vsel %vm706_vm5, %v4295_v45, %v6450_v11  ;;  %v1543_v4 = vsel %vm787_vm6, %v4633_v63, %v4568_v30  ;;  %v3083_v41 = vld [vmem:[%s6095_s3 + $0xe] sm:$0x3] }
 0x2a6   : > { %v1547_v52 = vsel %vm787_vm6, %v4568_v30, %v4633_v63  ;;  %v1285_v40 = vadd.f32 %v1277_v7, %v1206_v0  ;;  %v1286_v45 = vadd.f32 %v1278_v10, %v1207_v47  ;;  %v1500_v11 = vmul.f32 %v4570_v46, %v1464_v34  ;;  %v6452_v30 = vld [vmem:[#allocation124_spill] sm:$0xff] }
 0x2a7   : > { %v1501_v43 = vmul.f32 %v4570_v46, %v1468_v26  ;;  %v1435_v8 = vmul.f32 %v6451_v62, %v1421_v39  ;;  %v1436_v63 = vmul.f32 %v6452_v30, %v1422_v35  ;;  %v1622_v7 = vsel %vm868_vm7, %v1610_v48, %v4631_v2 }
 0x2a8   : > { %v1626_v34 = vsel %vm868_vm7, %v4631_v2, %v1610_v48  ;;  %v4820_v46 = vperm.slane %v3078_v53, 0  ;;  %v4822_v10 = vperm.slane %v3078_v53, 1  ;;  %v1579_v14 = vmul.f32 %v4487_v36, %v1543_v4  ;;  %v3088_v53 = vld [vmem:[%s6095_s3 + $0x10] sm:$0x3]  ;;  %v6454_v4 = vld [vmem:[#allocation110_spill] sm:$0xff] }
 0x2a9   : > { %v4802_v57 = vpop.permute.xlu0 %1644  ;;  %v1529_v17 = vpop.permute.xlu1 %1528  ;;  %v1580_v0 = vmul.f32 %v4487_v36, %v1547_v52  ;;  %v1364_v47 = vadd.f32 %v1356_v16, %v1285_v40  ;;  %v1365_v39 = vadd.f32 %v1357_v58, %v1286_v45  ;;  %v4826_v6 = vperm.slane %v3083_v41, 0  ;;  %v6453_v16 = vld [vmem:[#allocation109_spill] sm:$0xff] }
 0x2aa   : > { %v4810_v50 = vpop.permute.xlu2 %1565  ;;  %v4828_v35 = vperm.slane %v3083_v41, 1  ;;  %v1514_v26 = vmul.f32 %v4507_v9, %v1500_v11  ;;  %v1515_v61 = vmul.f32 %v4509_v49, %v1501_v43  ;;  %v1658_v2 = vmul.f32 %v4556_v54, %v1622_v7  ;;  %v6455_v41 = vld [vmem:[#allocation118_spill] sm:$0xff] }
 0x2ab   : > { %v1659_v48 = vmul.f32 %v4556_v54, %v1626_v34  ;;  %v1275_v36 = vmul.f32 %v4137_v22, %v1261_v56  ;;  %v1276_v58 = vmul.f32 %v6445_v38, %v1262_v25  ;;  %v1305_v52 = vsel %vm544_vm3, %v6454_v4, %v6453_v16  ;;  %v6456_v56 = vld [vmem:[#allocation119_spill] sm:$0xff] }
 0x2ac   : > { %v1309_v40 = vsel %vm544_vm3, %v6453_v16, %v6454_v4  ;;  %v1443_v45 = vadd.f32 %v1435_v8, %v1364_v47  ;;  %v1444_v54 = vadd.f32 %v1436_v63, %v1365_v39  ;;  %v1593_v11 = vmul.f32 %v4820_v46, %v1579_v14  ;;  %v6457_v4 = vld [vmem:[#allocation108_spill] sm:$0xff] }
 0x2ad   : > { %v1594_v43 = vmul.f32 %v4822_v10, %v1580_v0  ;;  %v1384_v25 = vsel %vm625_vm4, %v6456_v56, %v6455_v41  ;;  %v1388_v7 = vsel %vm625_vm4, %v6455_v41, %v6456_v56  ;;  %v4859_v38 = vperm.slane %v3088_v53, 0  ;;  %v6459_v56 = vld [vmem:[#allocation128_spill] sm:$0xff] }
 0x2ae   : > { %v4861_v8 = vperm.slane %v3088_v53, 1  ;;  %v1522_v63 = vadd.f32 %v1514_v26, %v1443_v45  ;;  %v1523_v14 = vadd.f32 %v1515_v61, %v1444_v54  ;;  %v1672_v0 = vmul.f32 %v4826_v6, %v1658_v2  ;;  %v6458_v45 = vld [vmem:[#allocation117_spill] sm:$0xff] }
 0x2af   : > { %v1673_v47 = vmul.f32 %v4828_v35, %v1659_v48  ;;  %v1340_v22 = vmul.f32 %v6457_v4, %v1309_v40  ;;  %v1341_v23 = vmul.f32 %v6457_v4, %v1305_v52  ;;  %v1419_v54 = vmul.f32 %v6458_v45, %v1388_v7  ;;  %v6460_v52 = vld [vmem:[#allocation129_spill] sm:$0xff] }
 0x2b0   : > { %v1601_v26 = vadd.f32 %v1593_v11, %v1522_v63  ;;  %v1602_v61 = vadd.f32 %v1594_v43, %v1523_v14  ;;  %v1420_v40 = vmul.f32 %v6458_v45, %v1384_v25  ;;  %v1463_v4 = vsel %vm706_vm5, %v6460_v52, %v6459_v56 }
 0x2b1   : > { %v4857_v34 = vpop.permute.xlu0 %1694  ;;  %v1697_v16 = vpop.permute.xlu1 %1696  ;;  %v1204_v7 = vadd.f32 %v4754_v1, %v4727_v32  ;;  %v1205_v25 = vadd.f32 %v4757_v12, %v4731_v3  ;;  %v1354_v14 = vmul.f32 %v6448_v55, %v1340_v22 }
 0x2b2   : > { %v1616_v39 = vpop.permute.xlu2 %1615  ;;  %v1701_v41 = vsel %vm949_vm8, %v4606_v15, %v1697_v16  ;;  %v1705_v53 = vsel %vm949_vm8, %v1697_v16, %v4606_v15  ;;  %v1467_v15 = vsel %vm706_vm5, %v6459_v56, %v6460_v52  ;;  %v1680_v11 = vadd.f32 %v1672_v0, %v1601_v26  ;;  %v6463_v26 = vld [vmem:[#allocation127_spill] sm:$0xff] }
 0x2b3   : > { %v1737_v2 = vmul.f32 %v4722_v24, %v1701_v41  ;;  %v1738_v48 = vmul.f32 %v4722_v24, %v1705_v53  ;;  %v1681_v43 = vadd.f32 %v1673_v47, %v1602_v61  ;;  %v1355_v16 = vmul.f32 %v6449_v5, %v1341_v23 }
 0x2b4   : > { %v1542_v41 = vsel %vm787_vm6, %v1529_v17, %v4735_v44  ;;  %v1546_v0 = vsel %vm787_vm6, %v4735_v44, %v1529_v17  ;;  %v1283_v32 = vadd.f32 %v1275_v36, %v1204_v7  ;;  %v1284_v1 = vadd.f32 %v1276_v58, %v1205_v25 }
 0x2b5   : > { %v1751_v63 = vmul.f32 %v4859_v38, %v1737_v2  ;;  %v1752_v24 = vmul.f32 %v4861_v8, %v1738_v48  ;;  %v1498_v12 = vmul.f32 %v6463_v26, %v1463_v4  ;;  %v1499_v22 = vmul.f32 %v6463_v26, %v1467_v15  ;;  %v6468_v26 = vld [vmem:[#allocation72_spill] sm:$0xff] }
 0x2b6   : > { %v1433_v23 = vmul.f32 %v6451_v62, %v1419_v54  ;;  %v1434_v61 = vmul.f32 %v6452_v30, %v1420_v40  ;;  %v1577_v36 = vmul.f32 %v4810_v50, %v1542_v41  ;;  %v1578_v58 = vmul.f32 %v4810_v50, %v1546_v0  ;;  %v6466_v0 = vld [vmem:[#allocation71_spill] sm:$0xff] }
 0x2b7   : > { %v4899_v47 = vadd.f32 %v1751_v63, %v1680_v11  ;;  %v4901_v53 = vadd.f32 %v1752_v24, %v1681_v43  ;;  %v4920_v40 = vperm.slane %v4673_v21, 1  ;;  %v1362_v56 = vadd.f32 %v1354_v14, %v1283_v32  ;;  %v6464_v63 = vld [vmem:[#allocation59_spill] sm:$0xff]  ;;  %v6465_v24 = vld [vmem:[#allocation61_spill] sm:$0xff] }
 0x2b8   : > { %v1363_v52 = vadd.f32 %v1355_v16, %v1284_v1  ;;  %v1512_v15 = vmul.f32 %v4507_v9, %v1498_v12  ;;  %v1513_v11 = vmul.f32 %v4509_v49, %v1499_v22  ;;  %v870_v7 = vsel %vm868_vm7, %v6465_v24, %v6464_v63  ;;  %v6467_v32 = vld [vmem:[#allocation73_spill] sm:$0xff]  ;;  %v3037_v22 = vld [vmem:[%s6095_s3 + $0x10] sm:$0x3] }
 0x2b9   : > { %6461 = vst [vmem:[#allocation28_spill] sm:$0xff] %v4899_v47  ;;  %v4905_v3 = vpop.permute.xlu0 %1605  ;;  %v1608_v48 = vpop.permute.xlu1 %1607  ;;  %v2610_v44 = vmul.f32 %v4899_v47, %v4899_v47  ;;  %v2611_v17 = vmul.f32 %v4901_v53, %v4901_v53  ;;  %v874_v21 = vsel %vm868_vm7, %v6464_v63, %v6465_v24  ;;  %v839_v25 = vmul.f32 %v4701_v20, %v4707_v60 }
 0x2ba   : > { %6462 = vst [vmem:[#allocation13_spill] sm:$0xff] %v4901_v53  ;;  %v1687_v2 = vpop.permute.xlu2 %1686  ;;  %v1621_v45 = vsel %vm868_vm7, %v1608_v48, %v1616_v39  ;;  %v1625_v54 = vsel %vm868_vm7, %v1616_v39, %v1608_v48  ;;  %v838_v39 = vmul.f32 %v4668_v37, %v4704_v29  ;;  %v1441_v14 = vadd.f32 %v1433_v23, %v1362_v56  ;;  %v6517_v53 = vld [vmem:[#allocation138_spill] sm:$0xff]  ;;  %v5121_v47 = vpop.f32.mrf.mxu1 }
 0x2bb   : > { %v2621_v4 = vadd.f32 %v2611_v17, %v2610_v44  ;;  %v1656_v43 = vmul.f32 %v4802_v57, %v1621_v45  ;;  %v1657_v50 = vmul.f32 %v4802_v57, %v1625_v54  ;;  %v1442_v16 = vadd.f32 %v1434_v61, %v1363_v52 }
 0x2bc   : > { %v1591_v57 = vmul.f32 %v4820_v46, %v1577_v36  ;;  %v1592_v41 = vmul.f32 %v4822_v10, %v1578_v58  ;;  %v951_v1 = vsel %vm949_vm8, %v6467_v32, %v6466_v0  ;;  %v955_v29 = vsel %vm949_vm8, %v6466_v0, %v6467_v32  ;;  %v6469_v36 = vld [vmem:[#allocation85_spill] sm:$0xff] }
 0x2bd   : > { %2622 = vadd.xlane.f32.xlu2 %v2621_v4  ;;  %v904_v12 = vmul.f32 %v6468_v26, %v870_v7  ;;  %v905_v60 = vmul.f32 %v6468_v26, %v874_v21  ;;  %v1520_v23 = vadd.f32 %v1512_v15, %v1441_v14  ;;  %v1521_v61 = vadd.f32 %v1513_v11, %v1442_v16 }
 0x2be   : > { %v1670_v48 = vmul.f32 %v4826_v6, %v1656_v43  ;;  %v1671_v44 = vmul.f32 %v4828_v35, %v1657_v50  ;;  %v985_v58 = vmul.f32 %v6469_v36, %v951_v1  ;;  %v986_v45 = vmul.f32 %v6469_v36, %v955_v29 }
 0x2bf   : > { %v1700_v54 = vsel %vm949_vm8, %v1687_v2, %v4857_v34  ;;  %v1704_v56 = vsel %vm949_vm8, %v4857_v34, %v1687_v2  ;;  %v1599_v15 = vadd.f32 %v1591_v57, %v1520_v23  ;;  %v1600_v11 = vadd.f32 %v1592_v41, %v1521_v61  ;;  %v6470_v2 = vld [vmem:[#allocation37_spill] sm:$0xff] }
 0x2c0   : > { %v919_v63 = vmul.f32 %v4710_v51, %v904_v12  ;;  %v920_v24 = vmul.f32 %v4920_v40, %v905_v60  ;;  %v4967_v7 = vperm.slane %v3037_v22, 0  ;;  %v4969_v21 = vperm.slane %v3037_v22, 1  ;;  %v6473_v22 = vld [vmem:[#allocation10_spill] sm:$0xff] }
 0x2c1   : > { %v1533_v17 = vpop.permute.xlu0 %1532  ;;  %v4963_v4 = vpop.permute.xlu1 %1534  ;;  %v1678_v14 = vadd.f32 %v1670_v48, %v1599_v15  ;;  %v1679_v16 = vadd.f32 %v1671_v44, %v1600_v11  ;;  %v740_v57 = vmul.f32 %v6470_v2, %v4620_v18  ;;  %v741_v41 = vmul.f32 %v6470_v2, %v4626_v27  ;;  %v6474_v48 = vld [vmem:[#allocation126_spill] sm:$0xff]  ;;  %v6475_v44 = vld [vmem:[#allocation141_spill] sm:$0xff]  ;;  %v6484_v2 = vld [vmem:[#allocation8_spill] sm:$0xff] }
 0x2c2   : > { %v1724_v52 = vpop.permute.xlu2 %1723  ;;  %v846_v32 = vadd.f32 %v838_v39, %v4635_v59  ;;  %v847_v1 = vadd.f32 %v839_v25, %v4637_v42  ;;  %v1000_v29 = vmul.f32 %v4967_v7, %v985_v58  ;;  %v1001_v26 = vmul.f32 %v4969_v21, %v986_v45  ;;  %v6479_v11 = vld [vmem:[#allocation94_spill] sm:$0xff] }
 0x2c3   : > { %v1735_v43 = vmul.f32 %v1724_v52, %v1700_v54  ;;  %v1736_v50 = vmul.f32 %v1724_v52, %v1704_v56  ;;  %v503_v23 = vmul.f32 %v6473_v22, %v4666_v33  ;;  %v504_v18 = vmul.f32 %v6473_v22, %v4660_v31  ;;  %v6476_v56 = vld [vmem:[#allocation142_spill] sm:$0xff]  ;;  %v6488_v22 = vld [vmem:[#allocation92_spill] sm:$0xff] }
 0x2c4   : > { %v927_v61 = vadd.f32 %v919_v63, %v846_v32  ;;  %v928_v27 = vadd.f32 %v920_v24, %v847_v1  ;;  %v1540_v59 = vsel %vm787_vm6, %v4497_v28, %v1533_v17  ;;  %v1544_v42 = vsel %vm787_vm6, %v1533_v17, %v4497_v28  ;;  %v6486_v1 = vld [vmem:[#allocation131_spill] sm:$0xff] }
 0x2c5   : > { %v1749_v0 = vmul.f32 %v4859_v38, %v1735_v43  ;;  %v1750_v34 = vmul.f32 %v4861_v8, %v1736_v50  ;;  %v438_v31 = vmul.f32 %v6474_v48, %v4650_v13  ;;  %v755_v36 = vmul.f32 %v6475_v44, %v740_v57  ;;  %v6480_v43 = vld [vmem:[#allocation83_spill] sm:$0xff] }
 0x2c6   : > { %v756_v52 = vmul.f32 %v6476_v56, %v741_v41  ;;  %v5005_v15 = vadd.f32 %v1000_v29, %v927_v61  ;;  %v5007_v28 = vadd.f32 %v1001_v26, %v928_v27  ;;  %v1146_v50 = vsel %vm384_vm1, %v6480_v43, %v6479_v11  ;;  %v6485_v41 = vld [vmem:[#allocation130_spill] sm:$0xff]  ;;  %v6487_v26 = vld [vmem:[#allocation103_spill] sm:$0xff] }
 0x2c7   : > { %v4981_v12 = vadd.f32 %v1749_v0, %v1678_v14  ;;  %v4983_v60 = vadd.f32 %v1750_v34, %v1679_v16  ;;  %v1150_v13 = vsel %vm384_vm1, %v6479_v11, %v6480_v43  ;;  %v6481_v14 = vld [vmem:[#allocation17_spill] sm:$0xff]  ;;  %v6482_v16 = vld [vmem:[#allocation6_spill] sm:$0xff]  ;;  %v6483_v34 = vld [vmem:[#allocation23_spill] sm:$0xff]  ;;  %v518_v32 = vmul.f32 %v6485_v41, %v503_v23 }
 0x2c8   : > { %6477 = vst [vmem:[#allocation9_spill] sm:$0xff] %v5005_v15  ;;  %v5021_v0 = vadd.f32 %v6482_v16, %v6481_v14  ;;  %v5025_v57 = vadd.f32 %v6484_v2, %v6483_v34  ;;  %v519_v29 = vmul.f32 %v6486_v1, %v504_v18  ;;  %v1225_v61 = vsel %vm463_vm2, %v6488_v22, %v6487_v26  ;;  %v6491_v23 = vld [vmem:[#allocation93_spill] sm:$0xff]  ;;  %v6494_v43 = vld [vmem:[#allocation139_spill] sm:$0xff] }
 0x2c9   : > { %6471 = vst [vmem:[#allocation24_spill] sm:$0xff] %v4981_v12  ;;  %v1556_v39 = vpop.permute.xlu0 %1555  ;;  %v2608_v25 = vmul.f32 %v4981_v12, %v4981_v12  ;;  %v2609_v33 = vmul.f32 %v4983_v60, %v4983_v60  ;;  %v5002_v54 = vpop.permute.xlu1 %1560  ;;  %v1229_v27 = vsel %vm463_vm2, %v6487_v26, %v6488_v22  ;;  %v1181_v18 = vmul.f32 %v6491_v23, %v1146_v50  ;;  %v6500_v41 = vld [vmem:[#allocation113_spill] sm:$0xff] }
 0x2ca   : > { %6472 = vst [vmem:[#allocation31_spill] sm:$0xff] %v4983_v60  ;;  %v1573_v58 = vmul.f32 %v1556_v39, %v1540_v59  ;;  %v1574_v45 = vmul.f32 %v1556_v39, %v1544_v42  ;;  %v6489_v59 = vld [vmem:[#allocation18_spill] sm:$0xff]  ;;  %v2534_v48 = vmul.f32 %v5005_v15, %v5005_v15  ;;  %v446_v14 = vadd.f32 %v438_v31, %v6494_v43  ;;  %v6501_v1 = vld [vmem:[#allocation101_spill] sm:$0xff]  ;;  %v1640_v22 = vpop.permute.xlu2 %1639 }
 0x2cb   : > { %6478 = vst [vmem:[#allocation19_spill] sm:$0xff] %v5007_v28  ;;  %v2618_v17 = vadd.f32 %v2609_v33, %v2608_v25  ;;  %v6490_v39 = vld [vmem:[#allocation22_spill] sm:$0xff]  ;;  %v1180_v33 = vmul.f32 %v6491_v23, %v1150_v13  ;;  %v1304_v26 = vsel %vm544_vm3, %v6501_v1, %v6500_v41  ;;  %v1308_v31 = vsel %vm544_vm3, %v6500_v41, %v6501_v1  ;;  %v6505_v23 = vld [vmem:[#allocation44_spill] sm:$0xff] }
 0x2cc   : > { %v1587_v63 = vmul.f32 %v4820_v46, %v1573_v58  ;;  %v1588_v24 = vmul.f32 %v4822_v10, %v1574_v45  ;;  %v2535_v58 = vmul.f32 %v5007_v28, %v5007_v28  ;;  %v6492_v45 = vld [vmem:[#allocation140_spill] sm:$0xff]  ;;  %v6499_v13 = vld [vmem:[#allocation102_spill] sm:$0xff]  ;;  %v6510_v28 = vld [vmem:[#allocation111_spill] sm:$0xff] }
 0x2cd   : > { %2619 = vadd.xlane.f32.xlu0 %v2618_v17  ;;  %v6493_v17 = vld [vmem:[#allocation21_spill] sm:$0xff]  ;;  %v1259_v2 = vmul.f32 %v6499_v13, %v1229_v27  ;;  %v1260_v50 = vmul.f32 %v6499_v13, %v1225_v61  ;;  %v6509_v1 = vld [vmem:[#allocation122_spill] sm:$0xff] }
 0x2ce   : > { %v5038_v42 = vadd.f32 %v1587_v63, %v6489_v59  ;;  %v5041_v25 = vadd.f32 %v1588_v24, %v6490_v39  ;;  %v445_v11 = vadd.f32 %v6493_v17, %v6492_v45  ;;  %v6495_v63 = vld [vmem:[#allocation20_spill] sm:$0xff]  ;;  %v6497_v24 = vld [vmem:[#allocation25_spill] sm:$0xff]  ;;  %v5070_v59 = vadd.f32 %v519_v29, %v446_v14  ;;  %v6503_v39 = vld [vmem:[#allocation39_spill] sm:$0xff] }
 0x2cf   : > { %v5053_v16 = vadd.f32 %v755_v36, %v6495_v63  ;;  %v5056_v34 = vadd.f32 %v756_v52, %v6497_v24  ;;  %v6502_v52 = vld [vmem:[#allocation42_spill] sm:$0xff]  ;;  %v6504_v27 = vld [vmem:[#allocation57_spill] sm:$0xff]  ;;  %v2543_v63 = vadd.f32 %v2535_v58, %v2534_v48  ;;  %v6508_v24 = vld [vmem:[#allocation112_spill] sm:$0xff]  ;;  %v1383_v15 = vsel %vm625_vm4, %v6510_v28, %v6509_v1 }
 0x2d0   : > { %v5068_v36 = vadd.f32 %v518_v32, %v445_v11  ;;  %v552_v61 = vsel %vm544_vm3, %v6503_v39, %v6502_v52  ;;  %v790_v45 = vsel %vm787_vm6, %v6505_v23, %v6504_v27  ;;  %v794_v43 = vsel %vm787_vm6, %v6504_v27, %v6505_v23  ;;  %v6506_v32 = vld [vmem:[#allocation104_spill] sm:$0xff]  ;;  %v6507_v29 = vld [vmem:[#allocation105_spill] sm:$0xff]  ;;  %v6514_v48 = vld [vmem:[#allocation106_spill] sm:$0xff] }
 0x2d1   : > { %6496 = vst [vmem:[#allocation26_spill] sm:$0xff] %v5053_v16  ;;  %v1614_v17 = vpop.permute.xlu1 %1613  ;;  %v1194_v11 = vmul.f32 %v6506_v32, %v1180_v33  ;;  %v1195_v14 = vmul.f32 %v6507_v29, %v1181_v18  ;;  %v1338_v13 = vmul.f32 %v6508_v24, %v1308_v31  ;;  %v1339_v41 = vmul.f32 %v6508_v24, %v1304_v26  ;;  %v6511_v27 = vld [vmem:[#allocation40_spill] sm:$0xff]  ;;  %v6515_v31 = vld [vmem:[#allocation107_spill] sm:$0xff]  ;;  %v6521_v16 = vld [vmem:[#allocation137_spill] sm:$0xff] }
 0x2d2   : > { %6498 = vst [vmem:[#allocation27_spill] sm:$0xff] %v5056_v34  ;;  %v1387_v60 = vsel %vm625_vm4, %v6509_v1, %v6510_v28  ;;  %v6512_v23 = vld [vmem:[#allocation84_spill] sm:$0xff]  ;;  %v1273_v58 = vmul.f32 %v6514_v48, %v1259_v2  ;;  %v1274_v26 = vmul.f32 %v6515_v31, %v1260_v50  ;;  %v548_v29 = vsel %vm544_vm3, %v6502_v52, %v6503_v39  ;;  %v6520_v48 = vld [vmem:[#allocation58_spill] sm:$0xff] }
 0x2d3   : > { %v1123_v33 = vmul.f32 %v6512_v23, %v6511_v27  ;;  %v6513_v32 = vld [vmem:[#allocation36_spill] sm:$0xff]  ;;  %v825_v52 = vmul.f32 %v6520_v48, %v790_v45  ;;  %v826_v39 = vmul.f32 %v6520_v48, %v794_v43  ;;  %v1353_v31 = vmul.f32 %v6449_v5, %v1339_v41 }
 0x2d4   : > { %v1124_v18 = vmul.f32 %v6512_v23, %v6513_v32  ;;  %v6516_v24 = vld [vmem:[#allocation12_spill] sm:$0xff]  ;;  %v1620_v5 = vsel %vm868_vm7, %v4905_v3, %v1614_v17  ;;  %v1624_v45 = vsel %vm868_vm7, %v1614_v17, %v4905_v3 }
 0x2d5   : > { %2544 = vadd.xlane.f32.xlu0 %v2543_v63  ;;  %v584_v12 = vmul.f32 %v6516_v24, %v552_v61  ;;  %v6518_v28 = vld [vmem:[#allocation120_spill] sm:$0xff]  ;;  %v1202_v27 = vadd.f32 %v1194_v11, %v1123_v33  ;;  %v6519_v63 = vld [vmem:[#allocation121_spill] sm:$0xff]  ;;  %v1352_v61 = vmul.f32 %v6448_v55, %v1338_v13  ;;  %v1693_v33 = vpop.permute.xlu2 %1692 }
 0x2d6   : > { %v1462_v1 = vsel %vm706_vm5, %v6518_v28, %v6517_v53  ;;  %v1466_v2 = vsel %vm706_vm5, %v6517_v53, %v6518_v28  ;;  %v1203_v50 = vadd.f32 %v1195_v14, %v1124_v18  ;;  %v1417_v23 = vmul.f32 %v6519_v63, %v1387_v60  ;;  %v6522_v60 = vld [vmem:[#allocation136_spill] sm:$0xff]  ;;  %v6523_v18 = vld [vmem:[#allocation69_spill] sm:$0xff] }
 0x2d7   : > { %v1418_v32 = vmul.f32 %v6519_v63, %v1383_v15  ;;  %v1281_v56 = vadd.f32 %v1273_v58, %v1202_v27  ;;  %v1496_v53 = vmul.f32 %v6521_v16, %v1462_v1  ;;  %v1497_v11 = vmul.f32 %v6521_v16, %v1466_v2  ;;  %v6525_v2 = vld [vmem:[#allocation132_spill] sm:$0xff] }
 0x2d8   : > { %v1282_v34 = vadd.f32 %v1274_v26, %v1203_v50  ;;  %v1541_v15 = vsel %vm787_vm6, %v6522_v60, %v4963_v4  ;;  %v1545_v55 = vsel %vm787_vm6, %v4963_v4, %v6522_v60  ;;  %v1431_v16 = vmul.f32 %v6451_v62, %v1417_v23  ;;  %v6524_v4 = vld [vmem:[#allocation56_spill] sm:$0xff]  ;;  %v6526_v50 = vld [vmem:[#allocation82_spill] sm:$0xff]  ;;  %v6529_v60 = vld [vmem:[#allocation81_spill] sm:$0xff] }
 0x2d9   : > { %v1685_v43 = vpop.permute.xlu1 %1684  ;;  %v1432_v14 = vmul.f32 %v6452_v30, %v1418_v32  ;;  %v1575_v13 = vmul.f32 %v5002_v54, %v1541_v15  ;;  %v1576_v41 = vmul.f32 %v5002_v54, %v1545_v55  ;;  %v871_v58 = vsel %vm868_vm7, %v6524_v4, %v6523_v18  ;;  %v6527_v63 = vld [vmem:[#allocation68_spill] sm:$0xff]  ;;  %v5177_v55 = vpop.f32.mrf.mxu1 }
 0x2da   : > { %v875_v3 = vsel %vm868_vm7, %v6523_v18, %v6524_v4  ;;  %v1360_v17 = vadd.f32 %v1352_v61, %v1281_v56  ;;  %v1361_v26 = vadd.f32 %v1353_v31, %v1282_v34  ;;  %v1510_v62 = vmul.f32 %v4507_v9, %v1496_v53 }
 0x2db   : > { %v1511_v30 = vmul.f32 %v4509_v49, %v1497_v11  ;;  %v1654_v28 = vmul.f32 %v1640_v22, %v1620_v5  ;;  %v1655_v1 = vmul.f32 %v1640_v22, %v1624_v45  ;;  %v585_v54 = vmul.f32 %v6516_v24, %v548_v29  ;;  %v6528_v24 = vld [vmem:[#allocation70_spill] sm:$0xff] }
 0x2dc   : > { %v599_v27 = vmul.f32 %v6525_v2, %v584_v12  ;;  %v952_v23 = vsel %vm949_vm8, %v6527_v63, %v6526_v50  ;;  %v956_v56 = vsel %vm949_vm8, %v6526_v50, %v6527_v63  ;;  %v1439_v34 = vadd.f32 %v1431_v16, %v1360_v17  ;;  %v3097_v63 = vld [vmem:[%s6094_s2 + $0x1c0] sm:$0xff] }
 0x2dd   : > { %v1440_v9 = vadd.f32 %v1432_v14, %v1361_v26  ;;  %v1589_v49 = vmul.f32 %v4820_v46, %v1575_v13  ;;  %v1590_v22 = vmul.f32 %v4822_v10, %v1576_v41  ;;  %v840_v29 = vmul.f32 %v4668_v37, %v825_v52  ;;  %v6530_v13 = vld [vmem:[#allocation43_spill] sm:$0xff]  ;;  %v6531_v41 = vld [vmem:[#allocation45_spill] sm:$0xff]  ;;  %v1604_v17 = vpop.permute.xlu2 %1603 }
 0x2de   : > { %v841_v12 = vmul.f32 %v4701_v20, %v826_v39  ;;  %v906_v32 = vmul.f32 %v6528_v24, %v871_v58  ;;  %v907_v48 = vmul.f32 %v6528_v24, %v875_v3  ;;  %v1518_v61 = vadd.f32 %v1510_v62, %v1439_v34  ;;  %v1612_v34 = vpop.permute.xlu0 %1611 }
 0x2df   : > { %v1519_v31 = vadd.f32 %v1511_v30, %v1440_v9  ;;  %v1668_v53 = vmul.f32 %v4826_v6, %v1654_v28  ;;  %v1669_v11 = vmul.f32 %v4828_v35, %v1655_v1  ;;  %v987_v15 = vmul.f32 %v6529_v60, %v952_v23  ;;  %v6532_v30 = vld [vmem:[#allocation133_spill] sm:$0xff] }
 0x2e0   : > { %v988_v46 = vmul.f32 %v6529_v60, %v956_v56  ;;  %v1699_v10 = vsel %vm949_vm8, %v1685_v43, %v1693_v33  ;;  %v1703_v52 = vsel %vm949_vm8, %v1693_v33, %v1685_v43  ;;  %v1597_v5 = vadd.f32 %v1589_v49, %v1518_v61  ;;  %v6536_v61 = vld [vmem:[#allocation46_spill] sm:$0xff] }
 0x2e1   : > { %v1719_v39 = vpop.permute.xlu1 %1718  ;;  %v1598_v45 = vadd.f32 %v1590_v22, %v1519_v31  ;;  %v629_v18 = vsel %vm625_vm4, %v6531_v41, %v6530_v13  ;;  %v633_v4 = vsel %vm625_vm4, %v6530_v13, %v6531_v41  ;;  %v921_v58 = vmul.f32 %v4710_v51, %v906_v32  ;;  %v6537_v31 = vld [vmem:[#allocation48_spill] sm:$0xff]  ;;  %v6539_v13 = vld [vmem:[#allocation50_spill] sm:$0xff] }
 0x2e2   : > { %v1733_v16 = vmul.f32 %v1719_v39, %v1699_v10  ;;  %v1734_v14 = vmul.f32 %v1719_v39, %v1703_v52  ;;  %v922_v43 = vmul.f32 %v4920_v40, %v907_v48  ;;  %v1676_v33 = vadd.f32 %v1668_v53, %v1597_v5 }
 0x2e3   : > { %v1677_v3 = vadd.f32 %v1669_v11, %v1598_v45  ;;  %v600_v28 = vmul.f32 %v6532_v30, %v585_v54  ;;  %v607_v1 = vadd.f32 %v599_v27, %v5068_v36  ;;  %v848_v2 = vadd.f32 %v840_v29, %v5021_v0  ;;  %v6533_v54 = vld [vmem:[#allocation14_spill] sm:$0xff]  ;;  %v6534_v0 = vld [vmem:[#allocation52_spill] sm:$0xff]  ;;  %v6535_v27 = vld [vmem:[#allocation51_spill] sm:$0xff] }
 0x2e4   : > { %v1747_v26 = vmul.f32 %v4859_v38, %v1733_v16  ;;  %v1748_v62 = vmul.f32 %v4861_v8, %v1734_v14  ;;  %v1002_v50 = vmul.f32 %v4967_v7, %v987_v15  ;;  %v849_v23 = vadd.f32 %v841_v12, %v5025_v57  ;;  %v6538_v16 = vld [vmem:[#allocation134_spill] sm:$0xff] }
 0x2e5   : > { %v1003_v56 = vmul.f32 %v4969_v21, %v988_v46  ;;  %v665_v22 = vmul.f32 %v6533_v54, %v633_v4  ;;  %v666_v36 = vmul.f32 %v6533_v54, %v629_v18  ;;  %v788_v29 = vsel %vm787_vm6, %v6535_v27, %v6534_v0  ;;  %v5236_v4 = vpop.f32.mrf.mxu1 }
 0x2e6   : > { %v5200_v9 = vadd.f32 %v1747_v26, %v1676_v33  ;;  %v5202_v49 = vadd.f32 %v1748_v62, %v1677_v3  ;;  %v929_v24 = vadd.f32 %v921_v58, %v848_v2  ;;  %v792_v57 = vsel %vm787_vm6, %v6534_v0, %v6535_v27  ;;  %v6540_v58 = vld [vmem:[#allocation64_spill] sm:$0xff]  ;;  %v6542_v26 = vld [vmem:[#allocation135_spill] sm:$0xff]  ;;  %v6546_v0 = vld [vmem:[#allocation62_spill] sm:$0xff] }
 0x2e7   : > { %v930_v12 = vadd.f32 %v922_v43, %v849_v23  ;;  %v710_v53 = vsel %vm706_vm5, %v6537_v31, %v6536_v61  ;;  %v1619_v11 = vsel %vm868_vm7, %v1604_v17, %v1612_v34  ;;  %v1623_v60 = vsel %vm868_vm7, %v1612_v34, %v1604_v17  ;;  %v6541_v43 = vld [vmem:[#allocation63_spill] sm:$0xff] }
 0x2e8   : > { %v2606_v32 = vmul.f32 %v5200_v9, %v5200_v9  ;;  %v2607_v48 = vmul.f32 %v5202_v49, %v5202_v49  ;;  %v5226_v46 = vadd.f32 %v1002_v50, %v929_v24  ;;  %v5231_v45 = vadd.f32 %v600_v28, %v5070_v59  ;;  %v6543_v28 = vld [vmem:[#allocation41_spill] sm:$0xff]  ;;  %v6544_v50 = vld [vmem:[#allocation76_spill] sm:$0xff] }
 0x2e9   : > { %1850 = vperm.xlu0 %3212, %v3097_v63   ;;  %v1635_v15 = vpop.permute.xlu1 %1634  ;;  %v5228_v5 = vadd.f32 %v1003_v56, %v930_v12  ;;  %v680_v14 = vmul.f32 %v6538_v16, %v665_v22  ;;  %v821_v41 = vmul.f32 %v6539_v13, %v788_v29  ;;  %v822_v18 = vmul.f32 %v6539_v13, %v792_v57  ;;  %v6545_v63 = vld [vmem:[#allocation75_spill] sm:$0xff]  ;;  %v6550_v13 = vld [vmem:[#allocation26_spill] sm:$0xff] }
 0x2ea   : > { %v1652_v10 = vmul.f32 %v1635_v15, %v1619_v11  ;;  %v1653_v52 = vmul.f32 %v1635_v15, %v1623_v60  ;;  %v2615_v39 = vadd.f32 %v2607_v48, %v2606_v32  ;;  %v869_v33 = vsel %vm868_vm7, %v6541_v43, %v6540_v58  ;;  %v6547_v12 = vld [vmem:[#allocation55_spill] sm:$0xff]  ;;  %v6548_v32 = vld [vmem:[#allocation54_spill] sm:$0xff] }
 0x2eb   : > { %v873_v3 = vsel %vm868_vm7, %v6540_v58, %v6541_v43  ;;  %v681_v62 = vmul.f32 %v6542_v26, %v666_v36  ;;  %v714_v30 = vsel %vm706_vm5, %v6536_v61, %v6537_v31  ;;  %v746_v2 = vmul.f32 %v6543_v28, %v710_v53  ;;  %v1691_v61 = vpop.permute.xlu0 %1690  ;;  %v6549_v53 = vld [vmem:[#allocation74_spill] sm:$0xff]  ;;  %v6551_v43 = vld [vmem:[#allocation27_spill] sm:$0xff] }
 0x2ec   : > { %v1666_v59 = vmul.f32 %v4826_v6, %v1652_v10  ;;  %v1667_v17 = vmul.f32 %v4828_v35, %v1653_v52  ;;  %2616 = vadd.xlane.f32.xlu1 %v2615_v39  ;;  %v950_v23 = vsel %vm949_vm8, %v6545_v63, %v6544_v50  ;;  %v3100_v6 = vld [vmem:[%s6094_s2 + $0x1d8] sm:$0xff]  ;;  %v1683_v35 = vpop.permute.xlu2 %1682  ;;  %v2536_v54 = vmul.f32 %v5226_v46, %v5226_v46 }
 0x2ed   : > { %v2537_v22 = vmul.f32 %v5228_v5, %v5228_v5  ;;  %v836_v36 = vmul.f32 %v4668_v37, %v821_v41  ;;  %v902_v27 = vmul.f32 %v6546_v0, %v869_v33  ;;  %v903_v29 = vmul.f32 %v6546_v0, %v873_v3  ;;  %v6552_v3 = vld [vmem:[#allocation53_spill] sm:$0xff] }
 0x2ee   : > { %v1674_v56 = vadd.f32 %v1666_v59, %v5038_v42  ;;  %v1675_v34 = vadd.f32 %v1667_v17, %v5041_v25  ;;  %v954_v24 = vsel %vm949_vm8, %v6544_v50, %v6545_v63  ;;  %v688_v42 = vadd.f32 %v680_v14, %v607_v1 }
 0x2ef   : > { %v747_v25 = vmul.f32 %v6543_v28, %v714_v30  ;;  %v837_v57 = vmul.f32 %v4701_v20, %v822_v18  ;;  %v791_v48 = vsel %vm787_vm6, %v6548_v32, %v6547_v12  ;;  %v795_v31 = vsel %vm787_vm6, %v6547_v12, %v6548_v32  ;;  %v5298_v30 = vpop.f32.mrf.mxu0  ;;  %v6558_v12 = vld [vmem:[#allocation65_spill] sm:$0xff] }
 0x2f0   : > { %v983_v11 = vmul.f32 %v6549_v53, %v950_v23  ;;  %v1698_v1 = vsel %vm949_vm8, %v1683_v35, %v1691_v61  ;;  %v1702_v60 = vsel %vm949_vm8, %v1691_v61, %v1683_v35  ;;  %v984_v10 = vmul.f32 %v6549_v53, %v954_v24 }
 0x2f1   : > { %1865 = vperm.xlu0 %3212, %v3100_v6   ;;  %v1714_v15 = vpop.permute.xlu1 %1713  ;;  %v2546_v16 = vadd.f32 %v2537_v22, %v2536_v54  ;;  %v761_v14 = vmul.f32 %v6475_v44, %v746_v2  ;;  %v844_v41 = vadd.f32 %v836_v36, %v6550_v13  ;;  %v917_v18 = vmul.f32 %v4710_v51, %v902_v27  ;;  %v6553_v44 = vld [vmem:[#allocation67_spill] sm:$0xff]  ;;  %v6554_v2 = vld [vmem:[#allocation66_spill] sm:$0xff] }
 0x2f2   : > { %v1731_v52 = vmul.f32 %v1714_v15, %v1698_v1  ;;  %v1732_v39 = vmul.f32 %v1714_v15, %v1702_v60  ;;  %v918_v58 = vmul.f32 %v4920_v40, %v903_v29  ;;  %v845_v33 = vadd.f32 %v837_v57, %v6551_v43  ;;  %v6556_v27 = vld [vmem:[#allocation79_spill] sm:$0xff]  ;;  %v6557_v29 = vld [vmem:[#allocation78_spill] sm:$0xff] }
 0x2f3   : > { %v827_v59 = vmul.f32 %v6552_v3, %v791_v48  ;;  %v828_v28 = vmul.f32 %v6552_v3, %v795_v31  ;;  %v872_v50 = vsel %vm868_vm7, %v6554_v2, %v6553_v44  ;;  %v876_v63 = vsel %vm868_vm7, %v6553_v44, %v6554_v2  ;;  %v3099_v44 = vld [vmem:[%s6094_s2 + $0x1d0] sm:$0xff]  ;;  %v3104_v2 = vld [vmem:[%s6094_s2 + $0x58] sm:$0xff] }
 0x2f4   : > { %v1745_v17 = vmul.f32 %v4859_v38, %v1731_v52  ;;  %v1746_v26 = vmul.f32 %v4861_v8, %v1732_v39  ;;  %2547 = vadd.xlane.f32.xlu1 %v2546_v16  ;;  %v998_v23 = vmul.f32 %v4967_v7, %v983_v11  ;;  %v5310_v38 = vpop.f32.mrf.mxu1  ;;  %v6555_v8 = vld [vmem:[#allocation142_spill] sm:$0xff]  ;;  %v999_v35 = vmul.f32 %v4969_v21, %v984_v10  ;;  %v6559_v11 = vld [vmem:[#allocation77_spill] sm:$0xff] }
 0x2f5   : > { %v762_v6 = vmul.f32 %v6555_v8, %v747_v25  ;;  %v925_v36 = vadd.f32 %v917_v18, %v844_v41  ;;  %v926_v0 = vadd.f32 %v918_v58, %v845_v33  ;;  %v953_v24 = vsel %vm949_vm8, %v6557_v29, %v6556_v27  ;;  %v3108_v8 = vld [vmem:[%s6094_s2 + $0xb8] sm:$0xff] }
 0x2f6   : > { %v5314_v54 = vadd.f32 %v1745_v17, %v1674_v56  ;;  %v5316_v22 = vadd.f32 %v1746_v26, %v1675_v34  ;;  %v957_v57 = vsel %vm949_vm8, %v6556_v27, %v6557_v29  ;;  %v908_v25 = vmul.f32 %v6558_v12, %v872_v50  ;;  %v3098_v17 = vld [vmem:[%s6094_s2 + $0x1c8] sm:$0xff] }
 0x2f7   : > { %v909_v32 = vmul.f32 %v6558_v12, %v876_v63  ;;  %v689_v48 = vadd.f32 %v681_v62, %v5231_v45  ;;  %v842_v61 = vmul.f32 %v4668_v37, %v827_v59  ;;  %v843_v31 = vmul.f32 %v4701_v20, %v828_v28  ;;  %v5351_v58 = vpop.f32.mrf.mxu0  ;;  %v3107_v28 = vld [vmem:[%s6094_s2 + $0xb0] sm:$0xff] }
 0x2f8   : > { %v2604_v56 = vmul.f32 %v5314_v54, %v5314_v54  ;;  %v2605_v34 = vmul.f32 %v5316_v22, %v5316_v22  ;;  %v5337_v53 = vadd.f32 %v998_v23, %v925_v36  ;;  %v989_v1 = vmul.f32 %v6559_v11, %v953_v24 }
 0x2f9   : > { %1890 = vrot.lane.b32.xlu0 %v5310_v38, %s3297_s18  ;;  %v990_v60 = vmul.f32 %v6559_v11, %v957_v57  ;;  %v5341_v10 = vadd.f32 %v999_v35, %v926_v0  ;;  %v769_v52 = vadd.f32 %v761_v14, %v688_v42  ;;  %v770_v39 = vadd.f32 %v762_v6, %v689_v48  ;;  %v3102_v35 = vld [vmem:[%s6094_s2 + $0x48] sm:$0xff]  ;;  %v3112_v0 = vld [vmem:[%s6094_s2 + $0x110] sm:$0xff] }
 0x2fa   : > { %v2612_v15 = vadd.f32 %v2605_v34, %v2604_v56  ;;  %v923_v16 = vmul.f32 %v4710_v51, %v908_v25  ;;  %v924_v13 = vmul.f32 %v4920_v40, %v909_v32  ;;  %v1004_v20 = vmul.f32 %v4967_v7, %v989_v1  ;;  %v3103_v7 = vld [vmem:[%s6094_s2 + $0x50] sm:$0xff]  ;;  %v6561_v34 = vld [vmem:[#allocation13_spill] sm:$0xff] }
 0x2fb   : > { %v850_v45 = vadd.f32 %v842_v61, %v769_v52  ;;  %v851_v37 = vadd.f32 %v843_v31, %v770_v39  ;;  %v1005_v62 = vmul.f32 %v4969_v21, %v990_v60  ;;  %v2532_v41 = vmul.f32 %v5337_v53, %v5337_v53  ;;  %v6560_v32 = vld [vmem:[#allocation28_spill] sm:$0xff] }
 0x2fc   : > { %2613 = vadd.xlane.f32.xlu2 %v2612_v15  ;;  %v2533_v18 = vmul.f32 %v5341_v10, %v5341_v10  ;;  %v3113_v15 = vld [vmem:[%s6094_s2 + $0x118] sm:$0xff] }
 0x2fd   : > { %v931_v42 = vadd.f32 %v923_v16, %v850_v45  ;;  %v932_v14 = vadd.f32 %v924_v13, %v851_v37  ;;  %v6562_v13 = vld [vmem:[#allocation24_spill] sm:$0xff]  ;;  %v6563_v37 = vld [vmem:[#allocation31_spill] sm:$0xff] }
 0x2fe   : > { %v2540_v51 = vadd.f32 %v2533_v18, %v2532_v41  ;;  %v3106_v41 = vld [vmem:[%s6094_s2 + $0xa8] sm:$0xff]  ;;  %v3117_v18 = vld [vmem:[%s6094_s2 + $0x170] sm:$0xff] }
 0x2ff   : > { %v5355_v40 = vadd.f32 %v1004_v20, %v931_v42  ;;  %v5357_v43 = vadd.f32 %v1005_v62, %v932_v14  ;;  %v5366_v3 = vpop.f32.mrf.mxu0 }
 0x301   : > { %1888 = vrot.lane.b32.xlu0 %v5236_v4, %s3297_s18  ;;  %v2538_v21 = vmul.f32 %v5355_v40, %v5355_v40  ;;  %v2539_v33 = vmul.f32 %v5357_v43, %v5357_v43 }
 0x303   : > { %v2549_v59 = vadd.f32 %v2539_v33, %v2538_v21  ;;  %v3101_v33 = vld [vmem:[%s6094_s2 + $0x40] sm:$0xff] }
 0x304   : > { %2541 = vadd.xlane.f32.xlu2 %v2540_v51 }
 0x307   : > { %v5373_v26 = vpop.f32.mrf.mxu0 }
 0x309   : > { %1917 = vperm.xlu0 %3212, %v3103_v7  }
 0x30c   : > { %2550 = vadd.xlane.f32.xlu2 %v2549_v59 }
 0x30d   : > { %1855 = vperm.xlu1 %3213, %v3098_v17  }
 0x311   : > { %1886 = vrot.lane.b32.xlu0 %v5177_v55, %s3297_s18 }
 0x315   : > { %1882 = vrot.lane.b32.xlu1 %v5373_v26, %s3297_s18 }
 0x319   : > { %2040 = vrot.lane.b32.xlu0 %v5373_v26, %s3298_s19 }
 0x31d   : > { %1880 = vrot.lane.b32.xlu1 %v5366_v3, %s3297_s18 }
 0x321   : > { %1996 = vperm.xlu0 %3212, %v3107_v28  }
 0x324   : > { %1860 = vperm.xlu2 %3214, %v3099_v44  }
 0x325   : > { %1969 = vrot.lane.b32.xlu1 %v5310_v38, %s3296_s17 }
 0x329   : > { %1884 = vrot.lane.b32.xlu0 %v5121_v47, %s3297_s18 }
 0x32c   : > { %1922 = vperm.xlu2 %3214, %v3104_v2  }
 0x32d   : > { %1878 = vrot.lane.b32.xlu1 %v5351_v58, %s3297_s18 }
 0x330   : > { %v2623_v50 = vpop.xlane.xlu2 %2622 }
 0x331   : > { %2038 = vrot.lane.b32.xlu0 %v5366_v3, %s3298_s19  ;;  %v2627_v63 = vmax.f32 %v2623_v50, 1e-24 }
 0x333   : > { %3215 = vrsqrt.f32 %v2627_v63  ;;  %vm2664_vm10 = vweird.f32 %v2627_v63 }
 0x334   : > { %1961 = vrot.lane.b32.xlu2 %v5373_v26, %s3296_s17 }
 0x335   : > { %1967 = vrot.lane.b32.xlu1 %v5236_v4, %s3296_s17 }
 0x339   : > { %2127 = vrot.lane.b32.xlu0 %v5310_v38, %s3299_s20  ;;  %v3216_v23 = vpop.eup %3215 }
 0x33a   : > { %v2659_v6 = vmul.f32 %v3216_v23, %v2627_v63  ;;  %vm2665_vm9 = vweird.f32 %v3216_v23 }
 0x33b   : > { %vm2666_vm11 = vmor %vm2664_vm10, %vm2665_vm9 }
 0x33c   : > { %v2660_v36 = vmul.f32 %v3216_v23, %v2659_v6  ;;  %2001 = vperm.xlu2 %3214, %v3108_v8  }
 0x33d   : > { %1912 = vperm.xlu1 %3213, %v3102_v35  }
 0x33e   : > { %v2661_v27 = vmul.f32 0.5, %v2660_v36 }
 0x340   : > { %v2620_v29 = vpop.xlane.xlu0 %2619  ;;  %v2662_v24 = vsub.f32 1.5, %v2661_v27 }
 0x341   : > { %v2626_v57 = vmax.f32 %v2620_v29, 1e-24  ;;  %2075 = vperm.xlu0 %3212, %v3112_v0  }
 0x342   : > { %v2663_v12 = vmul.f32 %v3216_v23, %v2662_v24 }
 0x343   : > { %3217 = vrsqrt.f32 %v2626_v57  ;;  %vm2654_vm13 = vweird.f32 %v2626_v57 }
 0x344   : > { %1959 = vrot.lane.b32.xlu2 %v5366_v3, %s3296_s17  ;;  %v2667_v25 = vsel %vm2666_vm11, %v3216_v23, %v2663_v12  ;;  %v3118_v23 = vld [vmem:[%s6094_s2 + $0x178] sm:$0xff] }
 0x345   : > { %1876 = vrot.lane.b32.xlu1 %v5298_v30, %s3297_s18  ;;  %v2674_v56 = vmul.f32 %v2667_v25, %v6560_v32  ;;  %v2675_v48 = vmul.f32 %v2667_v25, %v6561_v34 }
 0x347   : > { %2688 = vmatpush.xpose.msrb.mxu2 %v2674_v56  ;;  %2717 = vmatpush.xpose.msrb.mxu3 %v2675_v48  ;;  %v3111_v56 = vld [vmem:[%s6094_s2 + $0x108] sm:$0xff] }
 0x348   : > { %v2545_v39 = vpop.xlane.xlu0 %2544 }
 0x349   : > { %v3218_v61 = vpop.eup %3217  ;;  %1963 = vrot.lane.b32.xlu0 %v5121_v47, %s3296_s17  ;;  %v5459_v17 = vmax.f32 %v2545_v39, 1e-24 }
 0x34a   : > { %v2649_v31 = vmul.f32 %v3218_v61, %v2626_v57  ;;  %vm2655_vm12 = vweird.f32 %v3218_v61 }
 0x34b   : > { %vm2656_vm14 = vmor %vm2654_vm13, %vm2655_vm12 }
 0x34c   : > { %v2650_v11 = vmul.f32 %v3218_v61, %v2649_v31  ;;  %2048 = vrot.lane.b32.xlu2 %v5310_v38, %s3298_s19  ;;  %v3122_v31 = vld [vmem:[%s6094_s2 + $0x230] sm:$0xff] }
 0x34d   : > { %1965 = vrot.lane.b32.xlu1 %v5177_v55, %s3296_s17 }
 0x34e   : > { %v2651_v1 = vmul.f32 0.5, %v2650_v11 }
 0x350   : > { %v2652_v60 = vsub.f32 1.5, %v2651_v1 }
 0x351   : > { %2117 = vrot.lane.b32.xlu0 %v5366_v3, %s3299_s20 }
 0x352   : > { %v2653_v52 = vmul.f32 %v3218_v61, %v2652_v60 }
 0x354   : > { %v2657_v16 = vsel %vm2656_vm14, %v3218_v61, %v2653_v52  ;;  %2080 = vperm.xlu2 %3214, %v3113_v15  }
 0x355   : > { %v2672_v45 = vmul.f32 %v2657_v16, %v6562_v13  ;;  %v2673_v20 = vmul.f32 %v2657_v16, %v6563_v37  ;;  %2119 = vrot.lane.b32.xlu1 %v5373_v26, %s3299_s20 }
 0x357   : > { %2689 = vmatpush.xpose.msrb.mxu2 %v2672_v45  ;;  %2718 = vmatpush.xpose.msrb.mxu3 %v2673_v20 }
 0x359   : > { %2206 = vrot.lane.b32.xlu0 %v5310_v38, %s3300_s26 }
 0x35b   : > { %v5436_v62 = vpop.permute.xlu0 %1850 }
 0x35c   : > { %1957 = vrot.lane.b32.xlu2 %v5351_v58, %s3296_s17 }
 0x35d   : > { %1991 = vperm.xlu1 %3213, %v3106_v41  }
 0x35f   : > { %v2617_v42 = vpop.xlane.xlu1 %2616 }
 0x360   : > { %v2625_v14 = vmax.f32 %v2617_v42, 1e-24 }
 0x361   : > { %2154 = vperm.xlu0 %3212, %v3117_v18  }
 0x362   : > { %3219 = vrsqrt.f32 %v2625_v14  ;;  %vm2644_vm9 = vweird.f32 %v2625_v14 }
 0x363   : > { %v5446_v51 = vpop.permute.xlu0 %1865  ;;  %3221 = vrsqrt.f32 %v5459_v17 }
 0x364   : > { %2046 = vrot.lane.b32.xlu2 %v5236_v4, %s3298_s19 }
 0x365   : > { %1955 = vrot.lane.b32.xlu1 %v5298_v30, %s3296_s17 }
 0x367   : > { %v2548_v29 = vpop.xlane.xlu1 %2547 }
 0x368   : > { %v3220_v7 = vpop.eup %3219  ;;  %v5479_v25 = vmax.f32 %v2548_v29, 1e-24 }
 0x369   : > { %2042 = vrot.lane.b32.xlu0 %v5121_v47, %s3298_s19  ;;  %v2639_v21 = vmul.f32 %v3220_v7, %v2625_v14  ;;  %vm2645_vm15 = vweird.f32 %v3220_v7  ;;  %v5473_v27 = vpop.eup %3221 }
 0x36a   : > { %vm2646_vm10 = vmor %vm2644_vm9, %vm2645_vm15  ;;  %v2567_v12 = vmul.f32 %v5473_v27, %v5459_v17  ;;  %vm2573_vm15 = vweird.f32 %v5473_v27 }
 0x36b   : > { %v5457_v59 = vpop.permute.xlu0 %1890  ;;  %v2640_v28 = vmul.f32 %v3220_v7, %v2639_v21 }
 0x36c   : > { %1907 = vperm.xlu2 %3214, %v3101_v33   ;;  %v2568_v48 = vmul.f32 %v5473_v27, %v2567_v12 }
 0x36d   : > { %v2641_v44 = vmul.f32 0.5, %v2640_v28  ;;  %2044 = vrot.lane.b32.xlu1 %v5177_v55, %s3298_s19 }
 0x36e   : > { %v2569_v52 = vmul.f32 0.5, %v2568_v48 }
 0x36f   : > { %v2642_v2 = vsub.f32 1.5, %v2641_v44  ;;  %v2614_v50 = vpop.xlane.xlu2 %2613 }
 0x370   : > { %v2624_v63 = vmax.f32 %v2614_v50, 1e-24  ;;  %v2570_v18 = vsub.f32 1.5, %v2569_v52  ;;  %v3123_v52 = vld [vmem:[%s6094_s2 + $0x238] sm:$0xff] }
 0x371   : > { %2196 = vrot.lane.b32.xlu0 %v5366_v3, %s3300_s26  ;;  %v2643_v8 = vmul.f32 %v3220_v7, %v2642_v2 }
 0x372   : > { %3223 = vrsqrt.f32 %v2624_v63  ;;  %vm2634_vm12 = vweird.f32 %v2624_v63 }
 0x373   : > { %v5469_v6 = vpop.permute.xlu0 %1888  ;;  %v2647_v35 = vsel %vm2646_vm10, %v3220_v7, %v2643_v8  ;;  %vm2572_vm10 = vweird.f32 %v5459_v17 }
 0x374   : > { %2159 = vperm.xlu2 %3214, %v3118_v23   ;;  %v2670_v36 = vmul.f32 %v2647_v35, %v5200_v9  ;;  %v2671_v0 = vmul.f32 %v2647_v35, %v5202_v49 }
 0x375   : > { %2198 = vrot.lane.b32.xlu1 %v5373_v26, %s3300_s26 }
 0x376   : > { %2690 = vmatpush.xpose.msrb.mxu2 %v2670_v36  ;;  %2719 = vmatpush.xpose.msrb.mxu3 %v2671_v0  ;;  %v1933_v36 = vld [vmem:[%s6095_s3] sm:$0x3] }
 0x377   : > { %v2542_v24 = vpop.xlane.xlu2 %2541  ;;  %v5541_v12 = vperm.slane %v1933_v36, 0 }
 0x378   : > { %v3224_v57 = vpop.eup %3223  ;;  %v2552_v32 = vmax.f32 %v2542_v24, 1e-24 }
 0x379   : > { %2285 = vrot.lane.b32.xlu0 %v5310_v38, %s3301_s13  ;;  %v2629_v9 = vmul.f32 %v3224_v57, %v2624_v63  ;;  %vm2635_vm11 = vweird.f32 %v3224_v57  ;;  %v3105_v63 = vld [vmem:[%s6094_s2 + $0xa0] sm:$0xff] }
 0x37a   : > { %3225 = vrsqrt.f32 %v2552_v32  ;;  %vm2636_vm13 = vmor %vm2634_vm12, %vm2635_vm11  ;;  %vm2562_vm9 = vweird.f32 %v2552_v32 }
 0x37b   : > { %v5483_v49 = vpop.permute.xlu0 %1917  ;;  %v2630_v34 = vmul.f32 %v3224_v57, %v2629_v9  ;;  %3227 = vrsqrt.f32 %v5479_v25  ;;  %vm2574_vm12 = vmor %vm2572_vm10, %vm2573_vm15 }
 0x37c   : > { %2036 = vrot.lane.b32.xlu2 %v5351_v58, %s3298_s19 }
 0x37d   : > { %v2631_v61 = vmul.f32 0.5, %v2630_v34  ;;  %2070 = vperm.xlu1 %3213, %v3111_v56  }
 0x37f   : > { %v2632_v11 = vsub.f32 1.5, %v2631_v61  ;;  %v5495_v1 = vpop.permute.xlu1 %1855  ;;  %v2551_v60 = vpop.xlane.xlu2 %2550 }
 0x380   : > { %v3226_v15 = vpop.eup %3225  ;;  %v5497_v39 = vmax.f32 %v2551_v60, 1e-24 }
 0x381   : > { %2233 = vperm.xlu0 %3212, %v3122_v31   ;;  %v2557_v16 = vmul.f32 %v3226_v15, %v2552_v32  ;;  %v2633_v13 = vmul.f32 %v3224_v57, %v2632_v11  ;;  %v5499_v45 = vpop.eup %3227  ;;  %vm2563_vm14 = vweird.f32 %v3226_v15  ;;  %v5543_v32 = vperm.slane %v1933_v36, 1 }
 0x382   : > { %3229 = vrsqrt.f32 %v5497_v39  ;;  %v2577_v7 = vmul.f32 %v5499_v45, %v5479_v25  ;;  %vm2564_vm11 = vmor %vm2562_vm9, %vm2563_vm14  ;;  %vm2582_vm14 = vweird.f32 %v5479_v25  ;;  %v3116_v25 = vld [vmem:[%s6094_s2 + $0x168] sm:$0xff]  ;;  %vm2592_vm10 = vweird.f32 %v5497_v39 }
 0x383   : > { %v5501_v37 = vpop.permute.xlu0 %1886  ;;  %v2558_v20 = vmul.f32 %v3226_v15, %v2557_v16  ;;  %v2637_v41 = vsel %vm2636_vm13, %v3224_v57, %v2633_v13  ;;  %v1874_v16 = vmul.f32 %v5446_v51, %v5373_v26  ;;  %vm2583_vm13 = vweird.f32 %v5499_v45 }
 0x384   : > { %2125 = vrot.lane.b32.xlu2 %v5236_v4, %s3299_s20  ;;  %v2668_v42 = vmul.f32 %v2637_v41, %v5314_v54  ;;  %v2669_v14 = vmul.f32 %v2637_v41, %v5316_v22  ;;  %v2571_v22 = vmul.f32 %v5473_v27, %v2570_v18  ;;  %v2578_v50 = vmul.f32 %v5499_v45, %v2577_v7  ;;  %vm2584_vm15 = vmor %vm2582_vm14, %vm2583_vm13 }
 0x385   : > { %v2559_v21 = vmul.f32 0.5, %v2558_v20  ;;  %2034 = vrot.lane.b32.xlu1 %v5298_v30, %s3298_s19 }
 0x386   : > { %2691 = vmatpush.xpose.msrb.mxu2 %v2668_v42  ;;  %2720 = vmatpush.xpose.msrb.mxu3 %v2669_v14  ;;  %v2575_v24 = vsel %vm2574_vm12, %v5473_v27, %v2571_v22  ;;  %v2579_v57 = vmul.f32 0.5, %v2578_v50 }
 0x387   : > { %v2560_v33 = vsub.f32 1.5, %v2559_v21  ;;  %v1883_v28 = vpop.permute.xlu1 %1882  ;;  %v1861_v44 = vpop.permute.xlu2 %1860 }
 0x388   : > { %v1895_v2 = vsel %vm384_vm1, %v1883_v28, %v5457_v59  ;;  %v1899_v54 = vsel %vm384_vm1, %v5457_v59, %v1883_v28  ;;  %v5526_v8 = vpop.eup %3229  ;;  %v2580_v31 = vsub.f32 1.5, %v2579_v57  ;;  %v1872_v18 = vmul.f32 %v1861_v44, %v5366_v3 }
 0x389   : > { %2121 = vrot.lane.b32.xlu0 %v5121_v47, %s3299_s20  ;;  %v2561_v23 = vmul.f32 %v3226_v15, %v2560_v33  ;;  %v2587_v17 = vmul.f32 %v5526_v8, %v5497_v39  ;;  %v6565_v33 = vld [vmem:[#allocation19_spill] sm:$0xff]  ;;  %vm2593_vm9 = vweird.f32 %v5526_v8 }
 0x38a   : > { %v2599_v28 = vmul.f32 %v2575_v24, %v6565_v33  ;;  %v2581_v22 = vmul.f32 %v5499_v45, %v2580_v31 }
 0x38b   : > { %v5529_v59 = vpop.permute.xlu0 %2040  ;;  %v2565_v35 = vsel %vm2564_vm11, %v3226_v15, %v2561_v23  ;;  %v2588_v11 = vmul.f32 %v5526_v8, %v2587_v17  ;;  %vm2594_vm11 = vmor %vm2592_vm10, %vm2593_vm9 }
 0x38c   : > { %1986 = vperm.xlu2 %3214, %v3105_v63   ;;  %v2596_v0 = vmul.f32 %v2565_v35, %v5337_v53  ;;  %v2597_v29 = vmul.f32 %v2565_v35, %v5341_v10  ;;  %v6564_v53 = vld [vmem:[#allocation9_spill] sm:$0xff]  ;;  %v2585_v36 = vsel %vm2584_vm15, %v5499_v45, %v2581_v22  ;;  %v3127_v45 = vld [vmem:[%s6094_s2 + $0x290] sm:$0xff]  ;;  %v1871_v22 = vmul.f32 %v5495_v1, %v5177_v55 }
 0x38d   : > { %2123 = vrot.lane.b32.xlu1 %v5177_v55, %s3299_s20  ;;  %v2598_v34 = vmul.f32 %v2575_v24, %v6564_v53  ;;  %v2600_v24 = vmul.f32 %v2585_v36, %v5226_v46  ;;  %v2601_v57 = vmul.f32 %v2585_v36, %v5228_v5 }
 0x38e   : > { %2692 = vmatmul.f32.vlgmr.msrb.gmra.mxu2 %v2596_v0  ;;  %2721 = vmatmul.f32.vlgmr.msrb.gmra.mxu3 %v2597_v29  ;;  %v3109_v29 = vld [vmem:[%s6095_s3 + $0x2] sm:$0x3] }
 0x38f   : > { %v1881_v9 = vpop.permute.xlu1 %1880  ;;  %v1923_v56 = vpop.permute.xlu2 %1922 }
 0x390   : > { %v1894_v10 = vsel %vm384_vm1, %v1881_v9, %v5469_v6  ;;  %v1898_v27 = vsel %vm384_vm1, %v5469_v6, %v1881_v9  ;;  %v1931_v48 = vmul.f32 %v1923_v56, %v1899_v54  ;;  %v1932_v61 = vmul.f32 %v1923_v56, %v1895_v2 }
 0x391   : > { %2275 = vrot.lane.b32.xlu0 %v5366_v3, %s3301_s13  ;;  %v1929_v60 = vmul.f32 %v5483_v49, %v1898_v27  ;;  %v1930_v15 = vmul.f32 %v5483_v49, %v1894_v10  ;;  %v1875_v6 = vmul.f32 %v5446_v51, %v5310_v38  ;;  %v1873_v49 = vmul.f32 %v1861_v44, %v5236_v4 }
 0x392   : > { %v1945_v13 = vmul.f32 %v5541_v12, %v1931_v48  ;;  %v1946_v20 = vmul.f32 %v5543_v32, %v1932_v61  ;;  %v2589_v51 = vmul.f32 0.5, %v2588_v11  ;;  %v5602_v9 = vperm.slane %v3109_v29, 0 }
 0x393   : > { %v5566_v41 = vpop.permute.xlu0 %1996  ;;  %v1943_v42 = vmul.f32 %v5541_v12, %v1929_v60  ;;  %v1944_v14 = vmul.f32 %v5543_v32, %v1930_v15  ;;  %v5604_v56 = vperm.slane %v3109_v29, 1 }
 0x394   : > { %v1953_v7 = vadd.f32 %v1945_v13, %v1874_v16  ;;  %v1954_v21 = vadd.f32 %v1946_v20, %v1875_v6  ;;  %2238 = vperm.xlu2 %3214, %v3123_v52   ;;  %v2590_v35 = vsub.f32 1.5, %v2589_v51  ;;  %v3110_v13 = vld [vmem:[%s6094_s2 + $0x100] sm:$0xff] }
 0x395   : > { %v1951_v2 = vadd.f32 %v1943_v42, %v1872_v18  ;;  %v1952_v54 = vadd.f32 %v1944_v14, %v1873_v49  ;;  %2277 = vrot.lane.b32.xlu1 %v5373_v26, %s3301_s13 }
 0x396   : > { %2695 = vmatmul.f32.gmra.mxu2 %v2598_v34  ;;  %2724 = vmatmul.f32.gmra.mxu3 %v2599_v28  ;;  %v2591_v17 = vmul.f32 %v5526_v8, %v2590_v35 }
 0x397   : > { %v1970_v44 = vpop.permute.xlu1 %1969  ;;  %v1962_v50 = vpop.permute.xlu2 %1961 }
 0x398   : > { %v1974_v63 = vsel %vm463_vm2, %v1962_v50, %v1970_v44  ;;  %v1978_v23 = vsel %vm463_vm2, %v1970_v44, %v1962_v50  ;;  %v2595_v48 = vsel %vm2594_vm11, %v5526_v8, %v2591_v17 }
 0x399   : > { %2364 = vrot.lane.b32.xlu0 %v5310_v38, %s3302_s29  ;;  %v2602_v15 = vmul.f32 %v2595_v48, %v5355_v40 }
 0x39b   : > { %v5585_v0 = vpop.permute.xlu0 %1884 }
 0x39c   : > { %2115 = vrot.lane.b32.xlu2 %v5351_v58, %s3299_s20 }
 0x39d   : > { %2149 = vperm.xlu1 %3213, %v3116_v25  }
 0x39e   : > { %2698 = vmatmul.f32.gmra.mxu2 %v2600_v24  ;;  %2727 = vmatmul.f32.gmra.mxu3 %v2601_v57 }
 0x39f   : > { %v1879_v46 = vpop.permute.xlu1 %1878  ;;  %v2002_v53 = vpop.permute.xlu2 %2001 }
 0x3a0   : > { %v1893_v5 = vsel %vm384_vm1, %v1879_v46, %v5501_v37  ;;  %v1897_v34 = vsel %vm384_vm1, %v5501_v37, %v1879_v46  ;;  %v2010_v10 = vmul.f32 %v2002_v53, %v1978_v23  ;;  %v2011_v27 = vmul.f32 %v2002_v53, %v1974_v63 }
 0x3a1   : > { %2312 = vperm.xlu0 %3212, %v3127_v45   ;;  %v2603_v37 = vmul.f32 %v2595_v48, %v5357_v43 }
 0x3a2   : > { %v2024_v61 = vmul.f32 %v5602_v9, %v2010_v10  ;;  %v2025_v39 = vmul.f32 %v5604_v56, %v2011_v27 }
 0x3a3   : > { %v5616_v31 = vpop.permute.xlu0 %2038 }
 0x3a4   : > { %v2032_v11 = vadd.f32 %v2024_v61, %v1953_v7  ;;  %v2033_v60 = vadd.f32 %v2025_v39, %v1954_v21  ;;  %2204 = vrot.lane.b32.xlu2 %v5236_v4, %s3300_s26 }
 0x3a5   : > { %2113 = vrot.lane.b32.xlu1 %v5298_v30, %s3299_s20 }
 0x3a6   : > { %2701 = vmatmul.f32.gmra.mxu2 %v2602_v15  ;;  %2730 = vmatmul.f32.gmra.mxu3 %v2603_v37 }
 0x3a7   : > { %v1968_v8 = vpop.permute.xlu1 %1967  ;;  %v1960_v52 = vpop.permute.xlu2 %1959 }
 0x3a8   : > { %v1973_v16 = vsel %vm463_vm2, %v1960_v52, %v1968_v8  ;;  %v1977_v6 = vsel %vm463_vm2, %v1968_v8, %v1960_v52 }
 0x3a9   : > { %2200 = vrot.lane.b32.xlu0 %v5121_v47, %s3300_s26  ;;  %v2008_v40 = vmul.f32 %v5566_v41, %v1977_v6  ;;  %v2009_v43 = vmul.f32 %v5566_v41, %v1973_v16 }
 0x3ab   : > { %v2128_v20 = vpop.permute.xlu0 %2127  ;;  %v2022_v18 = vmul.f32 %v5602_v9, %v2008_v40  ;;  %v2023_v49 = vmul.f32 %v5604_v56, %v2009_v43  ;;  %v3115_v43 = vld [vmem:[%s6094_s2 + $0x160] sm:$0xff] }
 0x3ac   : > { %2065 = vperm.xlu2 %3214, %v3110_v13  }
 0x3ad   : > { %v2030_v42 = vadd.f32 %v2022_v18, %v1951_v2  ;;  %v2031_v14 = vadd.f32 %v2023_v49, %v1952_v54  ;;  %2202 = vrot.lane.b32.xlu1 %v5177_v55, %s3300_s26  ;;  %v3128_v2 = vld [vmem:[%s6094_s2 + $0x298] sm:$0xff]  ;;  %v1870_v54 = vmul.f32 %v5495_v1, %v5351_v58 }
 0x3af   : > { %v1913_v7 = vpop.permute.xlu1 %1912  ;;  %v2049_v21 = vpop.permute.xlu2 %2048 }
 0x3b0   : > { %v1927_v33 = vmul.f32 %v1913_v7, %v1897_v34  ;;  %v1928_v28 = vmul.f32 %v1913_v7, %v1893_v5  ;;  %v2053_v41 = vsel %vm544_vm3, %v5529_v59, %v2049_v21  ;;  %v2057_v51 = vsel %vm544_vm3, %v2049_v21, %v5529_v59  ;;  %v3114_v59 = vld [vmem:[%s6095_s3 + $0x4] sm:$0x3]  ;;  %v3121_v34 = vld [vmem:[%s6094_s2 + $0x228] sm:$0xff] }
 0x3b1   : > { %2354 = vrot.lane.b32.xlu0 %v5366_v3, %s3302_s29  ;;  %v5665_v36 = vperm.slane %v3114_v59, 0  ;;  %v5667_v1 = vperm.slane %v3114_v59, 1 }
 0x3b2   : > { %v1941_v44 = vmul.f32 %v5541_v12, %v1927_v33  ;;  %v1942_v50 = vmul.f32 %v5543_v32, %v1928_v28 }
 0x3b3   : > { %v2076_v63 = vpop.permute.xlu0 %2075 }
 0x3b4   : > { %v5659_v23 = vadd.f32 %v1941_v44, %v1870_v54  ;;  %v5661_v35 = vadd.f32 %v1942_v50, %v1871_v22  ;;  %2317 = vperm.xlu2 %3214, %v3128_v2   ;;  %v1868_v2 = vmul.f32 %v5436_v62, %v5298_v30 }
 0x3b5   : > { %2356 = vrot.lane.b32.xlu1 %v5373_v26, %s3302_s29 }
 0x3b7   : > { %v1877_v25 = vpop.permute.xlu1 %1876  ;;  %v2081_v29 = vpop.permute.xlu2 %2080 }
 0x3b8   : > { %v1892_v24 = vsel %vm384_vm1, %v1877_v25, %v5585_v0  ;;  %v1896_v57 = vsel %vm384_vm1, %v5585_v0, %v1877_v25  ;;  %v2089_v45 = vmul.f32 %v2081_v29, %v2057_v51  ;;  %v2090_v17 = vmul.f32 %v2081_v29, %v2053_v41 }
 0x3b9   : > { %2443 = vrot.lane.b32.xlu0 %v5310_v38, %s3303_s9  ;;  %v3132_v38 = vld [vmem:[%s6094_s2 + $0x2f0] sm:$0xff] }
 0x3ba   : > { %v2103_v46 = vmul.f32 %v5665_v36, %v2089_v45  ;;  %v2104_v53 = vmul.f32 %v5667_v1, %v2090_v17 }
 0x3bb   : > { %v1964_v5 = vpop.permute.xlu0 %1963 }
 0x3bc   : > { %v5682_v10 = vadd.f32 %v2103_v46, %v2032_v11  ;;  %v5684_v27 = vadd.f32 %v2104_v53, %v2033_v60  ;;  %2194 = vrot.lane.b32.xlu2 %v5351_v58, %s3300_s26 }
 0x3bd   : > { %2228 = vperm.xlu1 %3213, %v3121_v34   ;;  %v3126_v34 = vld [vmem:[%s6094_s2 + $0x288] sm:$0xff] }
 0x3bf   : > { %v1966_v0 = vpop.permute.xlu1 %1965  ;;  %v1958_v48 = vpop.permute.xlu2 %1957 }
 0x3c0   : > { %v1972_v61 = vsel %vm463_vm2, %v1958_v48, %v1966_v0  ;;  %v1976_v39 = vsel %vm463_vm2, %v1966_v0, %v1958_v48 }
 0x3c1   : > { %2391 = vperm.xlu0 %3212, %v3132_v38  }
 0x3c3   : > { %v5695_v11 = vpop.permute.xlu0 %2117 }
 0x3c4   : > { %2283 = vrot.lane.b32.xlu2 %v5236_v4, %s3301_s13 }
 0x3c5   : > { %2192 = vrot.lane.b32.xlu1 %v5298_v30, %s3300_s26 }
 0x3c7   : > { %v2120_v60 = vpop.permute.xlu1 %2119  ;;  %v2047_v15 = vpop.permute.xlu2 %2046 }
 0x3c8   : > { %v2132_v37 = vsel %vm625_vm4, %v2120_v60, %v2128_v20  ;;  %v2136_v8 = vsel %vm625_vm4, %v2128_v20, %v2120_v60  ;;  %v2052_v52 = vsel %vm544_vm3, %v5616_v31, %v2047_v15  ;;  %v2056_v16 = vsel %vm544_vm3, %v2047_v15, %v5616_v31 }
 0x3c9   : > { %2279 = vrot.lane.b32.xlu0 %v5121_v47, %s3301_s13  ;;  %v2087_v6 = vmul.f32 %v2076_v63, %v2056_v16  ;;  %v2088_v40 = vmul.f32 %v2076_v63, %v2052_v52 }
 0x3cb   : > { %v2207_v13 = vpop.permute.xlu0 %2206  ;;  %v2101_v20 = vmul.f32 %v5665_v36, %v2087_v6  ;;  %v2102_v18 = vmul.f32 %v5667_v1, %v2088_v40 }
 0x3cc   : > { %2144 = vperm.xlu2 %3214, %v3115_v43  }
 0x3cd   : > { %v5718_v49 = vadd.f32 %v2101_v20, %v2030_v42  ;;  %v5720_v7 = vadd.f32 %v2102_v18, %v2031_v14  ;;  %2281 = vrot.lane.b32.xlu1 %v5177_v55, %s3301_s13  ;;  %v1869_v42 = vmul.f32 %v5436_v62, %v5121_v47  ;;  %v3133_v14 = vld [vmem:[%s6094_s2 + $0x2f8] sm:$0xff]  ;;  %v3120_v20 = vld [vmem:[%s6094_s2 + $0x220] sm:$0xff] }
 0x3cf   : > { %v1992_v31 = vpop.permute.xlu1 %1991  ;;  %v1908_v21 = vpop.permute.xlu2 %1907 }
 0x3d0   : > { %v2006_v33 = vmul.f32 %v1992_v31, %v1976_v39  ;;  %v2007_v28 = vmul.f32 %v1992_v31, %v1972_v61  ;;  %v1925_v41 = vmul.f32 %v1908_v21, %v1896_v57  ;;  %v1926_v51 = vmul.f32 %v1908_v21, %v1892_v24 }
 0x3d1   : > { %2433 = vrot.lane.b32.xlu0 %v5366_v3, %s3303_s9  ;;  %v3119_v3 = vld [vmem:[%s6095_s3 + $0x6] sm:$0x3] }
 0x3d2   : > { %v2020_v54 = vmul.f32 %v5602_v9, %v2006_v33  ;;  %v2021_v22 = vmul.f32 %v5604_v56, %v2007_v28  ;;  %v1939_v44 = vmul.f32 %v5541_v12, %v1925_v41  ;;  %v1940_v50 = vmul.f32 %v5543_v32, %v1926_v51  ;;  %v3131_v12 = vld [vmem:[%s6094_s2 + $0x2e8] sm:$0xff] }
 0x3d3   : > { %v2155_v63 = vpop.permute.xlu0 %2154  ;;  %v5755_v32 = vperm.slane %v3119_v3, 0  ;;  %v5757_v24 = vperm.slane %v3119_v3, 1 }
 0x3d4   : > { %v5741_v59 = vadd.f32 %v2020_v54, %v5659_v23  ;;  %v5744_v62 = vadd.f32 %v2021_v22, %v5661_v35  ;;  %v5746_v25 = vadd.f32 %v1939_v44, %v1868_v2  ;;  %v5748_v29 = vadd.f32 %v1940_v50, %v1869_v42  ;;  %2396 = vperm.xlu2 %3214, %v3133_v14   ;;  %v3138_v14 = vld [vmem:[%s6094_s2 + $0x358] sm:$0xff]  ;;  %v3125_v44 = vld [vmem:[%s6094_s2 + $0x280] sm:$0xff] }
 0x3d5   : > { %2435 = vrot.lane.b32.xlu1 %v5373_v26, %s3303_s9 }
 0x3d7   : > { %v1956_v23 = vpop.permute.xlu1 %1955  ;;  %v2160_v57 = vpop.permute.xlu2 %2159 }
 0x3d8   : > { %v1971_v35 = vsel %vm463_vm2, %v1956_v23, %v1964_v5  ;;  %v1975_v45 = vsel %vm463_vm2, %v1964_v5, %v1956_v23  ;;  %v2168_v17 = vmul.f32 %v2160_v57, %v2136_v8  ;;  %v2169_v46 = vmul.f32 %v2160_v57, %v2132_v37 }
 0x3d9   : > { %2386 = vperm.xlu0 %3212, %v3131_v12  }
 0x3da   : > { %v2182_v26 = vmul.f32 %v5755_v32, %v2168_v17  ;;  %v2183_v53 = vmul.f32 %v5757_v24, %v2169_v46 }
 0x3db   : > { %v2043_v48 = vpop.permute.xlu0 %2042 }
 0x3dc   : > { %v2190_v38 = vadd.f32 %v2182_v26, %v5682_v10  ;;  %v2191_v0 = vadd.f32 %v2183_v53, %v5684_v27  ;;  %2273 = vrot.lane.b32.xlu2 %v5351_v58, %s3301_s13  ;;  %v3130_v10 = vld [vmem:[%s6094_s2 + $0x2e0] sm:$0xff] }
 0x3dd   : > { %2307 = vperm.xlu1 %3213, %v3126_v34  }
 0x3df   : > { %v2045_v5 = vpop.permute.xlu1 %2044  ;;  %v2037_v61 = vpop.permute.xlu2 %2036 }
 0x3e0   : > { %v2051_v39 = vsel %vm544_vm3, %v2037_v61, %v2045_v5  ;;  %v2055_v60 = vsel %vm544_vm3, %v2045_v5, %v2037_v61 }
 0x3e1   : > { %2358 = vrot.lane.b32.xlu0 %v5121_v47, %s3302_s29 }
 0x3e3   : > { %v5785_v27 = vpop.permute.xlu0 %2196 }
 0x3e4   : > { %2362 = vrot.lane.b32.xlu2 %v5236_v4, %s3302_s29 }
 0x3e5   : > { %2271 = vrot.lane.b32.xlu1 %v5298_v30, %s3301_s13 }
 0x3e7   : > { %v2199_v15 = vpop.permute.xlu1 %2198  ;;  %v2126_v37 = vpop.permute.xlu2 %2125 }
 0x3e8   : > { %v2211_v8 = vsel %vm706_vm5, %v2199_v15, %v2207_v13  ;;  %v2215_v52 = vsel %vm706_vm5, %v2207_v13, %v2199_v15  ;;  %v2131_v16 = vsel %vm625_vm4, %v5695_v11, %v2126_v37  ;;  %v2135_v6 = vsel %vm625_vm4, %v2126_v37, %v5695_v11 }
 0x3e9   : > { %2381 = vperm.xlu0 %3212, %v3130_v10   ;;  %v2166_v40 = vmul.f32 %v2155_v63, %v2135_v6  ;;  %v2167_v43 = vmul.f32 %v2155_v63, %v2131_v16 }
 0x3eb   : > { %v2180_v18 = vmul.f32 %v5755_v32, %v2166_v40  ;;  %v2181_v31 = vmul.f32 %v5757_v24, %v2167_v43  ;;  %v2286_v28 = vpop.permute.xlu0 %2285 }
 0x3ec   : > { %2223 = vperm.xlu2 %3214, %v3120_v20  }
 0x3ed   : > { %v2188_v13 = vadd.f32 %v2180_v18, %v5718_v49  ;;  %v2189_v21 = vadd.f32 %v2181_v31, %v5720_v7  ;;  %2360 = vrot.lane.b32.xlu1 %v5177_v55, %s3302_s29 }
 0x3ef   : > { %v2071_v11 = vpop.permute.xlu1 %2070  ;;  %v1987_v33 = vpop.permute.xlu2 %1986 }
 0x3f0   : > { %v2085_v41 = vmul.f32 %v2071_v11, %v2055_v60  ;;  %v2086_v51 = vmul.f32 %v2071_v11, %v2051_v39  ;;  %v2004_v2 = vmul.f32 %v1987_v33, %v1975_v45  ;;  %v2005_v42 = vmul.f32 %v1987_v33, %v1971_v35 }
 0x3f1   : > { %2437 = vrot.lane.b32.xlu0 %v5121_v47, %s3303_s9  ;;  %v3124_v47 = vld [vmem:[%s6095_s3 + $0xa] sm:$0x3] }
 0x3f2   : > { %v2099_v49 = vmul.f32 %v5665_v36, %v2085_v41  ;;  %v2100_v7 = vmul.f32 %v5667_v1, %v2086_v51  ;;  %v2018_v54 = vmul.f32 %v5602_v9, %v2004_v2  ;;  %v2019_v22 = vmul.f32 %v5604_v56, %v2005_v42 }
 0x3f3   : > { %v5825_v9 = vperm.slane %v3124_v47, 0  ;;  %v5827_v56 = vperm.slane %v3124_v47, 1  ;;  %v2234_v17 = vpop.permute.xlu0 %2233 }
 0x3f4   : > { %v2107_v50 = vadd.f32 %v2099_v49, %v5741_v59  ;;  %v2108_v63 = vadd.f32 %v2100_v7, %v5744_v62  ;;  %v2026_v3 = vadd.f32 %v2018_v54, %v5746_v25  ;;  %v2027_v12 = vadd.f32 %v2019_v22, %v5748_v29  ;;  %2475 = vperm.xlu2 %3214, %v3138_v14  }
 0x3f5   : > { %2302 = vperm.xlu1 %3213, %v3125_v44  }
 0x3f7   : > { %v2035_v23 = vpop.permute.xlu1 %2034  ;;  %v2239_v57 = vpop.permute.xlu2 %2238 }
 0x3f8   : > { %v2050_v35 = vsel %vm544_vm3, %v2035_v23, %v2043_v48  ;;  %v2054_v59 = vsel %vm544_vm3, %v2043_v48, %v2035_v23  ;;  %v2247_v45 = vmul.f32 %v2239_v57, %v2211_v8  ;;  %v2248_v62 = vmul.f32 %v2239_v57, %v2215_v52 }
 0x3fa   : > { %v2261_v25 = vmul.f32 %v5825_v9, %v2247_v45  ;;  %v2262_v29 = vmul.f32 %v5827_v56, %v2248_v62  ;;  %v3135_v45 = vld [vmem:[%s6094_s2 + $0x340] sm:$0xff] }
 0x3fb   : > { %v2122_v61 = vpop.permute.xlu0 %2121 }
 0x3fc   : > { %v2269_v46 = vadd.f32 %v2261_v25, %v2190_v38  ;;  %v2270_v26 = vadd.f32 %v2262_v29, %v2191_v0  ;;  %2352 = vrot.lane.b32.xlu2 %v5351_v58, %s3302_s29 }
 0x3fd   : > { %2350 = vrot.lane.b32.xlu1 %v5298_v30, %s3302_s29  ;;  %s242_s29 = sand.u32 1, %s3285_s22  }
 0x3fe   : > { %s2988_s19 = sshll.u32 %s242_s29, 6  ;;  %s2907_s20 = scalar_lea.sflag [#allocation4], %s242_s29 }
 0x3ff   : > { %v2124_v53 = vpop.permute.xlu1 %2123  ;;  %v2116_v34 = vpop.permute.xlu2 %2115  ;;  %s244_s12 = scalar_lea.vmem [#allocation3], %s2988_s19 }
 0x400   : > { %v2130_v48 = vsel %vm625_vm4, %v2116_v34, %v2124_v53  ;;  %v2134_v5 = vsel %vm625_vm4, %v2124_v53, %v2116_v34  ;;  %s2919_s18 = sshll.u32 %s244_s12, 4  ;;  %s2920_s18 = int_to_ptr.vmem [resolvable:$true] %s2919_s18 }
 0x403   : > { %v2276_v40 = vpop.permute.xlu0 %2275 }
 0x404   : > { %2441 = vrot.lane.b32.xlu2 %v5236_v4, %s3303_s9 }
 0x405   : > { %2439 = vrot.lane.b32.xlu1 %v5177_v55, %s3303_s9  ;;  %v3137_v55 = vld [vmem:[%s6094_s2 + $0x350] sm:$0xff] }
 0x407   : > { %v2278_v38 = vpop.permute.xlu1 %2277  ;;  %v2205_v0 = vpop.permute.xlu2 %2204 }
 0x408   : > { %v2290_v39 = vsel %vm787_vm6, %v2278_v38, %v2286_v28  ;;  %v2294_v60 = vsel %vm787_vm6, %v2286_v28, %v2278_v38  ;;  %v2210_v10 = vsel %vm706_vm5, %v5785_v27, %v2205_v0  ;;  %v2214_v15 = vsel %vm706_vm5, %v2205_v0, %v5785_v27 }
 0x409   : > { %v2245_v4 = vmul.f32 %v2234_v17, %v2210_v10  ;;  %v2246_v37 = vmul.f32 %v2234_v17, %v2214_v15 }
 0x40b   : > { %v2259_v8 = vmul.f32 %v5825_v9, %v2245_v4  ;;  %v2260_v52 = vmul.f32 %v5827_v56, %v2246_v37 }
 0x40c   : > { %2470 = vperm.xlu2 %3214, %v3137_v55  }
 0x40d   : > { %v2267_v16 = vadd.f32 %v2259_v8, %v2188_v13  ;;  %v2268_v6 = vadd.f32 %v2260_v52, %v2189_v21  ;;  %2429 = vrot.lane.b32.xlu1 %v5298_v30, %s3303_s9  ;;  %v3129_v13 = vld [vmem:[%s6095_s3 + $0xc] sm:$0x3] }
 0x40e   : > { %v5873_v14 = vperm.slane %v3129_v13, 0  ;;  %v5875_v49 = vperm.slane %v3129_v13, 1  ;;  %v3134_v13 = vld [vmem:[%s6095_s3 + $0xe] sm:$0x3] }
 0x40f   : > { %v2150_v43 = vpop.permute.xlu1 %2149  ;;  %v2066_v20 = vpop.permute.xlu2 %2065 }
 0x410   : > { %v2164_v27 = vmul.f32 %v2150_v43, %v2134_v5  ;;  %v2165_v18 = vmul.f32 %v2150_v43, %v2130_v48  ;;  %v2083_v31 = vmul.f32 %v2066_v20, %v2054_v59  ;;  %v2084_v11 = vmul.f32 %v2066_v20, %v2050_v35 }
 0x412   : > { %v2178_v33 = vmul.f32 %v5755_v32, %v2164_v27  ;;  %v2179_v28 = vmul.f32 %v5757_v24, %v2165_v18  ;;  %v2097_v41 = vmul.f32 %v5665_v36, %v2083_v31  ;;  %v2098_v51 = vmul.f32 %v5667_v1, %v2084_v11  ;;  %v2365_v36 = vpop.permute.xlu0 %2364 }
 0x414   : > { %v2186_v30 = vadd.f32 %v2178_v33, %v2107_v50  ;;  %v2187_v21 = vadd.f32 %v2179_v28, %v2108_v63  ;;  %v2105_v2 = vadd.f32 %v2097_v41, %v2026_v3  ;;  %v2106_v42 = vadd.f32 %v2098_v51, %v2027_v12  ;;  %2431 = vrot.lane.b32.xlu2 %v5351_v58, %s3303_s9  ;;  %v3136_v50 = vld [vmem:[%s6094_s2 + $0x348] sm:$0xff]  ;;  %s2918_s9 = scalar_lea.hbm %s6098_s6, %s3162_s14 }
 0x415   : > { %s2921_s15 = sshll.u32 %s2918_s9, 4  ;;  %s2922_s15 = int_to_ptr.hbm [resolvable:$true] %s2921_s15 }
 0x416   : > { %s3245_s16 = sshra.s32 %s2922_s15, 4  ;;  %s3246_s16 = int_to_ptr.hbm [resolvable:$true] %s3245_s16 }
 0x417   : > { %v2114_v7 = vpop.permute.xlu1 %2113  ;;  %v2318_v54 = vpop.permute.xlu2 %2317  ;;  %s3247_s25 = scalar_lea.hbm %s3246_s16, 64  ;;  %p3252_p0 = scmp.lt.s32.totalorder %s3246_s16, %s6098_s6 }
 0x418   : > { %v2129_v1 = vsel %vm625_vm4, %v2114_v7, %v2122_v61  ;;  %v2133_v22 = vsel %vm625_vm4, %v2122_v61, %v2114_v7  ;;  %v2326_v44 = vmul.f32 %v2318_v54, %v2290_v39  ;;  %v2327_v47 = vmul.f32 %v2318_v54, %v2294_v60  ;;  %p3248_p11 = scmp.ne.s32.totalorder %s3246_s16, %s3247_s25  ;;  %p3253_p1 = scmp.lt.s32.totalorder %s3251_s11, %s3247_s25 }
 0x41a   : > { %v2340_v58 = vmul.f32 %v5873_v14, %v2326_v44  ;;  %v2341_v63 = vmul.f32 %v5875_v49, %v2327_v47  ;;  %v2313_v62 = vpop.permute.xlu0 %2312  ;;  %p3249_p12 = pnand %p3248_p11, %p3378_p5  ;;  %p3254_p2 = por %p3253_p1, %p3252_p0 }
 0x41c   : > { %v5886_v3 = vadd.f32 %v2340_v58, %v2269_v46  ;;  %v5888_v12 = vadd.f32 %v2341_v63, %v2270_v26  ;;  %2465 = vperm.xlu2 %3214, %v3136_v50   ;;  %v3139_v63 = vld [vmem:[%s6095_s3 + $0x10] sm:$0x3]  ;;  %p3250_p13 = pneg %p3249_p12 }
 0x41e   : > { %p3255_p3 = pnand %p3254_p2, %p3250_p13 }
 0x41f   : > { %v2203_v23 = vpop.permute.xlu1 %2202  ;;  %v2195_v57 = vpop.permute.xlu2 %2194 }
 0x420   : > { %v2209_v35 = vsel %vm706_vm5, %v2195_v57, %v2203_v23  ;;  %v2213_v59 = vsel %vm706_vm5, %v2203_v23, %v2195_v57 }
 0x422   : > { %v2201_v5 = vpop.permute.xlu0 %2200 }
 0x424   : > { %2460 = vperm.xlu2 %3214, %v3135_v45   ;;  %v5947_v45 = vperm.slane %v3139_v63, 0 }
 0x427   : > { %v2357_v17 = vpop.permute.xlu1 %2356  ;;  %v2284_v25 = vpop.permute.xlu2 %2283 }
 0x428   : > { %v2289_v29 = vsel %vm787_vm6, %v2276_v40, %v2284_v25  ;;  %v2293_v46 = vsel %vm787_vm6, %v2284_v25, %v2276_v40  ;;  %v2369_v7 = vsel %vm868_vm7, %v2357_v17, %v2365_v36  ;;  %v2373_v54 = vsel %vm868_vm7, %v2365_v36, %v2357_v17 }
 0x429   : > { %v2324_v26 = vmul.f32 %v2313_v62, %v2289_v29  ;;  %v2325_v53 = vmul.f32 %v2313_v62, %v2293_v46  ;;  %v5949_v62 = vperm.slane %v3139_v63, 1 }
 0x42a   : > { %v2355_v20 = vpop.permute.xlu0 %2354 }
 0x42b   : > { %v2338_v34 = vmul.f32 %v5873_v14, %v2324_v26  ;;  %v2339_v48 = vmul.f32 %v5875_v49, %v2325_v53 }
 0x42d   : > { %v5903_v61 = vadd.f32 %v2338_v34, %v2267_v16  ;;  %v5905_v38 = vadd.f32 %v2339_v48, %v2268_v6 }
 0x42f   : > { %v2229_v0 = vpop.permute.xlu1 %2228  ;;  %v2145_v39 = vpop.permute.xlu2 %2144 }
 0x430   : > { %v2243_v60 = vmul.f32 %v2229_v0, %v2209_v35  ;;  %v2244_v10 = vmul.f32 %v2229_v0, %v2213_v59  ;;  %v2162_v15 = vmul.f32 %v2145_v39, %v2133_v22  ;;  %v2163_v4 = vmul.f32 %v2145_v39, %v2129_v1 }
 0x431   : > { %v5930_v1 = vperm.slane %v3134_v13, 0  ;;  %v5932_v22 = vperm.slane %v3134_v13, 1 }
 0x432   : > { %v2257_v37 = vmul.f32 %v5825_v9, %v2243_v60  ;;  %v2258_v55 = vmul.f32 %v5827_v56, %v2244_v10  ;;  %v2176_v8 = vmul.f32 %v5755_v32, %v2162_v15  ;;  %v2177_v52 = vmul.f32 %v5757_v24, %v2163_v4  ;;  %v2444_v24 = vpop.permute.xlu0 %2443 }
 0x434   : > { %v5911_v40 = vadd.f32 %v2257_v37, %v2186_v30  ;;  %v5913_v16 = vadd.f32 %v2258_v55, %v2187_v21  ;;  %v2184_v6 = vadd.f32 %v2176_v8, %v2105_v2  ;;  %v2185_v43 = vadd.f32 %v2177_v52, %v2106_v42 }
 0x437   : > { %v2193_v27 = vpop.permute.xlu1 %2192  ;;  %v2397_v18 = vpop.permute.xlu2 %2396 }
 0x438   : > { %v2208_v31 = vsel %vm706_vm5, %v2193_v27, %v2201_v5  ;;  %v2212_v11 = vsel %vm706_vm5, %v2201_v5, %v2193_v27  ;;  %v2405_v44 = vmul.f32 %v2397_v18, %v2369_v7  ;;  %v2406_v47 = vmul.f32 %v2397_v18, %v2373_v54 }
 0x43a   : > { %v2392_v51 = vpop.permute.xlu0 %2391  ;;  %v2419_v36 = vmul.f32 %v5930_v1, %v2405_v44  ;;  %v2420_v59 = vmul.f32 %v5932_v22, %v2406_v47 }
 0x43c   : > { %v2427_v26 = vadd.f32 %v2419_v36, %v5886_v3  ;;  %v2428_v53 = vadd.f32 %v2420_v59, %v5888_v12 }
 0x43f   : > { %v5919_v33 = vpop.permute.xlu1 %2281  ;;  %v5921_v32 = vpop.permute.xlu2 %2273 }
 0x440   : > { %v2292_v7 = vsel %vm787_vm6, %v5919_v33, %v5921_v32 }
 0x442   : > { %v5939_v23 = vpop.permute.xlu0 %2279 }
 0x447   : > { %v2436_v28 = vpop.permute.xlu1 %2435  ;;  %v2363_v41 = vpop.permute.xlu2 %2362 }
 0x448   : > { %v2368_v15 = vsel %vm868_vm7, %v2355_v20, %v2363_v41  ;;  %v2372_v4 = vsel %vm868_vm7, %v2363_v41, %v2355_v20 }
 0x449   : > { %v2403_v55 = vmul.f32 %v2392_v51, %v2368_v15  ;;  %v2404_v8 = vmul.f32 %v2392_v51, %v2372_v4 }
 0x44a   : > { %v2434_v39 = vpop.permute.xlu0 %2433 }
 0x44b   : > { %v2417_v52 = vmul.f32 %v5930_v1, %v2403_v55 }
 0x44d   : > { %v2425_v51 = vadd.f32 %v2417_v52, %v5903_v61 }
 0x44f   : > { %v2308_v30 = vpop.permute.xlu1 %2307  ;;  %v2224_v21 = vpop.permute.xlu2 %2223 }
 0x450   : > { %v2241_v2 = vmul.f32 %v2224_v21, %v2208_v31  ;;  %v2242_v42 = vmul.f32 %v2224_v21, %v2212_v11  ;;  %v2288_v21 = vsel %vm787_vm6, %v5921_v32, %v5919_v33  ;;  %v2323_v44 = vmul.f32 %v2308_v30, %v2292_v7  ;;  %v2722_v33 = vpop.f32.mrf.mxu3 }
 0x451   : > { %v2322_v54 = vmul.f32 %v2308_v30, %v2288_v21 }
 0x452   : > { %v2255_v50 = vmul.f32 %v5825_v9, %v2241_v2  ;;  %v2256_v58 = vmul.f32 %v5827_v56, %v2242_v42  ;;  %v2448_v9 = vsel %vm949_vm8, %v2436_v28, %v2444_v24  ;;  %v2452_v56 = vsel %vm949_vm8, %v2444_v24, %v2436_v28  ;;  %v2387_v12 = vpop.permute.xlu0 %2386 }
 0x453   : > { %v2336_v63 = vmul.f32 %v5873_v14, %v2322_v54  ;;  %v2337_v36 = vmul.f32 %v5875_v49, %v2323_v44 }
 0x454   : > { %v5941_v57 = vadd.f32 %v2255_v50, %v2184_v6  ;;  %v5943_v35 = vadd.f32 %v2256_v58, %v2185_v43  ;;  %v2418_v6 = vmul.f32 %v5932_v22, %v2404_v8 }
 0x456   : > { %v2426_v13 = vadd.f32 %v2418_v6, %v5905_v38 }
 0x457   : > { %v2272_v17 = vpop.permute.xlu1 %2271  ;;  %v2476_v25 = vpop.permute.xlu2 %2475 }
 0x458   : > { %v2484_v29 = vmul.f32 %v2476_v25, %v2448_v9  ;;  %v2485_v46 = vmul.f32 %v2476_v25, %v2452_v56  ;;  %v2693_v9 = vpop.f32.mrf.mxu2  ;;  %v2344_v25 = vadd.f32 %v2336_v63, %v5911_v40 }
 0x45a   : > { %v2498_v34 = vmul.f32 %v5947_v45, %v2484_v29  ;;  %v2499_v48 = vmul.f32 %v5949_v62, %v2485_v46  ;;  %v2359_v20 = vpop.permute.xlu0 %2358  ;;  %v2345_v29 = vadd.f32 %v2337_v36, %v5913_v16  ;;  %v2287_v46 = vsel %vm787_vm6, %v2272_v17, %v5939_v23 }
 0x45c   : > { %v2506_v5 = vadd.f32 %v2498_v34, %v2427_v26  ;;  %v2507_v0 = vadd.f32 %v2499_v48, %v2428_v53  ;;  %v2291_v26 = vsel %vm787_vm6, %v5939_v23, %v2272_v17 }
 0x45e   : > { %2778 = vmatpush.msra.mxu0 %v2506_v5  ;;  %2807 = vmatpush.msra.mxu1 %v2507_v0 }
 0x45f   : > { %v2361_v60 = vpop.permute.xlu1 %2360  ;;  %v2353_v10 = vpop.permute.xlu2 %2352 }
 0x460   : > { %v2367_v47 = vsel %vm868_vm7, %v2353_v10, %v2361_v60  ;;  %v2371_v61 = vsel %vm868_vm7, %v2361_v60, %v2353_v10 }
 0x461   : > { %v2401_v50 = vmul.f32 %v2387_v12, %v2367_v47  ;;  %v2402_v58 = vmul.f32 %v2387_v12, %v2371_v61 }
 0x462   : > { %v2382_v32 = vpop.permute.xlu0 %2381 }
 0x463   : > { %v2415_v30 = vmul.f32 %v5930_v1, %v2401_v50  ;;  %v2416_v56 = vmul.f32 %v5932_v22, %v2402_v58 }
 0x465   : > { %v2423_v10 = vadd.f32 %v2415_v30, %v2344_v25  ;;  %v2424_v15 = vadd.f32 %v2416_v56, %v2345_v29 }
 0x467   : > { %v2303_v3 = vpop.permute.xlu1 %2302  ;;  %v2442_v37 = vpop.permute.xlu2 %2441 }
 0x468   : > { %v2447_v43 = vsel %vm949_vm8, %v2434_v39, %v2442_v37  ;;  %v2451_v27 = vsel %vm949_vm8, %v2442_v37, %v2434_v39  ;;  %v2320_v5 = vmul.f32 %v2303_v3, %v2287_v46  ;;  %v2321_v0 = vmul.f32 %v2303_v3, %v2291_v26  ;;  %v2734_v3 = vld [vmem:[%s6096_s4] sm:$0xff] }
 0x46a   : > { %v2334_v12 = vmul.f32 %v5873_v14, %v2320_v5  ;;  %v2335_v55 = vmul.f32 %v5875_v49, %v2321_v0  ;;  %v2827_v5 = vld [vmem:[%s6097_s5 + $0x18] sm:$0xff] }
 0x46f   : > { %v2471_v18 = vpop.permute.xlu2 %2470  ;;  %v2351_v31 = vpop.permute.xlu1 %2350 }
 0x470   : > { %v2482_v11 = vmul.f32 %v2471_v18, %v2447_v43  ;;  %v2483_v24 = vmul.f32 %v2471_v18, %v2451_v27  ;;  %v2366_v53 = vsel %vm868_vm7, %v2351_v31, %v2359_v20  ;;  %v2370_v34 = vsel %vm868_vm7, %v2359_v20, %v2351_v31  ;;  %v2696_v27 = vpop.f32.mrf.mxu2  ;;  %v2725_v18 = vpop.f32.mrf.mxu3 }
 0x471   : > { %v2399_v23 = vmul.f32 %v2382_v32, %v2366_v53  ;;  %v2400_v17 = vmul.f32 %v2382_v32, %v2370_v34  ;;  %v2723_v43 = vadd.f32 %v2722_v33, %v2693_v9  ;;  %v2438_v31 = vpop.permute.xlu0 %2437  ;;  %v2726_v47 = vadd.f32 %v2725_v18, %v2696_v27  ;;  %v2737_v9 = vld [vmem:[%s6096_s4 + $0x18] sm:$0xff] }
 0x472   : > { %v2496_v28 = vmul.f32 %v5947_v45, %v2482_v11  ;;  %v2497_v41 = vmul.f32 %v5949_v62, %v2483_v24 }
 0x473   : > { %v2413_v11 = vmul.f32 %v5930_v1, %v2399_v23  ;;  %v2414_v24 = vmul.f32 %v5932_v22, %v2400_v17  ;;  %v2738_v21 = vmul.f32 %v2734_v3, %v2723_v43 }
 0x474   : > { %v2504_v2 = vadd.f32 %v2496_v28, %v2425_v51  ;;  %v2505_v42 = vadd.f32 %v2497_v41, %v2426_v13  ;;  %v2342_v28 = vadd.f32 %v2334_v12, %v5941_v57  ;;  %v2343_v41 = vadd.f32 %v2335_v55, %v5943_v35 }
 0x475   : > { %v2742_v44 = vmax.f32 %v2738_v21, 0.0 }
 0x476   : > { %2779 = vmatpush.msra.mxu0 %v2504_v2  ;;  %2808 = vmatpush.msra.mxu1 %v2505_v42  ;;  %v2421_v2 = vadd.f32 %v2413_v11, %v2342_v28  ;;  %v2422_v42 = vadd.f32 %v2414_v24, %v2343_v41 }
 0x477   : > { %v2432_v38 = vpop.permute.xlu2 %2431  ;;  %v2440_v59 = vpop.permute.xlu1 %2439 }
 0x478   : > { %v2446_v48 = vsel %vm949_vm8, %v2432_v38, %v2440_v59  ;;  %v2450_v40 = vsel %vm949_vm8, %v2440_v59, %v2432_v38  ;;  %v2699_v57 = vpop.f32.mrf.mxu2  ;;  %v2728_v35 = vpop.f32.mrf.mxu3  ;;  %v2736_v38 = vld [vmem:[%s6096_s4 + $0x10] sm:$0xff] }
 0x479   : > { %v2729_v61 = vadd.f32 %v2728_v35, %v2699_v57 }
 0x47b   : > { %v2740_v50 = vmul.f32 %v2736_v38, %v2729_v61 }
 0x47d   : > { %v2744_v36 = vmax.f32 %v2740_v50, 0.0 }
 0x47f   : > { %v2466_v16 = vpop.permute.xlu2 %2465  ;;  %v2430_v8 = vpop.permute.xlu1 %2429 }
 0x480   : > { %v2480_v39 = vmul.f32 %v2466_v16, %v2446_v48  ;;  %v2481_v60 = vmul.f32 %v2466_v16, %v2450_v40  ;;  %v2445_v14 = vsel %vm949_vm8, %v2430_v8, %v2438_v31  ;;  %v2449_v49 = vsel %vm949_vm8, %v2438_v31, %v2430_v8  ;;  %v2702_v58 = vpop.f32.mrf.mxu2  ;;  %v2731_v63 = vpop.f32.mrf.mxu3  ;;  %v2824_v48 = vld [vmem:[%s6097_s5] sm:$0xff]  ;;  %v2825_v40 = vld [vmem:[%s6097_s5 + $0x8] sm:$0xff]  ;;  %v2826_v16 = vld [vmem:[%s6097_s5 + $0x10] sm:$0xff] }
 0x481   : > { %v2732_v59 = vadd.f32 %v2731_v63, %v2702_v58 }
 0x482   : > { %v2494_v4 = vmul.f32 %v5947_v45, %v2480_v39  ;;  %v2495_v37 = vmul.f32 %v5949_v62, %v2481_v60 }
 0x483   : > { %v2741_v33 = vmul.f32 %v2737_v9, %v2732_v59 }
 0x484   : > { %v2502_v52 = vadd.f32 %v2494_v4, %v2423_v10  ;;  %v2503_v6 = vadd.f32 %v2495_v37, %v2424_v15 }
 0x485   : > { %v2745_v32 = vmax.f32 %v2741_v33, 0.0 }
 0x486   : > { %2780 = vmatpush.msra.mxu0 %v2502_v52  ;;  %2809 = vmatpush.msra.mxu1 %v2503_v6 }
 0x487   : > { %v2461_v20 = vpop.permute.xlu2 %2460 }
 0x488   : > { %v2478_v51 = vmul.f32 %v2461_v20, %v2445_v14  ;;  %v2479_v13 = vmul.f32 %v2461_v20, %v2449_v49 }
 0x48a   : > { %v2492_v1 = vmul.f32 %v5947_v45, %v2478_v51  ;;  %v2493_v22 = vmul.f32 %v5949_v62, %v2479_v13  ;;  %v2739_v45 = vmul.f32 %v2735_v19, %v2726_v47 }
 0x48c   : > { %v2500_v7 = vadd.f32 %v2492_v1, %v2421_v2  ;;  %v2501_v54 = vadd.f32 %v2493_v22, %v2422_v42  ;;  %v2743_v62 = vmax.f32 %v2739_v45, 0.0 }
 0x48e   : > { %2781 = vmatpush.msra.mxu0 %v2500_v7  ;;  %2810 = vmatpush.msra.mxu1 %v2501_v54 }
 0x48f   : > { %3140 = vmatmul.msk.f32.vlgmr.msra.gmra.mxu0 %vm262_vm0, %v2742_v44  ;;  %3144 = vmatmul.msk.f32.vlgmr.msra.gmra.mxu1 %vm262_vm0, %v2742_v44 }
 0x497   : > { %3141 = vmatmul.msk.f32.gmra.mxu0 %vm262_vm0, %v2743_v62  ;;  %3145 = vmatmul.msk.f32.gmra.mxu1 %vm262_vm0, %v2743_v62 }
 0x49f   : > { %3142 = vmatmul.msk.f32.gmra.mxu0 %vm262_vm0, %v2744_v36  ;;  %3146 = vmatmul.msk.f32.gmra.mxu1 %vm262_vm0, %v2744_v36 }
 0x4a7   : > { %3143 = vmatmul.msk.f32.gmra.mxu0 %vm262_vm0, %v2745_v32  ;;  %3147 = vmatmul.msk.f32.gmra.mxu1 %vm262_vm0, %v2745_v32 }
 0x50c   : > { %v2783_v30 = vpop.f32.mrf.mxu0  ;;  %v2812_v56 = vpop.f32.mrf.mxu1 }
 0x514   : > { %v2786_v25 = vpop.f32.mrf.mxu0  ;;  %v2815_v29 = vpop.f32.mrf.mxu1 }
 0x51c   : > { %v2789_v46 = vpop.f32.mrf.mxu0  ;;  %v2818_v26 = vpop.f32.mrf.mxu1 }
 0x524   : > { %v2792_v53 = vpop.f32.mrf.mxu0  ;;  %v2821_v34 = vpop.f32.mrf.mxu1 }
 0x525   : > { %2852 = vmatpush.msra.mxu2 %v2792_v53  ;;  %2881 = vmatpush.msra.mxu3 %v2821_v34 }
 0x527   : > { %2853 = vmatpush.msra.mxu2 %v2789_v46  ;;  %2882 = vmatpush.msra.mxu3 %v2818_v26 }
 0x529   : > { %2854 = vmatpush.msra.mxu2 %v2786_v25  ;;  %2883 = vmatpush.msra.mxu3 %v2815_v29 }
 0x52b   : > { %2855 = vmatpush.msra.mxu2 %v2783_v30  ;;  %2884 = vmatpush.msra.mxu3 %v2812_v56 }
 0x52c   : > { %3148 = vmatmul.msk.f32.vlgmr.msra.gmra.mxu2 %vm262_vm0, %v2824_v48  ;;  %3152 = vmatmul.msk.f32.vlgmr.msra.gmra.mxu3 %vm262_vm0, %v2824_v48 }
 0x534   : > { %3149 = vmatmul.msk.f32.gmra.mxu2 %vm262_vm0, %v2825_v40  ;;  %3153 = vmatmul.msk.f32.gmra.mxu3 %vm262_vm0, %v2825_v40 }
 0x53c   : > { %3150 = vmatmul.msk.f32.gmra.mxu2 %vm262_vm0, %v2826_v16  ;;  %3154 = vmatmul.msk.f32.gmra.mxu3 %vm262_vm0, %v2826_v16 }
 0x544   : > { %3151 = vmatmul.msk.f32.gmra.mxu2 %vm262_vm0, %v2827_v5  ;;  %3155 = vmatmul.msk.f32.gmra.mxu3 %vm262_vm0, %v2827_v5 }
 0x5af   : > { %v2857_v0 = vpop.f32.mrf.mxu2  ;;  %v2886_v39 = vpop.f32.mrf.mxu3 }
 0x5b0   : > { %2898 = vst [vmem:[%s244_s12] sm:$0xff] %v2857_v0 }
 0x5b1   : > { %2899 = vst [vmem:[%s244_s12 + $0x8] sm:$0xff] %v2886_v39 }
 0x5b7   : > { %v2860_v60 = vpop.f32.mrf.mxu2  ;;  %v2889_v10 = vpop.f32.mrf.mxu3 }
 0x5b8   : > { %2900 = vst [vmem:[%s244_s12 + $0x10] sm:$0xff] %v2860_v60 }
 0x5b9   : > { %2901 = vst [vmem:[%s244_s12 + $0x18] sm:$0xff] %v2889_v10 }
 0x5bf   : > { %v2863_v15 = vpop.f32.mrf.mxu2  ;;  %v2892_v23 = vpop.f32.mrf.mxu3 }
 0x5c0   : > { %2902 = vst [vmem:[%s244_s12 + $0x20] sm:$0xff] %v2863_v15 }
 0x5c1   : > { %2903 = vst [vmem:[%s244_s12 + $0x28] sm:$0xff] %v2892_v23 }
 0x5c7   : > { %v2866_v17 = vpop.f32.mrf.mxu2  ;;  %v2895_v4 = vpop.f32.mrf.mxu3 }
 0x5c8   : > { %2904 = vst [vmem:[%s244_s12 + $0x30] sm:$0xff] %v2866_v17 }
 0x5c9   : > { %2905 = vst [vmem:[%s244_s12 + $0x38] sm:$0xff] %v2895_v4 }
 0x5ca   : > { %3258 = shalt.err (!%p3255_p3)
}
 0x5cb   : > { %s3304_s29 = smov 256  }
 0x5cc   : > { %3163 = dma.vmem_to_hbm [thread:$0]  (%p3378_p5), %s2920_s18, 1024, %s2922_s15, %s2907_s20, %s3304_s29, %s3304_s29, %s3296_s17  }
 0x5cd PF: > { %p3169_p4 = scmp.ge.s32.totalorder %s3293_s24, 2  ;;  %s2936_s12 = sand.u32 1, %s3281_s21  }
 0x5ce   : > { %s2937_s26 = scalar_lea.sflag [#allocation4], %s2936_s12 }
 0x5cf   : > { %p3166_p7 = pnand %p3169_p4, %p3382_p6 }
 0x5d1   : > { %p3167_p8 = pneg %p3166_p7 }
 0x5d3   : > { %3276 = dma.done.wait (%p3167_p8), %s2937_s26, 1024  }
 0x5d4   : > { %3278 = vsyncadd (%p3167_p8), %s2937_s26, 4294966272  ;;  %p16_p9 = scmp.ge.s32.totalorder %s3365_s27, 4   ;;  %s6566_s21 = smov %s3285_s22 }
 0x5d5   : > { %s6567_s22 = smov %s3289_s23  ;;  %s6568_s23 = smov %s3376_s30 }
 0x5d6   : > { %s6569_s24 = smov %s3365_s27  ;;  %18 = sbr.rel (!%p16_p9) target bundleno = 3 (0x3), region = 112 }
 0x5db   :  { %2943 = vsyncpa [#allocation4], 1 }
 0x5dc   :  { %2945 = vsyncpa [#allocation4 + $0x1], 1 }

</bundles_post_ra>
